<compile_context>
chip_gen: v5e
topology: v5e:2x2
jax: 0.10.0
libtpu: 0.0.40
codegen_flags: <defaults>
</compile_context>

<pallas_src>
from functools import partial

import jax
import jax.numpy as jnp
from jax import lax
from jax.experimental import pallas as pl
from jax.experimental.pallas import tpu as pltpu

LANE = 128  # TPU lane width; channel dims are padded to a multiple of this.


# ----------------------------------------------------------------------------
# Kernel
# ----------------------------------------------------------------------------
def basic_block_kernel(x_ref, halo_ref, w1_ref, b1_ref, w2_ref, b2_ref, o_ref,
                       *, group_kx=True):
    # x_ref   : (1, TH, W, Cp) f32   output-row tile of one image
    # halo_ref: (1, 4, W, Cp)  f32   2 rows above + 2 rows below the tile
    #                                (zero rows at the image border)
    # w*_ref  : (3, 3*Cp, Cp)  bf16  BN-folded weights, [ky][kx*Cp + cin, cout]
    # b*_ref  : (1, Cp)        f32   BN bias
    # o_ref   : (1, TH, W, Cp) f32
    _, TH, W, Cp = x_ref.shape
    r = pl.program_id(1)
    H = pl.num_programs(1) * TH                  # full (unpadded) image height

    x_main = x_ref[0]                            # (TH, W, Cp) f32 (residual)
    halo = halo_ref[0]                           # (4, W, Cp)  f32

    # Assemble the (TH+4)-row conv input and cast to bf16 once.
    xb = jnp.concatenate(
        [halo[0:2].astype(jnp.bfloat16),
         x_main.astype(jnp.bfloat16),
         halo[2:4].astype(jnp.bfloat16)], axis=0)            # (TH+4, W, Cp)

    def conv3x3(a, w_ref):
        """3x3 conv: 'valid' in H, zero-padded in W, tap-group accumulation.

        a: (Hin, W, Cp) bf16 -> (M, Cp) f32 with M = (Hin-2)*W.
        """
        Hin = a.shape[0]
        Ho = Hin - 2
        M = Ho * W
        zcol = jnp.zeros((Hin, 1, Cp), jnp.bfloat16)
        ap = jnp.concatenate([zcol, a, zcol], axis=1)        # (Hin, W+2, Cp)
        acc = jnp.zeros((M, Cp), jnp.float32)
        for ky in range(3):                                  # static unroll
            wk = w_ref[ky]                                   # (3*Cp, Cp) bf16
            if group_kx:
                # One MXU matmul per ky row, K = 3*Cp (fully feeds the 256-deep
                # v6e/v7x MXU); peak live im2col = one (M, 3*Cp) strip.
                strip = jnp.concatenate(
                    [ap[ky:ky + Ho, kx:kx + W, :].reshape(M, Cp)
                     for kx in range(3)], axis=-1)           # (M, 3*Cp) bf16
                acc = acc + jnp.dot(strip, wk,
                                    preferred_element_type=jnp.float32)
            else:
                # v5e: 128-deep MXU -> per-tap K=Cp accumulation, no wide strip.
                for kx in range(3):
                    tap = ap[ky:ky + Ho, kx:kx + W, :].reshape(M, Cp)
                    acc = acc + jnp.dot(tap, wk[kx * Cp:(kx + 1) * Cp],
                                        preferred_element_type=jnp.float32)
        return acc

    # conv1 (BN folded) + bias + ReLU over the TH+2 rows conv2 needs.
    h1 = jnp.maximum(conv3x3(xb, w1_ref) + b1_ref[...], 0.0)
    h1 = h1.reshape(TH + 2, W, Cp)
    # h1 rows that fall outside the real image must act as conv2's zero padding
    # (NOT conv1-of-zero-rows, which would be relu(b1 + edge contributions)).
    rid = (r * TH - 1) + lax.broadcasted_iota(jnp.int32, (TH + 2, 1, 1), 0)
    h1 = jnp.where((rid >= 0) & (rid < H), h1, 0.0)

    # conv2 (BN folded) + bias.
    h2 = conv3x3(h1.astype(jnp.bfloat16), w2_ref) + b2_ref[...]   # (TH*W, Cp)

    # identity shortcut (f32) + ReLU.
    out = jnp.maximum(h2 + x_main.reshape(TH * W, Cp), 0.0)
    o_ref[0] = out.reshape(TH, W, Cp).astype(o_ref.dtype)


# ----------------------------------------------------------------------------
# Host-side tiling / parameter prep
# ----------------------------------------------------------------------------
def _vmem_limit_bytes():
    """~75% of this generation's physical VMEM (v5e/v6e 128 MiB, v7x 64 MiB)."""
    cap = 64 * 1024 * 1024
    try:
        info_cap = int(pltpu.get_tpu_info().vmem_capacity_bytes)
        if info_cap > 0:
            cap = info_cap
    except Exception:
        pass
    return max(32 * 1024 * 1024, min((cap * 3) // 4, 96 * 1024 * 1024))


def _use_grouped_taps():
    """K=3*Cp strips on v6e/v7x (256-deep MXU); per-tap K=Cp on v5e (128-deep)."""
    try:
        kind = jax.devices()[0].device_kind.lower()
        return ("v5 lite" not in kind) and ("v5e" not in kind)
    except Exception:
        return True


def _estimate_vmem_bytes(th, W, Cp):
    """Rough per-grid-step live-VMEM estimate (bytes) for the kernel body."""
    bf, f32 = 2, 4
    m1, m0 = (th + 2) * W, th * W
    est = 2 * (th * W * Cp * f32)             # x block, double buffered
    est += 2 * (4 * W * Cp * f32)             # halo block, double buffered
    est += 2 * (m0 * Cp * f32)                # out block, double buffered
    est += 2 * 9 * Cp * Cp * bf               # both resident conv weights
    est += (th + 4) * W * Cp * bf             # assembled bf16 input tile
    est += (th + 4) * (W + 2) * Cp * bf       # width-padded bf16 copy
    est += m1 * 3 * Cp * bf                   # widest live im2col strip
    est += m1 * Cp * f32                      # conv1 accumulator / h1
    est += (th + 2) * (W + 2) * Cp * bf       # width-padded h1
    est += m0 * 3 * Cp * bf + m0 * Cp * f32   # conv2 strip + accumulator
    return est


def _pick_row_tile(N, H, W, Cp, budget_bytes):
    divisors = [d for d in range(1, H + 1) if H % d == 0]
    fitting = [d for d in divisors if _estimate_vmem_bytes(d, W, Cp) <= budget_bytes]
    if not fitting:
        return 1
    th = max(fitting)
    if N * (H // th) < 2:                     # v7x megacore: want >=2 grid steps
        smaller = [d for d in fitting if d < H]
        if smaller:
            th = max(smaller)
    return th


def _build_halos(xp, th):
    """(N, H, W, Cp) -> (N*nR, 4, W, Cp): 2 rows above + 2 rows below each row
    tile (zero rows at the image border, matching the conv's zero padding)."""
    N, H, W, Cp = xp.shape
    nR = H // th
    z2 = jnp.zeros((N, 2, W, Cp), xp.dtype)
    tiles = []
    for r_ in range(nR):
        top = z2 if r_ == 0 else xp[:, r_ * th - 2:r_ * th]
        bot = z2 if r_ == nR - 1 else xp[:, (r_ + 1) * th:(r_ + 1) * th + 2]
        tiles.append(jnp.concatenate([top, bot], axis=1))     # (N, 4, W, Cp)
    halos = jnp.stack(tiles, axis=1)                          # (N, nR, 4, W, Cp)
    return halos.reshape(N * nR, 4, W, Cp)


def prep_block_params(w1_hwio, b1, w2_hwio, b2, channels_padded):
    """Pad BN-folded HWIO weights/biases to Cp lanes and pack for the kernel.

    Weights -> (3, 3*Cp, Cp) bf16 with row index kx*Cp + cin (matches the
    kernel's kx-major im2col strips); biases -> (1, Cp) f32.
    TODO(synk): optional int8 (v6e) / fp8 (v7x) weight quantization.
    """
    Cp = channels_padded
    C = w1_hwio.shape[2]
    pad_c = Cp - C

    def prep_w(w):
        wp = jnp.pad(w, ((0, 0), (0, 0), (0, pad_c), (0, pad_c)))
        return wp.reshape(3, 3 * Cp, Cp).astype(jnp.bfloat16)

    def prep_b(b):
        return jnp.pad(b, (0, pad_c)).reshape(1, Cp).astype(jnp.float32)

    return prep_w(w1_hwio), prep_b(b1), prep_w(w2_hwio), prep_b(b2)


# ----------------------------------------------------------------------------
# Forward passes
# ----------------------------------------------------------------------------
def basic_block_forward_padded(xp, w1p, b1p, w2p, b2p, *, row_tile=None):
    """BasicBlock forward on channel-padded NHWC activations (Cp % 128 == 0).

    Use this when stacking blocks so activations stay in padded-Cp layout
    between blocks (no per-block pad / slice HBM round trips)."""
    N, H, W, Cp = xp.shape
    assert Cp % LANE == 0
    assert w1p.shape == (3, 3 * Cp, Cp) and w2p.shape == (3, 3 * Cp, Cp)

    vmem_limit = _vmem_limit_bytes()
    th = row_tile if row_tile is not None else _pick_row_tile(N, H, W, Cp,
                                                              vmem_limit // 2)
    assert H % th == 0, "row_tile must divide H"
    nR = H // th

    halos = _build_halos(xp, th)
    group_kx = _use_grouped_taps()

    flops = 2 * N * (2 * H * W * (9 * Cp) * Cp)            # two 3x3 convs
    bytes_accessed = (2 * N * H * W * Cp * 4               # x in + out
                      + N * nR * 4 * W * Cp * 4            # halo rows
                      + 2 * (9 * Cp * Cp * 2)              # bf16 weights
                      + 2 * (Cp * 4))                      # biases

    out = pl.pallas_call(
        partial(basic_block_kernel, group_kx=group_kx),
        out_shape=jax.ShapeDtypeStruct((N, H, W, Cp), jnp.float32),
        grid_spec=pltpu.PrefetchScalarGridSpec(
            num_scalar_prefetch=0,
            grid=(N, nR),
            in_specs=[
                pl.BlockSpec((1, th, W, Cp), lambda n, r: (n, r, 0, 0)),
                pl.BlockSpec((1, 4, W, Cp), lambda n, r: (n * nR + r, 0, 0, 0)),
                pl.BlockSpec((3, 3 * Cp, Cp), lambda n, r: (0, 0, 0)),
                pl.BlockSpec((1, Cp), lambda n, r: (0, 0)),
                pl.BlockSpec((3, 3 * Cp, Cp), lambda n, r: (0, 0, 0)),
                pl.BlockSpec((1, Cp), lambda n, r: (0, 0)),
            ],
            out_specs=pl.BlockSpec((1, th, W, Cp), lambda n, r: (n, r, 0, 0)),
        ),
        compiler_params=pltpu.CompilerParams(
            dimension_semantics=("parallel", "parallel"),
            vmem_limit_bytes=vmem_limit),
        cost_estimate=pl.CostEstimate(
            flops=flops, transcendentals=0, bytes_accessed=bytes_accessed),
    )(xp, halos, w1p, b1p, w2p, b2p)
    return out


def basic_block_forward(x_nhwc, w1_hwio, b1, w2_hwio, b2, *, stride=1,
                        row_tile=None):
    """Convenience wrapper: pads channels to a lane multiple once, runs the
    fused kernel, slices the padding back off."""
    if stride != 1:
        raise NotImplementedError(
            "TODO(synk): stride>1 / downsample shortcut branch not implemented")
    N, H, W, C = x_nhwc.shape
    assert w1_hwio.shape == (3, 3, C, C) and w2_hwio.shape == (3, 3, C, C), (
        "identity shortcut (stride=1, downsample=None) requires Cin == Cout")

    Cp = max(LANE, -(-C // LANE) * LANE)
    xp = jnp.pad(x_nhwc, ((0, 0), (0, 0), (0, 0), (0, Cp - C)))
    w1p, b1p, w2p, b2p = prep_block_params(w1_hwio, b1, w2_hwio, b2, Cp)
    out = basic_block_forward_padded(xp, w1p, b1p, w2p, b2p, row_tile=row_tile)
    return out[..., :C]


# ----------------------------------------------------------------------------
# BN folding, synthetic params, pure-JAX reference
# ----------------------------------------------------------------------------
def fold_bn_into_conv(w_oihw, gamma, beta, mean, var, eps=1e-5):
    """Fold inference-mode BatchNorm into the preceding conv (OIHW -> HWIO)."""
    scale = gamma / jnp.sqrt(var + eps)                 # (Cout,)
    bias = beta - mean * scale                          # (Cout,)
    w_hwio = jnp.transpose(w_oihw, (2, 3, 1, 0))        # (3, 3, Cin, Cout)
    return w_hwio * scale[None, None, None, :], bias


def make_params(key, channels):
    """Deterministic synthetic weights matching the PyTorch BasicBlock shapes."""
    ks = jax.random.split(key, 10)
    w1 = 0.2 * jax.random.normal(ks[0], (channels, channels, 3, 3), jnp.float32)
    w2 = 0.2 * jax.random.normal(ks[1], (channels, channels, 3, 3), jnp.float32)

    def bn(k0, k1, k2, k3, c):
        gamma = 1.0 + 0.1 * jax.random.normal(k0, (c,), jnp.float32)
        beta = 0.1 * jax.random.normal(k1, (c,), jnp.float32)
        mean = 0.1 * jax.random.normal(k2, (c,), jnp.float32)
        var = jnp.abs(jax.random.normal(k3, (c,), jnp.float32)) + 0.5
        return gamma, beta, mean, var

    w1f, b1 = fold_bn_into_conv(w1, *bn(ks[2], ks[3], ks[4], ks[5], channels))
    w2f, b2 = fold_bn_into_conv(w2, *bn(ks[6], ks[7], ks[8], ks[9], channels))
    return w1f, b1, w2f, b2


def reference_forward(x_nhwc, w1_hwio, b1, w2_hwio, b2):
    """Pure-JAX reference (lax convs) with the same numerics policy as the
    kernel: bf16 matmul inputs, f32 accumulation, f32 bias/ReLU/residual."""
    dn = ('NHWC', 'HWIO', 'NHWC')

    def conv(a, w):
        return lax.conv_general_dilated(
            a.astype(jnp.bfloat16), w.astype(jnp.bfloat16), (1, 1),
            [(1, 1), (1, 1)], dimension_numbers=dn,
            preferred_element_type=jnp.float32)

    h = jnp.maximum(conv(x_nhwc, w1_hwio) + b1.reshape(1, 1, 1, -1), 0.0)
    h2 = conv(h, w2_hwio) + b2.reshape(1, 1, 1, -1)
    return jnp.maximum(h2 + x_nhwc, 0.0)


if __name__ == "__main__":
    # Small config consistent with BasicBlock (expansion=1, stride=1,
    # downsample=None => in_channel == out_channel).
    N, C, H, W = 2, 4, 16, 16

    key = jax.random.PRNGKey(0)
    kx_, kp_ = jax.random.split(key)
    x_nchw = jax.random.normal(kx_, (N, C, H, W), jnp.float32)
    x_nhwc = jnp.transpose(x_nchw, (0, 2, 3, 1))      # NCHW -> NHWC at boundary

    w1, b1, w2, b2 = make_params(kp_, C)
    ref = reference_forward(x_nhwc, w1, b1, w2, b2)

    # Run both the auto-picked tiling (whole image) and an explicit 2-way row
    # tiling so the 2-row-halo path is exercised and checked.
    for rt in (None, 8):
        out = jax.block_until_ready(
            basic_block_forward(x_nhwc, w1, b1, w2, b2, row_tile=rt))
        assert out.shape == ref.shape, "shape mismatch vs reference"
        err = float(jnp.max(jnp.abs(out - ref)))
        assert err < 1e-2, f"mismatch vs reference (row_tile={rt}), |diff|={err}"

    print("KERNEL_OK")
</pallas_src>

<mosaic_0001>
module attributes {stable_mosaic.version = 11 : i64} {
  func.func @basic_block_kernel(%arg0: i32, %arg1: i32, %arg2: memref<1x16x16x128xf32, #tpu.memory_space<vmem>>, %arg3: memref<1x4x16x128xf32, #tpu.memory_space<vmem>>, %arg4: memref<3x384x128xbf16, #tpu.memory_space<vmem>>, %arg5: memref<1x128xf32, #tpu.memory_space<vmem>>, %arg6: memref<3x384x128xbf16, #tpu.memory_space<vmem>>, %arg7: memref<1x128xf32, #tpu.memory_space<vmem>>, %arg8: memref<1x16x16x128xf32, #tpu.memory_space<vmem>>) attributes {dimension_semantics = [#tpu.dimension_semantics<parallel>, #tpu.dimension_semantics<parallel>], iteration_bounds = array<i64: 2, 1>, scalar_prefetch = 0 : i64, scratch_operands = 0 : i64, tpu.core_type = #tpu.core_type<tc>, window_params = [{transform_indices = @transform_0, window_bounds = array<i64: 1, 16, 16, 128>}, {transform_indices = @transform_1, window_bounds = array<i64: 1, 4, 16, 128>}, {pipeline_mode = #tpu.pipeline_mode<synchronous>, transform_indices = @transform_2, window_bounds = array<i64: 3, 384, 128>}, {pipeline_mode = #tpu.pipeline_mode<synchronous>, transform_indices = @transform_3, window_bounds = array<i64: 1, 128>}, {pipeline_mode = #tpu.pipeline_mode<synchronous>, transform_indices = @transform_4, window_bounds = array<i64: 3, 384, 128>}, {pipeline_mode = #tpu.pipeline_mode<synchronous>, transform_indices = @transform_5, window_bounds = array<i64: 1, 128>}, {transform_indices = @transform_6, window_bounds = array<i64: 1, 16, 16, 128>}]} {
    %c0 = arith.constant 0 : index
    %c0_0 = arith.constant 0 : index
    %c0_1 = arith.constant 0 : index
    %c0_2 = arith.constant 0 : index
    %0 = vector.load %arg2[%c0, %c0_0, %c0_1, %c0_2] : memref<1x16x16x128xf32, #tpu.memory_space<vmem>>, vector<1x16x16x128xf32>
    %1 = vector.shape_cast %0 : vector<1x16x16x128xf32> to vector<16x16x128xf32>
    %c0_3 = arith.constant 0 : index
    %c0_4 = arith.constant 0 : index
    %c0_5 = arith.constant 0 : index
    %c0_6 = arith.constant 0 : index
    %2 = vector.load %arg3[%c0_3, %c0_4, %c0_5, %c0_6] : memref<1x4x16x128xf32, #tpu.memory_space<vmem>>, vector<1x4x16x128xf32>
    %3 = vector.shape_cast %2 : vector<1x4x16x128xf32> to vector<4x16x128xf32>
    %4 = vector.extract_strided_slice %3 {offsets = [0, 0, 0], sizes = [2, 16, 128], strides = [1, 1, 1]} : vector<4x16x128xf32> to vector<2x16x128xf32>
    %5 = arith.truncf %4 : vector<2x16x128xf32> to vector<2x16x128xbf16>
    %6 = arith.truncf %1 : vector<16x16x128xf32> to vector<16x16x128xbf16>
    %7 = vector.extract_strided_slice %3 {offsets = [2, 0, 0], sizes = [2, 16, 128], strides = [1, 1, 1]} : vector<4x16x128xf32> to vector<2x16x128xf32>
    %8 = arith.truncf %7 : vector<2x16x128xf32> to vector<2x16x128xbf16>
    %9 = tpu.concatenate %5, %6, %8 in 0 : vector<2x16x128xbf16>, vector<16x16x128xbf16>, vector<2x16x128xbf16> -> vector<20x16x128xbf16>
    %cst = arith.constant 0.000000e+00 : bf16
    %10 = vector.broadcast %cst : bf16 to vector<20x1x128xbf16>
    %11 = tpu.concatenate %10, %9, %10 in 1 : vector<20x1x128xbf16>, vector<20x16x128xbf16>, vector<20x1x128xbf16> -> vector<20x18x128xbf16>
    %cst_7 = arith.constant 0.000000e+00 : f32
    %12 = vector.broadcast %cst_7 : f32 to vector<288x128xf32>
    %c0_8 = arith.constant 0 : index
    %c0_9 = arith.constant 0 : index
    %c0_10 = arith.constant 0 : index
    %13 = vector.load %arg4[%c0_8, %c0_9, %c0_10] : memref<3x384x128xbf16, #tpu.memory_space<vmem>>, vector<1x384x128xbf16>
    %14 = vector.shape_cast %13 : vector<1x384x128xbf16> to vector<384x128xbf16>
    %15 = vector.extract_strided_slice %11 {offsets = [0, 0, 0], sizes = [18, 16, 128], strides = [1, 1, 1]} : vector<20x18x128xbf16> to vector<18x16x128xbf16>
    %16 = vector.shape_cast %15 : vector<18x16x128xbf16> to vector<288x128xbf16>
    %17 = vector.extract_strided_slice %11 {offsets = [0, 1, 0], sizes = [18, 16, 128], strides = [1, 1, 1]} : vector<20x18x128xbf16> to vector<18x16x128xbf16>
    %18 = vector.shape_cast %17 : vector<18x16x128xbf16> to vector<288x128xbf16>
    %19 = vector.extract_strided_slice %11 {offsets = [0, 2, 0], sizes = [18, 16, 128], strides = [1, 1, 1]} : vector<20x18x128xbf16> to vector<18x16x128xbf16>
    %20 = vector.shape_cast %19 : vector<18x16x128xbf16> to vector<288x128xbf16>
    %21 = tpu.concatenate %16, %18, %20 in 1 : vector<288x128xbf16>, vector<288x128xbf16>, vector<288x128xbf16> -> vector<288x384xbf16>
    %cst_11 = arith.constant dense<0.000000e+00> : vector<288x128xf32>
    %22 = tpu.matmul %21, %14, %cst_11 {dimension_numbers = #tpu.dot_dimension_numbers<[1], [0], [0], [1], [0, 0, 1, 1], [], []>} : vector<288x384xbf16>, vector<384x128xbf16>, vector<288x128xf32> -> vector<288x128xf32>
    %23 = arith.addf %12, %22 : vector<288x128xf32>
    %c1 = arith.constant 1 : index
    %c0_12 = arith.constant 0 : index
    %c0_13 = arith.constant 0 : index
    %24 = vector.load %arg4[%c1, %c0_12, %c0_13] : memref<3x384x128xbf16, #tpu.memory_space<vmem>>, vector<1x384x128xbf16>
    %25 = vector.shape_cast %24 : vector<1x384x128xbf16> to vector<384x128xbf16>
    %26 = vector.extract_strided_slice %11 {offsets = [1, 0, 0], sizes = [18, 16, 128], strides = [1, 1, 1]} : vector<20x18x128xbf16> to vector<18x16x128xbf16>
    %27 = vector.shape_cast %26 : vector<18x16x128xbf16> to vector<288x128xbf16>
    %28 = vector.extract_strided_slice %11 {offsets = [1, 1, 0], sizes = [18, 16, 128], strides = [1, 1, 1]} : vector<20x18x128xbf16> to vector<18x16x128xbf16>
    %29 = vector.shape_cast %28 : vector<18x16x128xbf16> to vector<288x128xbf16>
    %30 = vector.extract_strided_slice %11 {offsets = [1, 2, 0], sizes = [18, 16, 128], strides = [1, 1, 1]} : vector<20x18x128xbf16> to vector<18x16x128xbf16>
    %31 = vector.shape_cast %30 : vector<18x16x128xbf16> to vector<288x128xbf16>
    %32 = tpu.concatenate %27, %29, %31 in 1 : vector<288x128xbf16>, vector<288x128xbf16>, vector<288x128xbf16> -> vector<288x384xbf16>
    %cst_14 = arith.constant dense<0.000000e+00> : vector<288x128xf32>
    %33 = tpu.matmul %32, %25, %cst_14 {dimension_numbers = #tpu.dot_dimension_numbers<[1], [0], [0], [1], [0, 0, 1, 1], [], []>} : vector<288x384xbf16>, vector<384x128xbf16>, vector<288x128xf32> -> vector<288x128xf32>
    %34 = arith.addf %23, %33 : vector<288x128xf32>
    %c2 = arith.constant 2 : index
    %c0_15 = arith.constant 0 : index
    %c0_16 = arith.constant 0 : index
    %35 = vector.load %arg4[%c2, %c0_15, %c0_16] : memref<3x384x128xbf16, #tpu.memory_space<vmem>>, vector<1x384x128xbf16>
    %36 = vector.shape_cast %35 : vector<1x384x128xbf16> to vector<384x128xbf16>
    %37 = vector.extract_strided_slice %11 {offsets = [2, 0, 0], sizes = [18, 16, 128], strides = [1, 1, 1]} : vector<20x18x128xbf16> to vector<18x16x128xbf16>
    %38 = vector.shape_cast %37 : vector<18x16x128xbf16> to vector<288x128xbf16>
    %39 = vector.extract_strided_slice %11 {offsets = [2, 1, 0], sizes = [18, 16, 128], strides = [1, 1, 1]} : vector<20x18x128xbf16> to vector<18x16x128xbf16>
    %40 = vector.shape_cast %39 : vector<18x16x128xbf16> to vector<288x128xbf16>
    %41 = vector.extract_strided_slice %11 {offsets = [2, 2, 0], sizes = [18, 16, 128], strides = [1, 1, 1]} : vector<20x18x128xbf16> to vector<18x16x128xbf16>
    %42 = vector.shape_cast %41 : vector<18x16x128xbf16> to vector<288x128xbf16>
    %43 = tpu.concatenate %38, %40, %42 in 1 : vector<288x128xbf16>, vector<288x128xbf16>, vector<288x128xbf16> -> vector<288x384xbf16>
    %cst_17 = arith.constant dense<0.000000e+00> : vector<288x128xf32>
    %44 = tpu.matmul %43, %36, %cst_17 {dimension_numbers = #tpu.dot_dimension_numbers<[1], [0], [0], [1], [0, 0, 1, 1], [], []>} : vector<288x384xbf16>, vector<384x128xbf16>, vector<288x128xf32> -> vector<288x128xf32>
    %45 = arith.addf %34, %44 : vector<288x128xf32>
    %c0_18 = arith.constant 0 : index
    %c0_19 = arith.constant 0 : index
    %46 = vector.load %arg5[%c0_18, %c0_19] : memref<1x128xf32, #tpu.memory_space<vmem>>, vector<1x128xf32>
    %47 = vector.broadcast %46 : vector<1x128xf32> to vector<288x128xf32>
    %48 = arith.addf %45, %47 : vector<288x128xf32>
    %cst_20 = arith.constant 0.000000e+00 : f32
    %49 = vector.broadcast %cst_20 : f32 to vector<288x128xf32>
    %50 = arith.maximumf %48, %49 : vector<288x128xf32>
    %51 = vector.shape_cast %50 : vector<288x128xf32> to vector<18x16x128xf32>
    %c16_i32 = arith.constant 16 : i32
    %52 = arith.muli %arg1, %c16_i32 : i32
    %c1_i32 = arith.constant 1 : i32
    %53 = arith.subi %52, %c1_i32 : i32
    %54 = tpu.iota {dimensions = array<i32: 0>} : vector<18x1x1xi32>
    %55 = vector.broadcast %53 : i32 to vector<18x1x1xi32>
    %56 = arith.addi %55, %54 : vector<18x1x1xi32>
    %c0_i32 = arith.constant 0 : i32
    %57 = vector.broadcast %c0_i32 : i32 to vector<18x1x1xi32>
    %58 = arith.cmpi sge, %56, %57 : vector<18x1x1xi32>
    %c16_i32_21 = arith.constant 16 : i32
    %59 = vector.broadcast %c16_i32_21 : i32 to vector<18x1x1xi32>
    %60 = arith.cmpi slt, %56, %59 : vector<18x1x1xi32>
    %61 = arith.andi %58, %60 : vector<18x1x1xi1>
    %cst_22 = arith.constant 0.000000e+00 : f32
    %62 = vector.shape_cast %61 : vector<18x1x1xi1> to vector<18x1x1xi1>
    %63 = vector.broadcast %62 : vector<18x1x1xi1> to vector<18x16x128xi1>
    %64 = vector.broadcast %cst_22 : f32 to vector<18x16x128xf32>
    %65 = arith.select %63, %51, %64 : vector<18x16x128xi1>, vector<18x16x128xf32>
    %66 = arith.truncf %65 : vector<18x16x128xf32> to vector<18x16x128xbf16>
    %cst_23 = arith.constant 0.000000e+00 : bf16
    %67 = vector.broadcast %cst_23 : bf16 to vector<18x1x128xbf16>
    %68 = tpu.concatenate %67, %66, %67 in 1 : vector<18x1x128xbf16>, vector<18x16x128xbf16>, vector<18x1x128xbf16> -> vector<18x18x128xbf16>
    %cst_24 = arith.constant 0.000000e+00 : f32
    %69 = vector.broadcast %cst_24 : f32 to vector<256x128xf32>
    %c0_25 = arith.constant 0 : index
    %c0_26 = arith.constant 0 : index
    %c0_27 = arith.constant 0 : index
    %70 = vector.load %arg6[%c0_25, %c0_26, %c0_27] : memref<3x384x128xbf16, #tpu.memory_space<vmem>>, vector<1x384x128xbf16>
    %71 = vector.shape_cast %70 : vector<1x384x128xbf16> to vector<384x128xbf16>
    %72 = vector.extract_strided_slice %68 {offsets = [0, 0, 0], sizes = [16, 16, 128], strides = [1, 1, 1]} : vector<18x18x128xbf16> to vector<16x16x128xbf16>
    %73 = vector.shape_cast %72 : vector<16x16x128xbf16> to vector<256x128xbf16>
    %74 = vector.extract_strided_slice %68 {offsets = [0, 1, 0], sizes = [16, 16, 128], strides = [1, 1, 1]} : vector<18x18x128xbf16> to vector<16x16x128xbf16>
    %75 = vector.shape_cast %74 : vector<16x16x128xbf16> to vector<256x128xbf16>
    %76 = vector.extract_strided_slice %68 {offsets = [0, 2, 0], sizes = [16, 16, 128], strides = [1, 1, 1]} : vector<18x18x128xbf16> to vector<16x16x128xbf16>
    %77 = vector.shape_cast %76 : vector<16x16x128xbf16> to vector<256x128xbf16>
    %78 = tpu.concatenate %73, %75, %77 in 1 : vector<256x128xbf16>, vector<256x128xbf16>, vector<256x128xbf16> -> vector<256x384xbf16>
    %cst_28 = arith.constant dense<0.000000e+00> : vector<256x128xf32>
    %79 = tpu.matmul %78, %71, %cst_28 {dimension_numbers = #tpu.dot_dimension_numbers<[1], [0], [0], [1], [0, 0, 1, 1], [], []>} : vector<256x384xbf16>, vector<384x128xbf16>, vector<256x128xf32> -> vector<256x128xf32>
    %80 = arith.addf %69, %79 : vector<256x128xf32>
    %c1_29 = arith.constant 1 : index
    %c0_30 = arith.constant 0 : index
    %c0_31 = arith.constant 0 : index
    %81 = vector.load %arg6[%c1_29, %c0_30, %c0_31] : memref<3x384x128xbf16, #tpu.memory_space<vmem>>, vector<1x384x128xbf16>
    %82 = vector.shape_cast %81 : vector<1x384x128xbf16> to vector<384x128xbf16>
    %83 = vector.extract_strided_slice %68 {offsets = [1, 0, 0], sizes = [16, 16, 128], strides = [1, 1, 1]} : vector<18x18x128xbf16> to vector<16x16x128xbf16>
    %84 = vector.shape_cast %83 : vector<16x16x128xbf16> to vector<256x128xbf16>
    %85 = vector.extract_strided_slice %68 {offsets = [1, 1, 0], sizes = [16, 16, 128], strides = [1, 1, 1]} : vector<18x18x128xbf16> to vector<16x16x128xbf16>
    %86 = vector.shape_cast %85 : vector<16x16x128xbf16> to vector<256x128xbf16>
    %87 = vector.extract_strided_slice %68 {offsets = [1, 2, 0], sizes = [16, 16, 128], strides = [1, 1, 1]} : vector<18x18x128xbf16> to vector<16x16x128xbf16>
    %88 = vector.shape_cast %87 : vector<16x16x128xbf16> to vector<256x128xbf16>
    %89 = tpu.concatenate %84, %86, %88 in 1 : vector<256x128xbf16>, vector<256x128xbf16>, vector<256x128xbf16> -> vector<256x384xbf16>
    %cst_32 = arith.constant dense<0.000000e+00> : vector<256x128xf32>
    %90 = tpu.matmul %89, %82, %cst_32 {dimension_numbers = #tpu.dot_dimension_numbers<[1], [0], [0], [1], [0, 0, 1, 1], [], []>} : vector<256x384xbf16>, vector<384x128xbf16>, vector<256x128xf32> -> vector<256x128xf32>
    %91 = arith.addf %80, %90 : vector<256x128xf32>
    %c2_33 = arith.constant 2 : index
    %c0_34 = arith.constant 0 : index
    %c0_35 = arith.constant 0 : index
    %92 = vector.load %arg6[%c2_33, %c0_34, %c0_35] : memref<3x384x128xbf16, #tpu.memory_space<vmem>>, vector<1x384x128xbf16>
    %93 = vector.shape_cast %92 : vector<1x384x128xbf16> to vector<384x128xbf16>
    %94 = vector.extract_strided_slice %68 {offsets = [2, 0, 0], sizes = [16, 16, 128], strides = [1, 1, 1]} : vector<18x18x128xbf16> to vector<16x16x128xbf16>
    %95 = vector.shape_cast %94 : vector<16x16x128xbf16> to vector<256x128xbf16>
    %96 = vector.extract_strided_slice %68 {offsets = [2, 1, 0], sizes = [16, 16, 128], strides = [1, 1, 1]} : vector<18x18x128xbf16> to vector<16x16x128xbf16>
    %97 = vector.shape_cast %96 : vector<16x16x128xbf16> to vector<256x128xbf16>
    %98 = vector.extract_strided_slice %68 {offsets = [2, 2, 0], sizes = [16, 16, 128], strides = [1, 1, 1]} : vector<18x18x128xbf16> to vector<16x16x128xbf16>
    %99 = vector.shape_cast %98 : vector<16x16x128xbf16> to vector<256x128xbf16>
    %100 = tpu.concatenate %95, %97, %99 in 1 : vector<256x128xbf16>, vector<256x128xbf16>, vector<256x128xbf16> -> vector<256x384xbf16>
    %cst_36 = arith.constant dense<0.000000e+00> : vector<256x128xf32>
    %101 = tpu.matmul %100, %93, %cst_36 {dimension_numbers = #tpu.dot_dimension_numbers<[1], [0], [0], [1], [0, 0, 1, 1], [], []>} : vector<256x384xbf16>, vector<384x128xbf16>, vector<256x128xf32> -> vector<256x128xf32>
    %102 = arith.addf %91, %101 : vector<256x128xf32>
    %c0_37 = arith.constant 0 : index
    %c0_38 = arith.constant 0 : index
    %103 = vector.load %arg7[%c0_37, %c0_38] : memref<1x128xf32, #tpu.memory_space<vmem>>, vector<1x128xf32>
    %104 = vector.broadcast %103 : vector<1x128xf32> to vector<256x128xf32>
    %105 = arith.addf %102, %104 : vector<256x128xf32>
    %106 = vector.shape_cast %1 : vector<16x16x128xf32> to vector<256x128xf32>
    %107 = arith.addf %105, %106 : vector<256x128xf32>
    %cst_39 = arith.constant 0.000000e+00 : f32
    %108 = vector.broadcast %cst_39 : f32 to vector<256x128xf32>
    %109 = arith.maximumf %107, %108 : vector<256x128xf32>
    %110 = vector.shape_cast %109 : vector<256x128xf32> to vector<16x16x128xf32>
    %c0_40 = arith.constant 0 : index
    %c0_41 = arith.constant 0 : index
    %c0_42 = arith.constant 0 : index
    %c0_43 = arith.constant 0 : index
    %111 = vector.load %arg8[%c0_40, %c0_41, %c0_42, %c0_43] : memref<1x16x16x128xf32, #tpu.memory_space<vmem>>, vector<1x16x16x128xf32>
    %112 = vector.shape_cast %111 : vector<1x16x16x128xf32> to vector<16x16x128xf32>
    %113 = vector.shape_cast %110 : vector<16x16x128xf32> to vector<1x16x16x128xf32>
    tpu.vector_store %arg8[%c0_40, %c0_41, %c0_42, %c0_43], %113 {strides = array<i32>} : memref<1x16x16x128xf32, #tpu.memory_space<vmem>>, vector<1x16x16x128xf32>,
    return
  }
  func.func @transform_0(%arg0: i32, %arg1: i32) -> (i32, i32, i32, i32) {
    %c0_i32 = arith.constant 0 : i32
    %c0_i32_0 = arith.constant 0 : i32
    %c0_i32_1 = arith.constant 0 : i32
    return %arg0, %arg1, %c0_i32, %c0_i32_0 : i32, i32, i32, i32
  }
  func.func @transform_1(%arg0: i32, %arg1: i32) -> (i32, i32, i32, i32) {
    %c1_i32 = arith.constant 1 : i32
    %0 = arith.muli %arg0, %c1_i32 : i32
    %1 = arith.addi %0, %arg1 : i32
    %c0_i32 = arith.constant 0 : i32
    %c0_i32_0 = arith.constant 0 : i32
    %c0_i32_1 = arith.constant 0 : i32
    %c0_i32_2 = arith.constant 0 : i32
    return %1, %c0_i32, %c0_i32_0, %c0_i32_1 : i32, i32, i32, i32
  }
  func.func @transform_2(%arg0: i32, %arg1: i32) -> (i32, i32, i32) {
    %c0_i32 = arith.constant 0 : i32
    %c0_i32_0 = arith.constant 0 : i32
    %c0_i32_1 = arith.constant 0 : i32
    %c0_i32_2 = arith.constant 0 : i32
    return %c0_i32, %c0_i32_0, %c0_i32_1 : i32, i32, i32
  }
  func.func @transform_3(%arg0: i32, %arg1: i32) -> (i32, i32) {
    %c0_i32 = arith.constant 0 : i32
    %c0_i32_0 = arith.constant 0 : i32
    %c0_i32_1 = arith.constant 0 : i32
    return %c0_i32, %c0_i32_0 : i32, i32
  }
  func.func @transform_4(%arg0: i32, %arg1: i32) -> (i32, i32, i32) {
    %c0_i32 = arith.constant 0 : i32
    %c0_i32_0 = arith.constant 0 : i32
    %c0_i32_1 = arith.constant 0 : i32
    %c0_i32_2 = arith.constant 0 : i32
    return %c0_i32, %c0_i32_0, %c0_i32_1 : i32, i32, i32
  }
  func.func @transform_5(%arg0: i32, %arg1: i32) -> (i32, i32) {
    %c0_i32 = arith.constant 0 : i32
    %c0_i32_0 = arith.constant 0 : i32
    %c0_i32_1 = arith.constant 0 : i32
    return %c0_i32, %c0_i32_0 : i32, i32
  }
  func.func @transform_6(%arg0: i32, %arg1: i32) -> (i32, i32, i32, i32) {
    %c0_i32 = arith.constant 0 : i32
    %c0_i32_0 = arith.constant 0 : i32
    %c0_i32_1 = arith.constant 0 : i32
    return %arg0, %arg1, %c0_i32, %c0_i32_0 : i32, i32, i32, i32
  }
}

</mosaic_0001>

<bundles_post_ra>
// kernel: tpu_custom_call.1
= control target key start
LH: loop header
LB: loop body
LE: loop exit
PB: predicated region body
PF: predicated region fallthrough
CT: control target
= control target key end

     0   :  { %s8524_s0 = inlined_call_operand.hbm [shape: f32[2,16,16,128], index: 0, kind: input, shape index: {}]   ;;  %s8525_s1 = inlined_call_operand.hbm [shape: f32[2,4,16,128], index: 1, kind: input, shape index: {}]   ;;  %s8526_s2 = inlined_call_operand.hbm [shape: bf16[3,384,128], index: 2, kind: input, shape index: {}]   ;;  %s8527_s3 = inlined_call_operand.vmem [shape: f32[1,128], index: 3, kind: input, shape index: {}]   ;;  %s8528_s4 = inlined_call_operand.hbm [shape: bf16[3,384,128], index: 4, kind: input, shape index: {}]   ;;  %s8529_s5 = inlined_call_operand.vmem [shape: f32[1,128], index: 5, kind: input, shape index: {}]   ;;  %s8530_s6 = inlined_call_operand.hbm [shape: f32[2,16,16,128], index: 6, kind: output, shape index: {}]  }
   0x1   :  { %8631 = sst [smem:[#allocation103_spill]] %s8524_s0 }
   0x2   :  { %8632 = sst [smem:[#allocation104_spill]] %s8526_s2 }
   0x3   :  { %8633 = sst [smem:[#allocation105_spill]] %s8528_s4 }
   0x4   :  { %11 = vsyncpa [#allocation3], 0 }
   0x5   :  { %13 = vsyncpa [#allocation3 + $0x1], 0 }
   0x6   :  { %14 = vsyncpa [#allocation6], 0 }
   0x7   :  { %16 = vsyncpa [#allocation6 + $0x1], 0 }
   0x8   :  { %17 = vsyncpa [#allocation9], 0 }
   0x9   :  { %18 = vsyncpa [#allocation4], 0 }
   0xa   :  { %20 = vsyncpa [#allocation4 + $0x1], 0  ;;  %s6395_s21 = smov 0   ;;  %s6397_s22 = smov 0  }
   0xb   :  { %s6399_s23 = smov 0   ;;  %s6401_s24 = smov 0  }
   0xc   :  { %s6403_s25 = smov 0   ;;  %s6405_s26 = smov 0  }
   0xd LB: > { %8634 = sst [smem:[#allocation16_spill]] %s6337_s23  ;;  %s6426_s27 = sadd.s32 4294967295, %s6349_s26   ;;  %s6349_s26 = sphi %s6405_s26, %s26_s26   ;;  %s6345_s25 = sphi %s6403_s25, %s8967_s25   ;;  %s6341_s24 = sphi %s6401_s24, %s8966_s24   ;;  %s6337_s23 = sphi %s6399_s23, %s8962_s23   ;;  %s6333_s22 = sphi %s6397_s22, %s8965_s22   ;;  %s6329_s21 = sphi %s6395_s21, %s8964_s21  }
   0xe   : > { %s5244_s28 = sadd.s32 4294967294, %s6349_s26   ;;  %p60_p0 = scmp.ne.s32.totalorder %s6333_s22, %s6329_s21 }
   0xf   : > { %p61_p1 = scmp.eq.s32.totalorder %s6426_s27, 0  ;;  %p198_p2 = scmp.eq.s32.totalorder %s6426_s27, 1 }
  0x10   : > { %p204_p3 = scmp.eq.s32.totalorder %s5244_s28, 1  ;;  %p5245_p5 = scmp.ge.s32.totalorder %s6349_s26, 1 }
  0x11   : > { %p6435_p4 = por %p61_p1, %p60_p0  ;;  %p211_p7 = scmp.lt.s32.totalorder %s6349_s26, 3 }
  0x12   : > { %p6440_p6 = por %p204_p3, %p60_p0  ;;  %s8637_s2 = sld [smem:[#allocation104_spill]] }
  0x13   : > { %p6448_p8 = pnand %p5245_p5, %p211_p7  ;;  %s6351_s11 = smov [#allocation7]  }
  0x14   : > { %s224_s12 = sshll.u32 %s6351_s11, 4  ;;  %p5248_p11 = scmp.ge.s32.totalorder %s6349_s26, 2  ;;  %s225_s12 = int_to_ptr.vmem [resolvable:$true] %s224_s12 }
  0x15   : > { %p6019_p9 = pneg %p6448_p8  ;;  %s8639_s4 = sld [smem:[#allocation105_spill]] }
  0x16   : > { %s6352_s16 = smov 64   ;;  %s6353_s17 = smov 4  }
  0x17   : > { %p6020_p10 = pnand %p6019_p9, %p61_p1  ;;  %s6354_s18 = smov [#allocation8]  }
  0x18   : > { %s222_s9 = sshll.u32 %s8637_s2, 4  ;;  %s241_s19 = sshll.u32 %s6354_s18, 4  ;;  %s223_s9 = int_to_ptr.hbm [resolvable:$true] %s222_s9  ;;  %s242_s19 = int_to_ptr.vmem [resolvable:$true] %s241_s19 }
  0x19   : > { %6022 = dma.hbm_to_vmem [thread:$0]  (!%p6020_p10), %s223_s9, 9216, %s225_s12, [#allocation6], %s6352_s16, %s6352_s16, %s6353_s17  }
  0x1a   : > { %s38_s20 = sadd.s32 1, %s6345_s25  ;;  %s47_s28 = sadd.s32 1, %s6337_s23 }
  0x1b   : > { %s239_s15 = sshll.u32 %s8639_s4, 4  ;;  %p40_p12 = scmp.ge.s32.totalorder %s38_s20, 2  ;;  %s240_s15 = int_to_ptr.hbm [resolvable:$true] %s239_s15 }
  0x1c   : > { %6025 = dma.hbm_to_vmem [thread:$0]  (!%p6020_p10), %s240_s15, 9216, %s242_s19, [#allocation9], %s6352_s16, %s6352_s16, %s6353_s17  }
  0x1d   : > { %p54_p13 = scmp.ne.s32.totalorder %s6337_s23, %s6333_s22  ;;  %p55_p0 = scmp.eq.s32.totalorder %s6349_s26, 0 }
  0x1e   : > { %p6039_p3 = scmp.lt.s32.totalorder %s6349_s26, 2  ;;  %s8969_s20 = smov (%p40_p12, %s38_s20), 0 }
  0x1f   : > { %8640 = sst [smem:[#allocation17_spill]] %s8969_s20  ;;  %p6468_p5 = por %p55_p0, %p54_p13 }
  0x20   : > { %p6474_p7 = por %p198_p2, %p54_p13  ;;  %s42_s9 = ssub.s32 %s6345_s25, %s8969_s20 }
  0x21   : > { %s258_s11 = sand.u32 1, %s6337_s23   ;;  %p45_p9 = scmp.eq.s32.totalorder %s42_s9, 0 }
  0x22   : > { %s5249_s12 = sshll.u32 %s258_s11, 8  ;;  %s5842_s13 = sshll.u32 %s6345_s25, 8 }
  0x23   : > { %s6483_s14 = scalar_select %p45_p9, %s6337_s23, %s47_s28  }
  0x24   : > { %s8644_s0 = sld [smem:[#allocation103_spill]]  ;;  %s262_s19 = scalar_lea.vmem [#allocation2], %s5249_s12 }
  0x25   : > { %8643 = sst [smem:[#allocation18_spill]] %s6483_s14  ;;  %s273_s2 = sshll.u32 %s262_s19, 4  ;;  %s274_s2 = int_to_ptr.vmem [resolvable:$true] %s273_s2 }
  0x26   : > { %p6492_p2 = pnand %p6039_p3, %p6468_p5  ;;  %s283_s9 = sand.u32 1, %s6349_s26  }
  0x27   : > { %s259_s28 = scalar_lea.sflag [#allocation3], %s258_s11  ;;  %s6355_s20 = smov 128  }
  0x28   : > { %s6356_s14 = smov 8   ;;  %s5843_s15 = sshll.u32 %s6345_s25, 6 }
  0x29   : > { %s284_s23 = scalar_lea.sflag [#allocation6], %s283_s9 }
  0x2a   : > { %s270_s17 = scalar_lea.hbm %s8644_s0, %s5842_s13  ;;  %s5252_s13 = sshll.u32 %s258_s11, 6 }
  0x2b   : > { %s271_s18 = sshll.u32 %s270_s17, 4  ;;  %s293_s17 = scalar_lea.hbm %s8525_s1, %s5843_s15  ;;  %s272_s18 = int_to_ptr.hbm [resolvable:$true] %s271_s18 }
  0x2c   : > { %6029 = dma.hbm_to_vmem [thread:$0]  (!%p6492_p2), %s272_s18, 4096, %s274_s2, %s259_s28, %s6355_s20, %s6355_s20, %s6356_s14  }
  0x2d   : > { %s294_s7 = sshll.u32 %s293_s17, 4  ;;  %s287_s19 = scalar_lea.vmem [#allocation5], %s5252_s13  ;;  %s295_s7 = int_to_ptr.hbm [resolvable:$true] %s294_s7 }
  0x2e   : > { %s296_s0 = sshll.u32 %s287_s19, 4  ;;  %308 = sbr.rel (%p6448_p8) target bundleno = 1866 (0x74a), region = 44  ;;  %s297_s0 = int_to_ptr.vmem [resolvable:$true] %s296_s0 }
  0x2f   : > { %6032 = dma.hbm_to_vmem [thread:$0]  (!%p6492_p2), %s295_s7, 1024, %s297_s0, %s284_s23, %s6355_s20, %s6355_s20, %s6356_s14  }
  0x33   : > { %s6508_s2 = sand.u32 1, %s6333_s22  }
  0x34   : > { %s5256_s11 = sshll.u32 %s6508_s2, 8  ;;  %s311_s18 = scalar_lea.sflag [#allocation3], %s6508_s2 }
  0x35   : > { %s6514_s28 = scalar_lea.vmem [#allocation2], %s5256_s11 }
  0x36   : > { %6308 = dma.done.wait (%p6435_p4), %s311_s18, 4096  }
  0x37   : > { %6310 = vsyncadd (%p6435_p4), %s311_s18, 4294963200  ;;  %s320_s0 = sand.u32 1, %s6426_s27   ;;  %s5257_s4 = sshll.u32 %s6508_s2, 6 }
  0x38   : > { %s321_s23 = scalar_lea.sflag [#allocation6], %s320_s0  ;;  %s6522_s10 = scalar_lea.vmem [#allocation5], %s5257_s4 }
  0x39   : > { %6312 = dma.done.wait (%p6435_p4), %s321_s23, 1024  }
  0x3a   : > { %6314 = vsyncadd (%p6435_p4), %s321_s23, 4294966272 }
  0x3b   : > { %6316 = dma.done.wait (%p61_p1), [#allocation6], 9216  }
  0x3c   : > { %6318 = vsyncadd (%p61_p1), [#allocation6], 4294958080 }
  0x3d   : > { %6320 = dma.done.wait (%p61_p1), [#allocation9], 9216  }
  0x3e   : > { %6322 = vsyncadd (%p61_p1), [#allocation9], 4294958080  ;;  %v5875_v0 = vld [vmem:[#allocation7 + $0xf8] sm:$0xff]  ;;  %v5874_v2 = vld [vmem:[#allocation7 + $0xf0] sm:$0xff]  ;;  %vm733_vm0 = vcmask 1040384   ;;  %v8646_v43 = vmov 0 }
  0x3f   : > { %v5883_v1 = vld [vmem:[#allocation7 + $0x138] sm:$0xff]  ;;  %1380 = vmatpush.bf16.msra.mxu0 %v5875_v0  ;;  %v5882_v3 = vld [vmem:[#allocation7 + $0x130] sm:$0xff]  ;;  %v5873_v4 = vld [vmem:[#allocation7 + $0xe8] sm:$0xff]  ;;  %vm734_vm1 = vsmask.f32 256  ;;  %vm1095_vm4 = vcmask 1046528  }
  0x40   : > { %1479 = vmatpush.bf16.msra.mxu1 %v5883_v1  ;;  %5989 = vmatpush.bf16.msra.mxu3 %v5883_v1  ;;  %v5881_v5 = vld [vmem:[#allocation7 + $0x128] sm:$0xff]  ;;  %v407_v6 = vld [vmem:[%s6522_s10 + $0x10] sm:$0xff]  ;;  %v408_v7 = vld [vmem:[%s6522_s10 + $0x18] sm:$0xff]  ;;  %vm824_vm3 = vsmask.f32 7424  ;;  %s8306_s15 = scalar_lea.vmem [#allocation10], %s5256_s11 }
  0x41   : > { %v415_v8 = vpack.c.bf16 %v407_v6, %v407_v6  ;;  %v416_v9 = vpack.c.bf16 %v408_v7, %v408_v7  ;;  %v393_v10 = vld [vmem:[%s6514_s28 + $0xa0] sm:$0xff]  ;;  %v394_v11 = vld [vmem:[%s6514_s28 + $0xa8] sm:$0xff]  ;;  %v6540_v12 = vld [vmem:[#allocation7 + $0x178] sm:$0xff]  ;;  %s5988_s12 = sshll.u32 %s6341_s24, 8  ;;  %s5110_s19 = sshll.u32 %s8306_s15, 4  ;;  %s5111_s19 = int_to_ptr.vmem [resolvable:$true] %s5110_s19 }
  0x42   : > { %v437_v13 = vpack.c.bf16 %v393_v10, %v393_v10  ;;  %v438_v14 = vpack.c.bf16 %v394_v11, %v394_v11  ;;  %v373_v15 = vld [vmem:[%s6514_s28] sm:$0xff]  ;;  %v374_v16 = vld [vmem:[%s6514_s28 + $0x8] sm:$0xff]  ;;  %v395_v17 = vld [vmem:[%s6514_s28 + $0xb0] sm:$0xff]  ;;  %5997 = vmatpush.bf16.msra.mxu2 %v6540_v12  ;;  %s5109_s7 = scalar_lea.hbm %s8530_s6, %s5988_s12  ;;  %s5095_s24 = scalar_lea.sflag [#allocation4], %s6508_s2 }
  0x43   : > { %1381 = vmatpush.bf16.msra.mxu0 %v5874_v2  ;;  %v495_v18 = vunpack.c.l.b16 %v415_v8  ;;  %v496_v19 = vunpack.c.l.b16 %v416_v9  ;;  %v417_v20 = vpack.c.bf16 %v373_v15, %v373_v15  ;;  %v418_v21 = vpack.c.bf16 %v374_v16, %v374_v16  ;;  %v396_v22 = vld [vmem:[%s6514_s28 + $0xb8] sm:$0xff]  ;;  %v5872_v27 = vld [vmem:[#allocation7 + $0xe0] sm:$0xff]  ;;  %vm6549_vm2 = vmand %vm733_vm0, %vm734_vm1  ;;  %s5112_s11 = sshll.u32 %s5109_s7, 4  ;;  %s5113_s11 = int_to_ptr.hbm [resolvable:$true] %s5112_s11 }
  0x44   : > { %1480 = vmatpush.bf16.msra.mxu1 %v5882_v3  ;;  %5990 = vmatpush.bf16.msra.mxu3 %v5882_v3  ;;  %v517_v23 = vunpack.c.l.b16 %v437_v13  ;;  %v518_v24 = vunpack.c.l.b16 %v438_v14  ;;  %v439_v25 = vpack.c.bf16 %v395_v17, %v395_v17  ;;  %v440_v26 = vpack.c.bf16 %v396_v22, %v396_v22  ;;  %v5880_v28 = vld [vmem:[#allocation7 + $0x120] sm:$0xff]  ;;  %v5871_v39 = vld [vmem:[#allocation7 + $0xd8] sm:$0xff]  ;;  %v5870_v47 = vld [vmem:[#allocation7 + $0xd0] sm:$0xff]  ;;  %s6269_s18 = sshra.s32 %s5113_s11, 4  ;;  %s6270_s18 = int_to_ptr.hbm [resolvable:$true] %s6269_s18 }
  0x45   : > { %v534_v29 = vpack.c.b16 %v496_v19, %v495_v18  ;;  %v497_v30 = vunpack.c.l.b16 %v417_v20  ;;  %v498_v31 = vunpack.c.l.b16 %v418_v21  ;;  %v5879_v40 = vld [vmem:[#allocation7 + $0x118] sm:$0xff]  ;;  %v8647_v43 = vsel %vm6549_vm2, 4294967295, %v8646_v43  ;;  %v5878_v49 = vld [vmem:[#allocation7 + $0x110] sm:$0xff]  ;;  %v397_v63 = vld [vmem:[%s6514_s28 + $0xc0] sm:$0xff]  ;;  %s6271_s0 = scalar_lea.hbm %s6270_s18, 256  ;;  %p6276_p10 = scmp.lt.s32.totalorder %s6270_s18, %s8530_s6 }
  0x46   : > { %v545_v32 = vpack.c.b16 %v518_v24, %v517_v23  ;;  %v519_v35 = vunpack.c.l.b16 %v439_v25  ;;  %v520_v36 = vunpack.c.l.b16 %v440_v26  ;;  %8648 = vst [vmem:[#allocation19_spill] sm:$0xff] %v8647_v43  ;;  %v375_v52 = vld [vmem:[%s6514_s28 + $0x10] sm:$0xff]  ;;  %v376_v53 = vld [vmem:[%s6514_s28 + $0x18] sm:$0xff]  ;;  %v398_v0 = vld [vmem:[%s6514_s28 + $0xc8] sm:$0xff]  ;;  %v441_v13 = vpack.c.bf16 %v397_v63, %v397_v63  ;;  %p6272_p1 = scmp.ne.s32.totalorder %s6270_s18, %s6271_s0 }
  0x47   : > { %1382 = vmatpush.bf16.msra.mxu0 %v5873_v4  ;;  %v561_v33 = vshrl.u32 %v534_v29, 16  ;;  %v564_v34 = vshll.u32 %v534_v29, 16  ;;  %v535_v42 = vpack.c.b16 %v498_v31, %v497_v30  ;;  %v419_v61 = vpack.c.bf16 %v375_v52, %v375_v52  ;;  %v5869_v1 = vld [vmem:[#allocation7 + $0xc8] sm:$0xff]  ;;  %v5868_v16 = vld [vmem:[#allocation7 + $0xc0] sm:$0xff] }
  0x48   : > { %1481 = vmatpush.bf16.msra.mxu1 %v5881_v5  ;;  %5991 = vmatpush.bf16.msra.mxu3 %v5881_v5  ;;  %v638_v37 = vshrl.u32 %v545_v32, 16  ;;  %v641_v38 = vshll.u32 %v545_v32, 16  ;;  %v546_v46 = vpack.c.b16 %v520_v36, %v519_v35  ;;  %v420_v62 = vpack.c.bf16 %v376_v53, %v376_v53  ;;  %v5877_v2 = vld [vmem:[#allocation7 + $0x108] sm:$0xff]  ;;  %v5876_v17 = vld [vmem:[#allocation7 + $0x100] sm:$0xff]  ;;  %v5890_v36 = vld [vmem:[#allocation7 + $0x170] sm:$0xff]  ;;  %p6273_p4 = pnand %p6272_p1, %p6474_p7 }
  0x49   : > { %v563_v41 = vrot.slane %v561_v33, 7  ;;  %v568_v51 = vshrl.u32 %v535_v42, 16  ;;  %v571_v60 = vshll.u32 %v535_v42, 16  ;;  %v442_v14 = vpack.c.bf16 %v398_v0, %v398_v0  ;;  %v400_v42 = vld [vmem:[%s6514_s28 + $0xd8] sm:$0xff]  ;;  %5998 = vmatpush.bf16.msra.mxu2 %v5890_v36 }
  0x4a   : > { %v640_v44 = vrot.slane %v638_v37, 7  ;;  %v645_v59 = vshrl.u32 %v546_v46, 16  ;;  %v648_v11 = vshll.u32 %v546_v46, 16  ;;  %v499_v15 = vunpack.c.l.b16 %v419_v61  ;;  %p6274_p8 = pneg %p6273_p4 }
  0x4b   : > { %1383 = vmatpush.bf16.msra.mxu0 %v5872_v27  ;;  %v566_v45 = vor.u32 %v564_v34, %v563_v41  ;;  %v6561_v54 = vsel %vm6549_vm2, %v563_v41, 0  ;;  %v570_v6 = vrot.slane %v568_v51, 7  ;;  %v500_v21 = vunpack.c.l.b16 %v420_v62  ;;  %v399_v41 = vld [vmem:[%s6514_s28 + $0xd0] sm:$0xff] }
  0x4c   : > { %1482 = vmatpush.bf16.msra.mxu1 %v5880_v28  ;;  %5992 = vmatpush.bf16.msra.mxu3 %v5880_v28  ;;  %v643_v48 = vor.u32 %v641_v38, %v640_v44  ;;  %v6570_v57 = vsel %vm6549_vm2, %v640_v44, 0  ;;  %v845_v5 = vshll.u32 %v6561_v54, 16  ;;  %v647_v10 = vrot.slane %v645_v59, 7  ;;  %v377_v38 = vld [vmem:[%s6514_s28 + $0x20] sm:$0xff] }
  0x4d   : > { %v6555_v50 = vsel %vm6549_vm2, 0, %v566_v45  ;;  %v977_v9 = vshll.u32 %v6570_v57, 16  ;;  %v573_v20 = vor.u32 %v571_v60, %v570_v6  ;;  %v521_v25 = vunpack.c.l.b16 %v441_v13 }
  0x4e   : > { %v840_v55 = vshll.u32 %v6555_v50, 16  ;;  %v6566_v56 = vsel %vm6549_vm2, 0, %v643_v48  ;;  %v838_v3 = vshrl.u32 %v6555_v50, 16  ;;  %v847_v19 = vrot.slane %v845_v5, 1 }
  0x4f   : > { %1384 = vmatpush.bf16.msra.mxu0 %v5871_v39  ;;  %8649 = vst [vmem:[#allocation20_spill] sm:$0xff] %v6566_v56  ;;  %v972_v58 = vshll.u32 %v6566_v56, 16  ;;  %v970_v7 = vshrl.u32 %v6566_v56, 16  ;;  %v979_v23 = vrot.slane %v977_v9, 1  ;;  %v650_v24 = vor.u32 %v648_v11, %v647_v10  ;;  %v378_v39 = vld [vmem:[%s6514_s28 + $0x28] sm:$0xff] }
  0x50   : > { %1483 = vmatpush.bf16.msra.mxu1 %v5879_v40  ;;  %5993 = vmatpush.bf16.msra.mxu3 %v5879_v40  ;;  %v842_v4 = vrot.slane %v840_v55, 1  ;;  %v522_v26 = vunpack.c.l.b16 %v442_v14  ;;  %v6584_v28 = vsel %vm6549_vm2, 0, %v573_v20  ;;  %v536_v29 = vpack.c.b16 %v500_v21, %v499_v15  ;;  %v379_v21 = vld [vmem:[%s6514_s28 + $0x30] sm:$0xff] }
  0x51   : > { %v974_v8 = vrot.slane %v972_v58, 1  ;;  %v6592_v31 = vsel %vm6549_vm2, 0, %v650_v24  ;;  %v852_v33 = vshll.u32 %v6584_v28, 16  ;;  %v6600_v34 = vsel %vm6549_vm2, %v570_v6, 0 }
  0x52   : > { %v843_v18 = vor.u32 %v842_v4, %v838_v3  ;;  %8651 = vst [vmem:[#allocation22_spill] sm:$0xff] %v6592_v31  ;;  %v547_v32 = vpack.c.b16 %v522_v26, %v521_v25  ;;  %v575_v35 = vshrl.u32 %v536_v29, 16  ;;  %v984_v37 = vshll.u32 %v6592_v31, 16  ;;  %v401_v25 = vld [vmem:[%s6514_s28 + $0xe0] sm:$0xff]  ;;  %v402_v26 = vld [vmem:[%s6514_s28 + $0xe8] sm:$0xff] }
  0x53   : > { %1385 = vmatpush.bf16.msra.mxu0 %v5870_v47  ;;  %v975_v22 = vor.u32 %v974_v8, %v970_v7  ;;  %v850_v44 = vshrl.u32 %v6584_v28, 16  ;;  %v854_v45 = vrot.slane %v852_v33, 1  ;;  %v857_v46 = vshll.u32 %v6600_v34, 16 }
  0x54   : > { %1484 = vmatpush.bf16.msra.mxu1 %v5878_v49  ;;  %5994 = vmatpush.bf16.msra.mxu3 %v5878_v49  ;;  %v6580_v27 = vsel %vm824_vm3, %v843_v18, %v847_v19  ;;  %v652_v40 = vshrl.u32 %v547_v32, 16  ;;  %v577_v48 = vrot.slane %v575_v35, 7  ;;  %v578_v49 = vshll.u32 %v536_v29, 16 }
  0x55   : > { %v6587_v30 = vsel %vm824_vm3, %v975_v22, %v979_v23  ;;  %v421_v51 = vpack.c.bf16 %v377_v38, %v377_v38  ;;  %v422_v52 = vpack.c.bf16 %v378_v39, %v378_v39  ;;  %v982_v53 = vshrl.u32 %v6592_v31, 16  ;;  %v380_v22 = vld [vmem:[%s6514_s28 + $0x38] sm:$0xff] }
  0x56   : > { %8650 = vst [vmem:[#allocation21_spill] sm:$0xff] %v6587_v30  ;;  %v986_v55 = vrot.slane %v984_v37, 1  ;;  %v443_v58 = vpack.c.bf16 %v399_v41, %v399_v41  ;;  %v444_v59 = vpack.c.bf16 %v400_v42, %v400_v42  ;;  %v654_v60 = vrot.slane %v652_v40, 7 }
  0x57   : > { %1386 = vmatpush.bf16.msra.mxu0 %v5869_v1  ;;  %v655_v61 = vshll.u32 %v547_v32, 16  ;;  %v859_v62 = vrot.slane %v857_v46, 1  ;;  %v855_v63 = vor.u32 %v854_v45, %v850_v44  ;;  %v580_v0 = vor.u32 %v578_v49, %v577_v48 }
  0x58   : > { %1485 = vmatpush.bf16.msra.mxu1 %v5877_v2  ;;  %5995 = vmatpush.bf16.msra.mxu3 %v5877_v2  ;;  %v501_v1 = vunpack.c.l.b16 %v421_v51  ;;  %v502_v2 = vunpack.c.l.b16 %v422_v52  ;;  %v987_v3 = vor.u32 %v986_v55, %v982_v53  ;;  %v523_v5 = vunpack.c.l.b16 %v443_v58 }
  0x59   : > { %v524_v6 = vunpack.c.l.b16 %v444_v59  ;;  %v657_v7 = vor.u32 %v655_v61, %v654_v60  ;;  %v6616_v8 = vsel %vm824_vm3, %v855_v63, %v859_v62  ;;  %v6620_v9 = vsel %vm6549_vm2, 0, %v580_v0 }
  0x5a   : > { %v6633_v15 = vsel %vm6549_vm2, %v577_v48, 0  ;;  %v862_v23 = vshrl.u32 %v6620_v9, 16  ;;  %v423_v38 = vpack.c.bf16 %v379_v21, %v379_v21  ;;  %v424_v39 = vpack.c.bf16 %v380_v22, %v380_v22  ;;  %v403_v21 = vld [vmem:[%s6514_s28 + $0xf0] sm:$0xff]  ;;  %v404_v22 = vld [vmem:[%s6514_s28 + $0xf8] sm:$0xff] }
  0x5b   : > { %1387 = vmatpush.bf16.msra.mxu0 %v5868_v16  ;;  %v548_v13 = vpack.c.b16 %v524_v6, %v523_v5  ;;  %v6627_v14 = vsel %vm6549_vm2, 0, %v657_v7  ;;  %v864_v16 = vshll.u32 %v6620_v9, 16  ;;  %v869_v24 = vshll.u32 %v6633_v15, 16  ;;  %v5889_v6 = vld [vmem:[#allocation7 + $0x168] sm:$0xff] }
  0x5c   : > { %1486 = vmatpush.bf16.msra.mxu1 %v5876_v17  ;;  %5996 = vmatpush.bf16.msra.mxu3 %v5876_v17  ;;  %8653 = vst [vmem:[#allocation24_spill] sm:$0xff] %v6627_v14  ;;  %v6639_v17 = vsel %vm6549_vm2, %v654_v60, 0  ;;  %v996_v19 = vshll.u32 %v6627_v14, 16  ;;  %v994_v32 = vshrl.u32 %v6627_v14, 16  ;;  %v445_v42 = vpack.c.bf16 %v401_v25, %v401_v25 }
  0x5d   : > { %v659_v20 = vshrl.u32 %v548_v13, 16  ;;  %v866_v29 = vrot.slane %v864_v16, 1  ;;  %v1001_v33 = vshll.u32 %v6639_v17, 16  ;;  %v662_v37 = vshll.u32 %v548_v13, 16  ;;  %v382_v13 = vld [vmem:[%s6514_s28 + $0x48] sm:$0xff]  ;;  %5999 = vmatpush.bf16.msra.mxu2 %v5889_v6 }
  0x5e   : > { %1388 = vmatmul.bf16.vlgmr.msra.gmra.mxu0 %v6555_v50  ;;  %v998_v40 = vrot.slane %v996_v19, 1  ;;  %v446_v44 = vpack.c.bf16 %v402_v26, %v402_v26  ;;  %v871_v46 = vrot.slane %v869_v24, 1  ;;  %v503_v49 = vunpack.c.l.b16 %v423_v38 }
  0x5f   : > { %1578 = vmatpush.bf16.msrb.mxu0 %v6540_v12  ;;  %1487 = vmatmul.bf16.vlgmr.msra.gmra.mxu1 %v6580_v27  ;;  %v6604_v12 = vsel %vm6549_vm2, %v647_v10, 0  ;;  %v537_v10 = vpack.c.b16 %v502_v2, %v501_v1  ;;  %v661_v41 = vrot.slane %v659_v20, 7  ;;  %v867_v45 = vor.u32 %v866_v29, %v862_v23 }
  0x60   : > { %1542 = vmatmul.bf16.vlgmr.msra.gmra.mxu3 %v6587_v30  ;;  %v989_v47 = vshll.u32 %v6604_v12, 16  ;;  %v504_v51 = vunpack.c.l.b16 %v424_v39  ;;  %v999_v52 = vor.u32 %v998_v40, %v994_v32  ;;  %v525_v55 = vunpack.c.l.b16 %v445_v42 }
  0x61   : > { %v582_v18 = vshrl.u32 %v537_v10, 16  ;;  %v585_v35 = vshll.u32 %v537_v10, 16  ;;  %v664_v53 = vor.u32 %v662_v37, %v661_v41  ;;  %v526_v58 = vunpack.c.l.b16 %v446_v44  ;;  %v381_v10 = vld [vmem:[%s6514_s28 + $0x40] sm:$0xff] }
  0x62   : > { %v991_v4 = vrot.slane %v989_v47, 1  ;;  %v1003_v47 = vrot.slane %v1001_v33, 1  ;;  %v6651_v59 = vsel %vm824_vm3, %v867_v45, %v871_v46  ;;  %v538_v61 = vpack.c.b16 %v504_v51, %v503_v49 }
  0x63   : > { %1579 = vmatpush.bf16.msrb.mxu0 %v5890_v36  ;;  %v584_v36 = vrot.slane %v582_v18, 7  ;;  %v6662_v63 = vsel %vm6549_vm2, 0, %v664_v53  ;;  %v549_v0 = vpack.c.b16 %v526_v58, %v525_v55  ;;  %v425_v33 = vpack.c.bf16 %v381_v10, %v381_v10  ;;  %v5850_v10 = vld [vmem:[#allocation7 + $0x30] sm:$0xff] }
  0x64   : > { %v6623_v11 = vsel %vm824_vm3, %v987_v3, %v991_v4  ;;  %v6658_v62 = vsel %vm824_vm3, %v999_v52, %v1003_v47  ;;  %8655 = vst [vmem:[#allocation26_spill] sm:$0xff] %v6662_v63  ;;  %v6674_v3 = vsel %vm6549_vm2, %v661_v41, 0  ;;  %v1008_v4 = vshll.u32 %v6662_v63, 16 }
  0x65   : > { %8652 = vst [vmem:[#allocation23_spill] sm:$0xff] %v6623_v11  ;;  %v587_v48 = vor.u32 %v585_v35, %v584_v36  ;;  %v6670_v2 = vsel %vm6549_vm2, %v584_v36, 0  ;;  %v589_v5 = vshrl.u32 %v538_v61, 16  ;;  %v666_v7 = vshrl.u32 %v549_v0, 16 }
  0x66   : > { %8654 = vst [vmem:[#allocation25_spill] sm:$0xff] %v6658_v62  ;;  %v881_v19 = vshll.u32 %v6670_v2, 16  ;;  %v1013_v20 = vshll.u32 %v6674_v3, 16  ;;  %v1006_v23 = vshrl.u32 %v6662_v63, 16  ;;  %v1010_v24 = vrot.slane %v1008_v4, 1 }
  0x67   : > { %v6655_v60 = vsel %vm6549_vm2, 0, %v587_v48  ;;  %1580 = vmatpush.bf16.msrb.mxu0 %v5889_v6  ;;  %v591_v25 = vrot.slane %v589_v5, 7  ;;  %v592_v26 = vshll.u32 %v538_v61, 16  ;;  %v668_v29 = vrot.slane %v666_v7, 7  ;;  %v5888_v5 = vld [vmem:[#allocation7 + $0x160] sm:$0xff] }
  0x68   : > { %v876_v1 = vshll.u32 %v6655_v60, 16  ;;  %v874_v16 = vshrl.u32 %v6655_v60, 16  ;;  %v669_v32 = vshll.u32 %v549_v0, 16  ;;  %v426_v35 = vpack.c.bf16 %v382_v13, %v382_v13  ;;  %v5851_v0 = vld [vmem:[#allocation7 + $0x38] sm:$0xff]  ;;  %v383_v13 = vld [vmem:[%s6514_s28 + $0x50] sm:$0xff]  ;;  %6000 = vmatpush.bf16.msra.mxu2 %v5888_v5 }
  0x69   : > { %v447_v36 = vpack.c.bf16 %v403_v21, %v403_v21  ;;  %v448_v37 = vpack.c.bf16 %v404_v22, %v404_v22  ;;  %v883_v39 = vrot.slane %v881_v19, 1  ;;  %v1015_v40 = vrot.slane %v1013_v20, 1  ;;  %1821 = vmatpush.bf16.msrb.mxu3 %v5851_v0  ;;  %v5887_v19 = vld [vmem:[#allocation7 + $0x158] sm:$0xff]  ;;  %v409_v20 = vld [vmem:[%s6522_s10 + $0x20] sm:$0xff]  ;;  %v410_v21 = vld [vmem:[%s6522_s10 + $0x28] sm:$0xff] }
  0x6a   : > { %v878_v18 = vrot.slane %v876_v1, 1  ;;  %v594_v41 = vor.u32 %v592_v26, %v591_v25  ;;  %v1011_v42 = vor.u32 %v1010_v24, %v1006_v23  ;;  %v671_v44 = vor.u32 %v669_v32, %v668_v29  ;;  %v5848_v0 = vld [vmem:[#allocation7 + $0x20] sm:$0xff] }
  0x6b   : > { %v505_v45 = vunpack.c.l.b16 %v425_v33  ;;  %v506_v46 = vunpack.c.l.b16 %v426_v35  ;;  %v527_v47 = vunpack.c.l.b16 %v447_v36  ;;  %v528_v48 = vunpack.c.l.b16 %v448_v37  ;;  %1581 = vmatpush.bf16.msrb.mxu0 %v5888_v5  ;;  %v5849_v37 = vld [vmem:[#allocation7 + $0x28] sm:$0xff] }
  0x6c   : > { %v879_v38 = vor.u32 %v878_v18, %v874_v16  ;;  %v6690_v51 = vsel %vm6549_vm2, 0, %v594_v41  ;;  %v6693_v52 = vsel %vm824_vm3, %v1011_v42, %v1015_v40  ;;  %v6697_v53 = vsel %vm6549_vm2, 0, %v671_v44  ;;  %v384_v16 = vld [vmem:[%s6514_s28 + $0x58] sm:$0xff]  ;;  %6001 = vmatpush.bf16.msra.mxu2 %v5887_v19 }
  0x6d   : > { %8656 = vst [vmem:[#allocation27_spill] sm:$0xff] %v6693_v52  ;;  %v539_v55 = vpack.c.b16 %v506_v46, %v505_v45  ;;  %v550_v58 = vpack.c.b16 %v528_v48, %v527_v47  ;;  %v888_v61 = vshll.u32 %v6690_v51, 16  ;;  %v6705_v1 = vsel %vm6549_vm2, %v591_v25, 0  ;;  %1822 = vmatpush.bf16.msrb.mxu3 %v5850_v10  ;;  %v386_v10 = vld [vmem:[%s6514_s28 + $0x68] sm:$0xff] }
  0x6e   : > { %1393 = vmatmul.bf16.gmra.mxu0 %v6584_v28  ;;  %v6686_v49 = vsel %vm824_vm3, %v879_v38, %v883_v39  ;;  %8657 = vst [vmem:[#allocation28_spill] sm:$0xff] %v6697_v53  ;;  %v1020_v4 = vshll.u32 %v6697_v53, 16  ;;  %v6710_v6 = vsel %vm6549_vm2, %v668_v29, 0  ;;  %v886_v22 = vshrl.u32 %v6690_v51, 16 }
  0x6f   : > { %1492 = vmatmul.bf16.gmra.mxu1 %v6616_v8  ;;  %v596_v7 = vshrl.u32 %v539_v55, 16  ;;  %v673_v18 = vshrl.u32 %v550_v58, 16  ;;  %v890_v23 = vrot.slane %v888_v61, 1  ;;  %v893_v24 = vshll.u32 %v6705_v1, 16  ;;  %1582 = vmatpush.bf16.msrb.mxu0 %v5887_v19 }
  0x70   : > { %1547 = vmatmul.bf16.gmra.mxu3 %v6623_v11  ;;  %v1018_v25 = vshrl.u32 %v6697_v53, 16  ;;  %v1022_v26 = vrot.slane %v1020_v4, 1  ;;  %v1025_v29 = vshll.u32 %v6710_v6, 16  ;;  %v427_v32 = vpack.c.bf16 %v383_v13, %v383_v13 }
  0x71   : > { %v428_v33 = vpack.c.bf16 %v384_v16, %v384_v16  ;;  %v598_v35 = vrot.slane %v596_v7, 7  ;;  %v599_v36 = vshll.u32 %v539_v55, 16  ;;  %v449_v38 = vpack.c.bf16 %v409_v20, %v409_v20  ;;  %1823 = vmatpush.bf16.msrb.mxu3 %v5849_v37  ;;  %v385_v7 = vld [vmem:[%s6514_s28 + $0x60] sm:$0xff] }
  0x72   : > { %v450_v39 = vpack.c.bf16 %v410_v21, %v410_v21  ;;  %v675_v40 = vrot.slane %v673_v18, 7  ;;  %v676_v41 = vshll.u32 %v550_v58, 16  ;;  %v891_v42 = vor.u32 %v890_v23, %v886_v22 }
  0x73   : > { %v895_v44 = vrot.slane %v893_v24, 1  ;;  %v1027_v45 = vrot.slane %v1025_v29, 1  ;;  %v507_v46 = vunpack.c.l.b16 %v427_v32  ;;  %v508_v47 = vunpack.c.l.b16 %v428_v33 }
  0x74   : > { %v1023_v48 = vor.u32 %v1022_v26, %v1018_v25  ;;  %v601_v61 = vor.u32 %v599_v36, %v598_v35  ;;  %v529_v55 = vunpack.c.l.b16 %v449_v38  ;;  %v530_v4 = vunpack.c.l.b16 %v450_v39  ;;  %v5886_v25 = vld [vmem:[#allocation7 + $0x150] sm:$0xff]  ;;  %v5847_v26 = vld [vmem:[#allocation7 + $0x18] sm:$0xff]  ;;  %v5885_v39 = vld [vmem:[#allocation7 + $0x148] sm:$0xff] }
  0x75   : > { %v678_v5 = vor.u32 %v676_v41, %v675_v40  ;;  %v6723_v13 = vsel %vm824_vm3, %v891_v42, %v895_v44  ;;  %v540_v58 = vpack.c.b16 %v508_v47, %v507_v46  ;;  %v429_v16 = vpack.c.bf16 %v385_v7, %v385_v7  ;;  %1824 = vmatpush.bf16.msrb.mxu3 %v5848_v0  ;;  %v5846_v41 = vld [vmem:[#allocation7 + $0x10] sm:$0xff] }
  0x76   : > { %8658 = vst [vmem:[#allocation29_spill] sm:$0xff] %v6723_v13  ;;  %v430_v18 = vpack.c.bf16 %v386_v10, %v386_v10  ;;  %v6726_v19 = vsel %vm824_vm3, %v1023_v48, %v1027_v45  ;;  %v6730_v20 = vsel %vm6549_vm2, 0, %v601_v61  ;;  %v551_v21 = vpack.c.b16 %v530_v4, %v529_v55  ;;  %6002 = vmatpush.bf16.msra.mxu2 %v5886_v25 }
  0x77   : > { %8659 = vst [vmem:[#allocation30_spill] sm:$0xff] %v6726_v19  ;;  %v6734_v22 = vsel %vm6549_vm2, 0, %v678_v5  ;;  %v509_v23 = vunpack.c.l.b16 %v429_v16  ;;  %v6741_v29 = vsel %vm6549_vm2, %v598_v35, 0  ;;  %v900_v32 = vshll.u32 %v6730_v20, 16  ;;  %1583 = vmatpush.bf16.msrb.mxu0 %v5886_v25  ;;  %v5845_v16 = vld [vmem:[#allocation7 + $0x8] sm:$0xff] }
  0x78   : > { %8660 = vst [vmem:[#allocation31_spill] sm:$0xff] %v6734_v22  ;;  %v510_v24 = vunpack.c.l.b16 %v430_v18  ;;  %v603_v33 = vshrl.u32 %v540_v58, 16  ;;  %v1032_v37 = vshll.u32 %v6734_v22, 16  ;;  %v680_v38 = vshrl.u32 %v551_v21, 16 }
  0x79   : > { %1825 = vmatpush.bf16.msrb.mxu3 %v5847_v26  ;;  %v6747_v42 = vsel %vm6549_vm2, %v675_v40, 0  ;;  %v898_v35 = vshrl.u32 %v6730_v20, 16  ;;  %v905_v46 = vshll.u32 %v6741_v29, 16  ;;  %v1030_v47 = vshrl.u32 %v6734_v22, 16  ;;  %v5884_v40 = vld [vmem:[#allocation7 + $0x140] sm:$0xff] }
  0x7a   : > { %v541_v36 = vpack.c.b16 %v510_v24, %v509_v23  ;;  %v902_v48 = vrot.slane %v900_v32, 1  ;;  %v605_v61 = vrot.slane %v603_v33, 7  ;;  %v606_v0 = vshll.u32 %v540_v58, 16  ;;  %6003 = vmatpush.bf16.msra.mxu2 %v5885_v39 }
  0x7b   : > { %v1034_v4 = vrot.slane %v1032_v37, 1  ;;  %v1037_v5 = vshll.u32 %v6747_v42, 16  ;;  %v682_v7 = vrot.slane %v680_v38, 7  ;;  %v683_v10 = vshll.u32 %v551_v21, 16  ;;  %1584 = vmatpush.bf16.msrb.mxu0 %v5885_v39  ;;  %v5844_v38 = vld [vmem:[#allocation7] sm:$0xff] }
  0x7c   : > { %v610_v44 = vshrl.u32 %v541_v36, 16  ;;  %v613_v45 = vshll.u32 %v541_v36, 16  ;;  %v907_v24 = vrot.slane %v905_v46, 1  ;;  %v903_v25 = vor.u32 %v902_v48, %v898_v35 }
  0x7d   : > { %1826 = vmatpush.bf16.msrb.mxu3 %v5846_v41  ;;  %v608_v26 = vor.u32 %v606_v0, %v605_v61  ;;  %v1035_v32 = vor.u32 %v1034_v4, %v1030_v47  ;;  %v1039_v33 = vrot.slane %v1037_v5, 1  ;;  %v685_v36 = vor.u32 %v683_v10, %v682_v7  ;;  %v387_v41 = vld [vmem:[%s6514_s28 + $0x70] sm:$0xff] }
  0x7e   : > { %1398 = vmatmul.bf16.gmra.mxu0 %v6620_v9  ;;  %v612_v55 = vrot.slane %v610_v44, 7  ;;  %6004 = vmatpush.bf16.msra.mxu2 %v5884_v40  ;;  %v388_v44 = vld [vmem:[%s6514_s28 + $0x78] sm:$0xff]  ;;  %v431_v46 = vpack.c.bf16 %v387_v41, %v387_v41 }
  0x7f   : > { %1497 = vmatmul.bf16.gmra.mxu1 %v6651_v59  ;;  %1585 = vmatpush.bf16.msrb.mxu0 %v5884_v40  ;;  %v6773_v35 = vsel %vm6549_vm2, 0, %v608_v26  ;;  %v432_v47 = vpack.c.bf16 %v388_v44, %v388_v44  ;;  %v6777_v48 = vsel %vm824_vm3, %v1035_v32, %v1039_v33  ;;  %v6781_v0 = vsel %vm6549_vm2, 0, %v685_v36 }
  0x80   : > { %1552 = vmatmul.bf16.gmra.mxu3 %v6658_v62  ;;  %v615_v18 = vor.u32 %v613_v45, %v612_v55  ;;  %v6755_v23 = vsel %vm6549_vm2, %v612_v55, 0  ;;  %v6769_v45 = vsel %vm824_vm3, %v903_v25, %v907_v24  ;;  %8664 = vst [vmem:[#allocation35_spill] sm:$0xff] %v6777_v48  ;;  %v511_v55 = vunpack.c.l.b16 %v431_v46  ;;  %v405_v24 = vld [vmem:[%s6522_s10] sm:$0xff] }
  0x81   : > { %v1121_v58 = vrot.slane %v6755_v23, 1  ;;  %1827 = vmatpush.bf16.msrb.mxu3 %v5845_v16  ;;  %8663 = vst [vmem:[#allocation34_spill] sm:$0xff] %v6769_v45  ;;  %v512_v4 = vunpack.c.l.b16 %v432_v47  ;;  %v912_v5 = vshll.u32 %v6773_v35, 16  ;;  %v1220_v10 = vshll.u32 %v6781_v0, 16 }
  0x82   : > { %v6760_v21 = vsel %vm6549_vm2, 0, %v615_v18  ;;  %8665 = vst [vmem:[#allocation36_spill] sm:$0xff] %v6781_v0  ;;  %v6790_v16 = vsel %vm6549_vm2, %v605_v61, 0  ;;  %v6794_v18 = vsel %vm6549_vm2, %v682_v7, 0  ;;  %v910_v32 = vshrl.u32 %v6773_v35, 16 }
  0x83   : > { %8661 = vst [vmem:[#allocation32_spill] sm:$0xff] %v6760_v21  ;;  %v1120_v37 = vrot.slane %v6760_v21, 1  ;;  %v542_v40 = vpack.c.b16 %v512_v4, %v511_v55  ;;  %v914_v33 = vrot.slane %v912_v5, 1  ;;  %v917_v36 = vshll.u32 %v6790_v16, 16 }
  0x84   : > { %8666 = vst [vmem:[#allocation37_spill] sm:$0xff] %v6794_v18  ;;  %v1225_v61 = vshll.u32 %v6794_v18, 16  ;;  %v413_v44 = vpack.c.bf16 %v405_v24, %v405_v24 }
  0x85   : > { %v6764_v39 = vsel %vm1095_vm4, %v1120_v37, %v1121_v58  ;;  %1828 = vmatpush.bf16.msrb.mxu3 %v5844_v38  ;;  %v406_v58 = vld [vmem:[%s6522_s10 + $0x8] sm:$0xff]  ;;  %v617_v25 = vshrl.u32 %v542_v40, 16  ;;  %v620_v26 = vshll.u32 %v542_v40, 16  ;;  %v1218_v37 = vshrl.u32 %v6781_v0, 16 }
  0x86   : > { %8662 = vst [vmem:[#allocation33_spill] sm:$0xff] %v6764_v39  ;;  %1621 = vmatmul.bf16.vlgmr.msra.gmra.mxu2 %v6764_v39  ;;  %v1222_v38 = vrot.slane %v1220_v10, 1  ;;  %v414_v7 = vpack.c.bf16 %v406_v58, %v406_v58  ;;  %v915_v4 = vor.u32 %v914_v33, %v910_v32  ;;  %v919_v5 = vrot.slane %v917_v36, 1 }
  0x87   : > { %v619_v41 = vrot.slane %v617_v25, 7  ;;  %v1227_v25 = vrot.slane %v1225_v61, 1 }
  0x88   : > { %v1223_v40 = vor.u32 %v1222_v38, %v1218_v37 }
  0x89   : > { %v622_v46 = vor.u32 %v620_v26, %v619_v41  ;;  %v6804_v47 = vsel %vm6549_vm2, %v619_v41, 0  ;;  %v389_v26 = vld [vmem:[%s6514_s28 + $0x80] sm:$0xff]  ;;  %v390_v41 = vld [vmem:[%s6514_s28 + $0x88] sm:$0xff] }
  0x8a   : > { %v1124_v55 = vrot.slane %v6804_v47, 1  ;;  %v433_v32 = vpack.c.bf16 %v389_v26, %v389_v26  ;;  %v434_v33 = vpack.c.bf16 %v390_v41, %v390_v41  ;;  %v6822_v36 = vsel %vm824_vm3, %v1223_v40, %v1227_v25 }
  0x8b   : > { %v6809_v10 = vsel %vm6549_vm2, 0, %v622_v46  ;;  %8670 = vst [vmem:[#allocation41_spill] sm:$0xff] %v6822_v36 }
  0x8c   : > { %8667 = vst [vmem:[#allocation38_spill] sm:$0xff] %v6809_v10  ;;  %v1123_v24 = vrot.slane %v6809_v10, 1  ;;  %v513_v38 = vunpack.c.l.b16 %v433_v32  ;;  %v514_v61 = vunpack.c.l.b16 %v434_v33 }
  0x8e   : > { %1403 = vmatmul.bf16.gmra.mxu0 %v6655_v60  ;;  %v6813_v58 = vsel %vm1095_vm4, %v1123_v24, %v1124_v55 }
  0x8f   : > { %1502 = vmatmul.bf16.gmra.mxu1 %v6686_v49  ;;  %8668 = vst [vmem:[#allocation39_spill] sm:$0xff] %v6813_v58 }
  0x90   : > { %1557 = vmatmul.bf16.gmra.mxu3 %v6693_v52  ;;  %v6818_v52 = vsel %vm824_vm3, %v915_v4, %v919_v5  ;;  %v922_v4 = vshrl.u32 %v6760_v21, 16 }
  0x91   : > { %8669 = vst [vmem:[#allocation40_spill] sm:$0xff] %v6818_v52 }
  0x96   : > { %1626 = vmatmul.bf16.gmra.mxu2 %v6813_v58 }
  0x9e   : > { %1408 = vmatmul.bf16.gmra.mxu0 %v6690_v51 }
  0x9f   : > { %1507 = vmatmul.bf16.gmra.mxu1 %v6723_v13 }
  0xa0   : > { %1562 = vmatmul.bf16.gmra.mxu3 %v6726_v19  ;;  %v494_v19 = vunpack.c.l.b16 %v414_v7  ;;  %v543_v7 = vpack.c.b16 %v514_v61, %v513_v38 }
  0xa2   : > { %v624_v55 = vshrl.u32 %v543_v7, 16  ;;  %v627_v40 = vshll.u32 %v543_v7, 16 }
  0xae   : > { %1413 = vmatmul.bf16.gmra.mxu0 %v6730_v20 }
  0xaf   : > { %1512 = vmatmul.bf16.gmra.mxu1 %v6769_v45 }
  0xb0   : > { %1567 = vmatmul.bf16.gmra.mxu3 %v6777_v48  ;;  %v493_v48 = vunpack.c.l.b16 %v413_v44  ;;  %v924_v44 = vshll.u32 %v6760_v21, 16 }
  0xb2   : > { %v533_v37 = vpack.c.b16 %v494_v19, %v493_v48  ;;  %v926_v5 = vrot.slane %v924_v44, 1  ;;  %v929_v19 = vshll.u32 %v6755_v23, 16  ;;  %v626_v48 = vrot.slane %v624_v55, 7 }
  0xb4   : > { %v554_v46 = vshrl.u32 %v533_v37, 16  ;;  %v557_v24 = vshll.u32 %v533_v37, 16  ;;  %v629_v26 = vor.u32 %v627_v40, %v626_v48  ;;  %v927_v41 = vor.u32 %v926_v5, %v922_v4  ;;  %v392_v37 = vld [vmem:[%s6514_s28 + $0x98] sm:$0xff] }
  0xb5   : > { %v931_v32 = vrot.slane %v929_v19, 1  ;;  %v766_v38 = vsel %vm6549_vm2, %v626_v48, 0  ;;  %v436_v5 = vpack.c.bf16 %v392_v37, %v392_v37 }
  0xb6   : > { %v6830_v25 = vrot.slane %v554_v46, 7  ;;  %v6834_v33 = vsel %vm6549_vm2, 0, %v629_v26  ;;  %v1127_v23 = vrot.slane %v766_v38, 1  ;;  %v391_v46 = vld [vmem:[%s6514_s28 + $0x90] sm:$0xff] }
  0xb7   : > { %8671 = vst [vmem:[#allocation42_spill] sm:$0xff] %v6834_v33  ;;  %v1126_v44 = vrot.slane %v6834_v33, 1  ;;  %v6846_v55 = vsel %vm824_vm3, %v927_v41, %v931_v32  ;;  %v435_v4 = vpack.c.bf16 %v391_v46, %v391_v46  ;;  %v516_v40 = vunpack.c.l.b16 %v436_v5 }
  0xb8   : > { %v559_v61 = vor.u32 %v557_v24, %v6830_v25  ;;  %8673 = vst [vmem:[#allocation44_spill] sm:$0xff] %v6846_v55  ;;  %v936_v24 = vshll.u32 %v6809_v10, 16  ;;  %v934_v32 = vshrl.u32 %v6809_v10, 16 }
  0xb9   : > { %v6841_v7 = vsel %vm1095_vm4, %v1126_v44, %v1127_v23  ;;  %v515_v48 = vunpack.c.l.b16 %v435_v4  ;;  %v941_v23 = vshll.u32 %v6804_v47, 16 }
  0xba   : > { %8672 = vst [vmem:[#allocation43_spill] sm:$0xff] %v6841_v7  ;;  %1631 = vmatmul.bf16.gmra.mxu2 %v6841_v7  ;;  %v6851_v19 = vsel %vm6549_vm2, 0, %v559_v61  ;;  %v938_v44 = vrot.slane %v936_v24, 1 }
  0xbb   : > { %v544_v26 = vpack.c.b16 %v516_v40, %v515_v48  ;;  %v943_v5 = vrot.slane %v941_v23, 1 }
  0xbc   : > { %v939_v4 = vor.u32 %v938_v44, %v934_v32 }
  0xbd   : > { %v631_v41 = vshrl.u32 %v544_v26, 16  ;;  %v634_v61 = vshll.u32 %v544_v26, 16 }
  0xbe   : > { %1418 = vmatmul.bf16.gmra.mxu0 %v6773_v35  ;;  %v6870_v26 = vsel %vm824_vm3, %v939_v4, %v943_v5 }
  0xbf   : > { %1517 = vmatmul.bf16.gmra.mxu1 %v6818_v52  ;;  %v633_v46 = vrot.slane %v631_v41, 7  ;;  %8676 = vst [vmem:[#allocation47_spill] sm:$0xff] %v6870_v26  ;;  %v948_v41 = vshll.u32 %v6834_v33, 16 }
  0xc0   : > { %1572 = vmatmul.bf16.gmra.mxu3 %v6822_v36 }
  0xc1   : > { %v636_v37 = vor.u32 %v634_v61, %v633_v46  ;;  %v767_v62 = vsel %vm6549_vm2, %v633_v46, 0  ;;  %v946_v46 = vshrl.u32 %v6834_v33, 16  ;;  %v950_v61 = vrot.slane %v948_v41, 1 }
  0xc2   : > { %v1130_v40 = vrot.slane %v767_v62, 1 }
  0xc3   : > { %v6861_v36 = vsel %vm6549_vm2, 0, %v636_v37  ;;  %v953_v37 = vshll.u32 %v766_v38, 16  ;;  %v951_v4 = vor.u32 %v950_v61, %v946_v46 }
  0xc4   : > { %8674 = vst [vmem:[#allocation45_spill] sm:$0xff] %v6861_v36  ;;  %v1129_v48 = vrot.slane %v6861_v36, 1  ;;  %v958_v61 = vshrl.u32 %v6861_v36, 16 }
  0xc5   : > { %v955_v5 = vrot.slane %v953_v37, 1 }
  0xc6   : > { %v6867_v11 = vsel %vm1095_vm4, %v1129_v48, %v1130_v40  ;;  %v1132_v48 = vrot.slane %v6566_v56, 1  ;;  %v1133_v40 = vrot.slane %v6570_v57, 1  ;;  %v960_v57 = vshll.u32 %v6861_v36, 16 }
  0xc7   : > { %8675 = vst [vmem:[#allocation46_spill] sm:$0xff] %v6867_v11 }
  0xc8   : > { %v962_v37 = vrot.slane %v960_v57, 1 }
  0xca   : > { %1636 = vmatmul.bf16.gmra.mxu2 %v6867_v11 }
  0xce   : > { %1423 = vmatmul.bf16.gmra.mxu0 %v6760_v21 }
  0xcf   : > { %1522 = vmatmul.bf16.gmra.mxu1 %v6846_v55 }
  0xd0   : > { %1829 = vmatmul.bf16.vlgmr.msrb.gmra.mxu3 %v6851_v19 }
  0xdb   : > { %v1389_v24 = vpop.f32.mrf.mxu0 }
  0xdc   : > { %v1488_v47 = vpop.f32.mrf.mxu1 }
  0xdd   : > { %v6885_v47 = vsel %vm1095_vm4, %v1132_v48, %v1133_v40  ;;  %v1136_v48 = vrot.slane %v6604_v12, 1 }
  0xde   : > { %1428 = vmatmul.bf16.gmra.mxu0 %v6809_v10  ;;  %8678 = vst [vmem:[#allocation49_spill] sm:$0xff] %v6885_v47  ;;  %1641 = vmatmul.bf16.gmra.mxu2 %v6885_v47 }
  0xdf   : > { %1527 = vmatmul.bf16.gmra.mxu1 %v6870_v26 }
  0xe0   : > { %1834 = vmatmul.bf16.gmra.mxu3 %v6555_v50 }
  0xe3   : > { %v6877_v32 = vpop.f32.mrf.mxu3  ;;  %v1391_v44 = vpop.f32.mrf.mxu0 }
  0xe4   : > { %v1490_v23 = vpop.f32.mrf.mxu1  ;;  %v6888_v44 = vsel %vm824_vm3, %v951_v4, %v955_v5  ;;  %v965_v4 = vshll.u32 %v767_v62, 16  ;;  %v1135_v5 = vrot.slane %v6592_v31, 1 }
  0xe5   : > { %8679 = vst [vmem:[#allocation50_spill] sm:$0xff] %v6888_v44 }
  0xeb   : > { %v6882_v24 = vpop.f32.mrf.mxu3  ;;  %v1394_v30 = vpop.f32.mrf.mxu0 }
  0xec   : > { %8677 = vst [vmem:[#allocation48_spill] sm:$0xff] %v6882_v24  ;;  %v1493_v11 = vpop.f32.mrf.mxu1  ;;  %v6909_v24 = vsel %vm1095_vm4, %v1135_v5, %v1136_v48 }
  0xed   : > { %v6891_v41 = vadd.f32 %v1493_v11, %v1394_v30  ;;  %v963_v30 = vor.u32 %v962_v37, %v958_v61  ;;  %v967_v11 = vrot.slane %v965_v4, 1  ;;  %8681 = vst [vmem:[#allocation52_spill] sm:$0xff] %v6909_v24  ;;  %v1138_v37 = vrot.slane %v6627_v14, 1 }
  0xee   : > { %1433 = vmatmul.bf16.gmra.mxu0 %v6834_v33  ;;  %1646 = vmatmul.bf16.gmra.mxu2 %v6909_v24  ;;  %v1139_v4 = vrot.slane %v6639_v17, 1 }
  0xef   : > { %1532 = vmatmul.bf16.gmra.mxu1 %v6888_v44  ;;  %v6912_v26 = vsel %vm824_vm3, %v963_v30, %v967_v11 }
  0xf0   : > { %1839 = vmatmul.bf16.gmra.mxu3 %v6584_v28  ;;  %8682 = vst [vmem:[#allocation53_spill] sm:$0xff] %v6912_v26 }
  0xf3   : > { %v6897_v38 = vpop.f32.mrf.mxu3  ;;  %v6899_v23 = vpop.f32.mrf.mxu0 }
  0xf4   : > { %v6901_v46 = vpop.f32.mrf.mxu1 }
  0xfb   : > { %v6906_v40 = vpop.f32.mrf.mxu3  ;;  %v1399_v47 = vpop.f32.mrf.mxu0 }
  0xfc   : > { %8680 = vst [vmem:[#allocation51_spill] sm:$0xff] %v6906_v40  ;;  %v1498_v44 = vpop.f32.mrf.mxu1 }
  0xfd   : > { %v6915_v57 = vadd.f32 %v1498_v44, %v1399_v47  ;;  %v6931_v47 = vsel %vm1095_vm4, %v1138_v37, %v1139_v4  ;;  %v1142_v37 = vrot.slane %v6674_v3, 1 }
  0xfe   : > { %1438 = vmatmul.bf16.gmra.mxu0 %v6861_v36  ;;  %8684 = vst [vmem:[#allocation55_spill] sm:$0xff] %v6931_v47  ;;  %1651 = vmatmul.bf16.gmra.mxu2 %v6931_v47 }
  0xff   : > { %1537 = vmatmul.bf16.gmra.mxu1 %v6912_v26 }
 0x100   : > { %1844 = vmatmul.bf16.gmra.mxu3 %v6620_v9 }
 0x103   : > { %v6920_v12 = vpop.f32.mrf.mxu3  ;;  %v6922_v62 = vpop.f32.mrf.mxu0 }
 0x104   : > { %v6924_v61 = vpop.f32.mrf.mxu1 }
 0x109   : > { %v1622_v18 = vpop.f32.mrf.mxu2 }
 0x10b   : > { %v6928_v30 = vpop.f32.mrf.mxu3  ;;  %v1404_v44 = vpop.f32.mrf.mxu0 }
 0x10c   : > { %8683 = vst [vmem:[#allocation54_spill] sm:$0xff] %v6928_v30  ;;  %v1503_v11 = vpop.f32.mrf.mxu1  ;;  %v1141_v30 = vrot.slane %v6662_v63, 1 }
 0x10d   : > { %v6934_v5 = vadd.f32 %v1503_v11, %v1404_v44 }
 0x10e   : > { %1443 = vmatmul.bf16.gmra.mxu0 %v6566_v56  ;;  %v6949_v47 = vsel %vm1095_vm4, %v1141_v30, %v1142_v37  ;;  %v1145_v30 = vrot.slane %v6710_v6, 1 }
 0x10f   : > { %8686 = vst [vmem:[#allocation57_spill] sm:$0xff] %v6949_v47  ;;  %1656 = vmatmul.bf16.gmra.mxu2 %v6949_v47 }
 0x110   : > { %1849 = vmatmul.bf16.gmra.mxu3 %v6655_v60 }
 0x113   : > { %v6938_v48 = vpop.f32.mrf.mxu3  ;;  %v6940_v40 = vpop.f32.mrf.mxu0 }
 0x114   : > { %v6942_v17 = vpop.f32.mrf.mxu1 }
 0x11b   : > { %v6946_v4 = vpop.f32.mrf.mxu3  ;;  %v1409_v44 = vpop.f32.mrf.mxu0 }
 0x11c   : > { %8685 = vst [vmem:[#allocation56_spill] sm:$0xff] %v6946_v4  ;;  %v1508_v11 = vpop.f32.mrf.mxu1  ;;  %v1144_v4 = vrot.slane %v6697_v53, 1 }
 0x11d   : > { %v6952_v24 = vadd.f32 %v1508_v11, %v1409_v44 }
 0x11e   : > { %1448 = vmatmul.bf16.gmra.mxu0 %v6592_v31  ;;  %v6967_v47 = vsel %vm1095_vm4, %v1144_v4, %v1145_v30  ;;  %v1147_v4 = vrot.slane %v6734_v22, 1  ;;  %v1148_v30 = vrot.slane %v6747_v42, 1 }
 0x11f   : > { %8690 = vst [vmem:[#allocation61_spill] sm:$0xff] %v6967_v47  ;;  %1661 = vmatmul.bf16.gmra.mxu2 %v6967_v47 }
 0x120   : > { %1854 = vmatmul.bf16.gmra.mxu3 %v6690_v51 }
 0x123   : > { %v6956_v26 = vpop.f32.mrf.mxu3  ;;  %v6958_v7 = vpop.f32.mrf.mxu0 }
 0x124   : > { %8687 = vst [vmem:[#allocation58_spill] sm:$0xff] %v6958_v7  ;;  %v6960_v3 = vpop.f32.mrf.mxu1 }
 0x125   : > { %8688 = vst [vmem:[#allocation59_spill] sm:$0xff] %v6960_v3 }
 0x12b   : > { %v6964_v37 = vpop.f32.mrf.mxu3  ;;  %v1414_v44 = vpop.f32.mrf.mxu0 }
 0x12c   : > { %8689 = vst [vmem:[#allocation60_spill] sm:$0xff] %v6964_v37  ;;  %v1513_v11 = vpop.f32.mrf.mxu1  ;;  %v6980_v37 = vpop.f32.mrf.mxu2 }
 0x12d   : > { %v6970_v55 = vadd.f32 %v1513_v11, %v1414_v44  ;;  %8694 = vst [vmem:[#allocation65_spill] sm:$0xff] %v6980_v37  ;;  %v6987_v44 = vsel %vm1095_vm4, %v1147_v4, %v1148_v30 }
 0x12e   : > { %1453 = vmatmul.bf16.gmra.mxu0 %v6627_v14  ;;  %8696 = vst [vmem:[#allocation67_spill] sm:$0xff] %v6987_v44 }
 0x12f   : > { %8691 = vst [vmem:[#allocation62_spill] sm:$0xff] %v6970_v55  ;;  %1666 = vmatmul.bf16.gmra.mxu2 %v6987_v44 }
 0x130   : > { %1859 = vmatmul.bf16.gmra.mxu3 %v6730_v20 }
 0x133   : > { %v6974_v58 = vpop.f32.mrf.mxu3  ;;  %v6976_v52 = vpop.f32.mrf.mxu0 }
 0x134   : > { %8692 = vst [vmem:[#allocation63_spill] sm:$0xff] %v6976_v52  ;;  %v6978_v6 = vpop.f32.mrf.mxu1 }
 0x135   : > { %8693 = vst [vmem:[#allocation64_spill] sm:$0xff] %v6978_v6  ;;  %v1627_v6 = vpop.f32.mrf.mxu2 }
 0x13b   : > { %v6984_v47 = vpop.f32.mrf.mxu3  ;;  %v1419_v11 = vpop.f32.mrf.mxu0 }
 0x13c   : > { %8695 = vst [vmem:[#allocation66_spill] sm:$0xff] %v6984_v47  ;;  %v1518_v39 = vpop.f32.mrf.mxu1 }
 0x13d   : > { %v6990_v45 = vadd.f32 %v1518_v39, %v1419_v11  ;;  %v6998_v47 = vpop.f32.mrf.mxu2 }
 0x13e   : > { %1458 = vmatmul.bf16.gmra.mxu0 %v6662_v63  ;;  %8700 = vst [vmem:[#allocation71_spill] sm:$0xff] %v6998_v47 }
 0x13f   : > { %8697 = vst [vmem:[#allocation68_spill] sm:$0xff] %v6990_v45 }
 0x140   : > { %1864 = vmatmul.bf16.gmra.mxu3 %v6773_v35 }
 0x143   : > { %v1573_v37 = vpop.f32.mrf.mxu3  ;;  %v6994_v52 = vpop.f32.mrf.mxu0 }
 0x144   : > { %8698 = vst [vmem:[#allocation69_spill] sm:$0xff] %v6994_v52  ;;  %v6996_v42 = vpop.f32.mrf.mxu1 }
 0x145   : > { %8699 = vst [vmem:[#allocation70_spill] sm:$0xff] %v6996_v42  ;;  %v1632_v39 = vpop.f32.mrf.mxu2 }
 0x14b   : > { %v1575_v4 = vpop.f32.mrf.mxu3  ;;  %v1424_v30 = vpop.f32.mrf.mxu0 }
 0x14c   : > { %v1523_v55 = vpop.f32.mrf.mxu1 }
 0x14d   : > { %v1524_v3 = vadd.f32 %v1523_v55, %v1424_v30  ;;  %v7008_v52 = vpop.f32.mrf.mxu2 }
 0x14e   : > { %1463 = vmatmul.bf16.gmra.mxu0 %v6697_v53  ;;  %8703 = vst [vmem:[#allocation74_spill] sm:$0xff] %v7008_v52 }
 0x14f   : > { %v7000_v7 = vadd.f32 %v1622_v18, %v1524_v3  ;;  %v5859_v18 = vld [vmem:[#allocation7 + $0x78] sm:$0xff] }
 0x150   : > { %1869 = vmatmul.bf16.gmra.mxu3 %v6760_v21  ;;  %1920 = vmatpush.bf16.msra.mxu0 %v5859_v18 }
 0x153   : > { %v1830_v11 = vpop.f32.mrf.mxu3  ;;  %v7004_v44 = vpop.f32.mrf.mxu0 }
 0x154   : > { %8701 = vst [vmem:[#allocation72_spill] sm:$0xff] %v7004_v44  ;;  %v7006_v37 = vpop.f32.mrf.mxu1 }
 0x155   : > { %8702 = vst [vmem:[#allocation73_spill] sm:$0xff] %v7006_v37  ;;  %v1637_v3 = vpop.f32.mrf.mxu2 }
 0x15b   : > { %v1832_v42 = vpop.f32.mrf.mxu3  ;;  %v1429_v47 = vpop.f32.mrf.mxu0 }
 0x15c   : > { %v1528_v4 = vpop.f32.mrf.mxu1 }
 0x15d   : > { %v1529_v45 = vadd.f32 %v1528_v4, %v1429_v47 }
 0x15e   : > { %1468 = vmatmul.bf16.gmra.mxu0 %v6734_v22 }
 0x15f   : > { %v7010_v13 = vadd.f32 %v1627_v6, %v1529_v45  ;;  %v5858_v45 = vld [vmem:[#allocation7 + $0x70] sm:$0xff]  ;;  %v7022_v6 = vpop.f32.mrf.mxu2 }
 0x160   : > { %1874 = vmatmul.bf16.gmra.mxu3 %v6809_v10  ;;  %8706 = vst [vmem:[#allocation77_spill] sm:$0xff] %v7022_v6  ;;  %1921 = vmatpush.bf16.msra.mxu0 %v5858_v45  ;;  %v1100_v10 = vrot.slane %v6561_v54, 1 }
 0x163   : > { %v7014_v55 = vpop.f32.mrf.mxu3  ;;  %v7016_v30 = vpop.f32.mrf.mxu0 }
 0x164   : > { %8704 = vst [vmem:[#allocation75_spill] sm:$0xff] %v7016_v30  ;;  %v7018_v11 = vpop.f32.mrf.mxu1 }
 0x165   : > { %8705 = vst [vmem:[#allocation76_spill] sm:$0xff] %v7018_v11 }
 0x16b   : > { %v7020_v52 = vpop.f32.mrf.mxu3  ;;  %v1434_v42 = vpop.f32.mrf.mxu0 }
 0x16c   : > { %v1533_v37 = vpop.f32.mrf.mxu1 }
 0x16d   : > { %v1534_v47 = vadd.f32 %v1533_v37, %v1434_v42  ;;  %v1099_v37 = vrot.slane %v6555_v50, 1  ;;  %v1642_v42 = vpop.f32.mrf.mxu2 }
 0x16e   : > { %1473 = vmatmul.bf16.gmra.mxu0 %v6781_v0 }
 0x16f   : > { %v7024_v4 = vadd.f32 %v1632_v39, %v1534_v47  ;;  %v5857_v39 = vld [vmem:[#allocation7 + $0x68] sm:$0xff]  ;;  %v7039_v21 = vsel %vm1095_vm4, %v1099_v37, %v1100_v10  ;;  %v1103_v10 = vrot.slane %v6600_v34, 1 }
 0x170   : > { %1879 = vmatmul.bf16.gmra.mxu3 %v6834_v33  ;;  %1922 = vmatpush.bf16.msra.mxu0 %v5857_v39 }
 0x173   : > { %v7028_v18 = vpop.f32.mrf.mxu3  ;;  %v7030_v30 = vpop.f32.mrf.mxu0 }
 0x174   : > { %8707 = vst [vmem:[#allocation78_spill] sm:$0xff] %v7030_v30  ;;  %v7032_v11 = vpop.f32.mrf.mxu1  ;;  %v5856_v30 = vld [vmem:[#allocation7 + $0x60] sm:$0xff] }
 0x175   : > { %8708 = vst [vmem:[#allocation79_spill] sm:$0xff] %v7032_v11  ;;  %v7045_v54 = vpop.f32.mrf.mxu2  ;;  %1923 = vmatpush.bf16.msra.mxu0 %v5856_v30  ;;  %v5855_v30 = vld [vmem:[#allocation7 + $0x58] sm:$0xff] }
 0x176   : > { %8710 = vst [vmem:[#allocation81_spill] sm:$0xff] %v7045_v54 }
 0x179   : > { %1924 = vmatpush.bf16.msra.mxu0 %v5855_v30  ;;  %v1108_v30 = vrot.slane %v6655_v60, 1 }
 0x17b   : > { %v7036_v44 = vpop.f32.mrf.mxu3  ;;  %v1439_v47 = vpop.f32.mrf.mxu0 }
 0x17c   : > { %8709 = vst [vmem:[#allocation80_spill] sm:$0xff] %v7036_v44  ;;  %v1538_v6 = vpop.f32.mrf.mxu1  ;;  %v1102_v44 = vrot.slane %v6584_v28, 1 }
 0x17d   : > { %v1539_v45 = vadd.f32 %v1538_v6, %v1439_v47  ;;  %v1647_v39 = vpop.f32.mrf.mxu2 }
 0x17e   : > { %1586 = vmatmul.bf16.vlgmr.msrb.gmra.mxu0 %v7039_v21  ;;  %v7056_v37 = vsel %vm1095_vm4, %v1102_v44, %v1103_v10  ;;  %v1106_v44 = vrot.slane %v6633_v15, 1  ;;  %v5854_v15 = vld [vmem:[#allocation7 + $0x50] sm:$0xff] }
 0x17f   : > { %v7041_v33 = vadd.f32 %v1637_v3, %v1539_v45  ;;  %1925 = vmatpush.bf16.msra.mxu0 %v5854_v15  ;;  %v5867_v15 = vld [vmem:[#allocation7 + $0xb8] sm:$0xff] }
 0x180   : > { %1884 = vmatmul.bf16.gmra.mxu3 %v6861_v36  ;;  %v1105_v36 = vrot.slane %v6620_v9, 1  ;;  %2019 = vmatpush.bf16.msrb.mxu1 %v5867_v15 }
 0x183   : > { %v7047_v50 = vpop.f32.mrf.mxu3  ;;  %v7049_v11 = vpop.f32.mrf.mxu0 }
 0x184   : > { %8711 = vst [vmem:[#allocation82_spill] sm:$0xff] %v7049_v11 }
 0x185   : > { %v7067_v34 = vpop.f32.mrf.mxu2 }
 0x186   : > { %8713 = vst [vmem:[#allocation84_spill] sm:$0xff] %v7067_v34 }
 0x18b   : > { %v7053_v6 = vpop.f32.mrf.mxu3  ;;  %v1444_v3 = vpop.f32.mrf.mxu0 }
 0x18c   : > { %v1544_v47 = vadd.f32 %v6877_v32, %v1444_v3 }
 0x18d   : > { %v1652_v34 = vpop.f32.mrf.mxu2 }
 0x18e   : > { %v7059_v45 = vadd.f32 %v1642_v42, %v1544_v47  ;;  %1591 = vmatmul.bf16.gmra.mxu0 %v7056_v37  ;;  %v7074_v42 = vsel %vm1095_vm4, %v1105_v36, %v1106_v44  ;;  %v1109_v36 = vrot.slane %v6670_v2, 1 }
 0x190   : > { %1889 = vmatmul.bf16.gmra.mxu3 %v6566_v56 }
 0x193   : > { %v7063_v54 = vpop.f32.mrf.mxu3  ;;  %v7065_v11 = vpop.f32.mrf.mxu0 }
 0x194   : > { %8712 = vst [vmem:[#allocation83_spill] sm:$0xff] %v7065_v11 }
 0x195   : > { %v7087_v44 = vpop.f32.mrf.mxu2 }
 0x196   : > { %8716 = vst [vmem:[#allocation87_spill] sm:$0xff] %v7087_v44 }
 0x19b   : > { %v7071_v10 = vpop.f32.mrf.mxu3  ;;  %v1449_v32 = vpop.f32.mrf.mxu0 }
 0x19c   : > { %v1549_v3 = vadd.f32 %v6897_v38, %v1449_v32  ;;  %v7092_v32 = vsel %vm1095_vm4, %v1108_v30, %v1109_v36  ;;  %v1111_v30 = vrot.slane %v6690_v51, 1 }
 0x19d   : > { %v1657_v44 = vpop.f32.mrf.mxu2 }
 0x19e   : > { %v7077_v47 = vadd.f32 %v1647_v39, %v1549_v3  ;;  %1596 = vmatmul.bf16.gmra.mxu0 %v7074_v42 }
 0x1a0   : > { %1894 = vmatmul.bf16.gmra.mxu3 %v6592_v31 }
 0x1a3   : > { %v7081_v11 = vpop.f32.mrf.mxu3  ;;  %v7083_v56 = vpop.f32.mrf.mxu0 }
 0x1a4   : > { %8714 = vst [vmem:[#allocation85_spill] sm:$0xff] %v7081_v11  ;;  %v5866_v11 = vld [vmem:[#allocation7 + $0xb0] sm:$0xff] }
 0x1a5   : > { %8715 = vst [vmem:[#allocation86_spill] sm:$0xff] %v7083_v56  ;;  %2020 = vmatpush.bf16.msrb.mxu1 %v5866_v11  ;;  %v5852_v11 = vld [vmem:[#allocation7 + $0x40] sm:$0xff] }
 0x1ab   : > { %v7089_v38 = vpop.f32.mrf.mxu3  ;;  %v1454_v39 = vpop.f32.mrf.mxu0 }
 0x1ac   : > { %8717 = vst [vmem:[#allocation88_spill] sm:$0xff] %v7089_v38  ;;  %v1554_v3 = vadd.f32 %v6920_v12, %v1454_v39  ;;  %v5853_v38 = vld [vmem:[#allocation7 + $0x48] sm:$0xff]  ;;  %v1112_v12 = vrot.slane %v6705_v1, 1  ;;  %v5863_v1 = vld [vmem:[#allocation7 + $0x98] sm:$0xff] }
 0x1ad   : > { %1926 = vmatpush.bf16.msra.mxu0 %v5853_v38 }
 0x1ae   : > { %v7095_v31 = vadd.f32 %v1652_v34, %v1554_v3  ;;  %1601 = vmatmul.bf16.gmra.mxu0 %v7092_v32  ;;  %v5865_v34 = vld [vmem:[#allocation7 + $0xa8] sm:$0xff]  ;;  %v7108_v3 = vsel %vm1095_vm4, %v1111_v30, %v1112_v12 }
 0x1af   : > { %2021 = vmatpush.bf16.msrb.mxu1 %v5865_v34  ;;  %8720 = vst [vmem:[#allocation91_spill] sm:$0xff] %v7108_v3  ;;  %v5907_v34 = vld [vmem:[#allocation7 + $0x1f8] sm:$0xff] }
 0x1b0   : > { %1899 = vmatmul.bf16.gmra.mxu3 %v6627_v14  ;;  %v7111_v14 = vpop.f32.mrf.mxu2 }
 0x1b1   : > { %8721 = vst [vmem:[#allocation92_spill] sm:$0xff] %v7111_v14  ;;  %1927 = vmatpush.bf16.msra.mxu0 %v5852_v11  ;;  %2429 = vmatpush.bf16.msra.mxu3 %v5907_v34  ;;  %v1096_v34 = vrot.slane %v6851_v19, 1 }
 0x1b3   : > { %v7099_v56 = vpop.f32.mrf.mxu3  ;;  %v7101_v2 = vpop.f32.mrf.mxu0 }
 0x1b4   : > { %8718 = vst [vmem:[#allocation89_spill] sm:$0xff] %v7099_v56 }
 0x1b5   : > { %8719 = vst [vmem:[#allocation90_spill] sm:$0xff] %v7101_v2  ;;  %v5864_v2 = vld [vmem:[#allocation7 + $0xa0] sm:$0xff] }
 0x1b6   : > { %2022 = vmatpush.bf16.msrb.mxu1 %v5864_v2  ;;  %v1115_v2 = vrot.slane %v6741_v29, 1  ;;  %v5915_v29 = vld [vmem:[#allocation7 + $0x238] sm:$0xff] }
 0x1b7   : > { %2528 = vmatpush.bf16.msrb.mxu0 %v5915_v29 }
 0x1ba   : > { %2023 = vmatpush.bf16.msrb.mxu1 %v5863_v1 }
 0x1bb   : > { %v7105_v36 = vpop.f32.mrf.mxu3  ;;  %v1459_v39 = vpop.f32.mrf.mxu0 }
 0x1bc   : > { %v1559_v15 = vadd.f32 %v6938_v48, %v1459_v39  ;;  %v5862_v48 = vld [vmem:[#allocation7 + $0x90] sm:$0xff]  ;;  %v1114_v39 = vrot.slane %v6730_v20, 1 }
 0x1be   : > { %v7113_v56 = vadd.f32 %v1657_v44, %v1559_v15  ;;  %1606 = vmatmul.bf16.gmra.mxu0 %v7108_v3  ;;  %2024 = vmatpush.bf16.msrb.mxu1 %v5862_v48  ;;  %v1662_v44 = vpop.f32.mrf.mxu2  ;;  %v5861_v15 = vld [vmem:[#allocation7 + $0x88] sm:$0xff]  ;;  %v7127_v1 = vsel %vm1095_vm4, %v1114_v39, %v1115_v2  ;;  %v756_v48 = vsel %vm6549_vm2, %v6830_v25, 0 }
 0x1bf   : > { %8723 = vst [vmem:[#allocation94_spill] sm:$0xff] %v7127_v1 }
 0x1c0   : > { %1904 = vmatmul.bf16.gmra.mxu3 %v6662_v63  ;;  %v5899_v63 = vld [vmem:[#allocation7 + $0x1b8] sm:$0xff] }
 0x1c1   : > { %2330 = vmatpush.bf16.msrb.mxu2 %v5899_v63 }
 0x1c2   : > { %2025 = vmatpush.bf16.msrb.mxu1 %v5861_v15  ;;  %v1097_v15 = vrot.slane %v756_v48, 1 }
 0x1c3   : > { %v1865_v38 = vpop.f32.mrf.mxu3  ;;  %v7120_v12 = vpop.f32.mrf.mxu0 }
 0x1c4   : > { %v7118_v30 = vadd.f32 %v1865_v38, %v7000_v7  ;;  %8722 = vst [vmem:[#allocation93_spill] sm:$0xff] %v7120_v12  ;;  %v5860_v7 = vld [vmem:[#allocation7 + $0x80] sm:$0xff]  ;;  %v1098_v39 = vsel %vm1095_vm4, %v1096_v34, %v1097_v15 }
 0x1c6   : > { %2026 = vmatpush.bf16.msrb.mxu1 %v5860_v7  ;;  %v1118_v7 = vrot.slane %v6790_v16, 1 }
 0x1c9   : > { %2027 = vmatmul.bf16.vlgmr.msrb.gmra.mxu1 %v1098_v39  ;;  %v826_v39 = vshrl.u32 %v6851_v19, 16 }
 0x1cb   : > { %v7124_v14 = vpop.f32.mrf.mxu3  ;;  %v1464_v11 = vpop.f32.mrf.mxu0 }
 0x1cc   : > { %v1564_v38 = vadd.f32 %v6956_v26, %v1464_v11  ;;  %v7139_v26 = vpop.f32.mrf.mxu2  ;;  %v1117_v11 = vrot.slane %v6773_v35, 1 }
 0x1cd   : > { %8724 = vst [vmem:[#allocation95_spill] sm:$0xff] %v7139_v26  ;;  %v833_v26 = vshll.u32 %v756_v48, 16 }
 0x1ce   : > { %v7133_v12 = vadd.f32 %v1662_v44, %v1564_v38  ;;  %1611 = vmatmul.bf16.gmra.mxu0 %v7127_v1  ;;  %v7151_v34 = vsel %vm1095_vm4, %v1117_v11, %v1118_v7 }
 0x1cf   : > { %8726 = vst [vmem:[#allocation97_spill] sm:$0xff] %v7151_v34 }
 0x1d0   : > { %1909 = vmatmul.bf16.gmra.mxu3 %v6697_v53  ;;  %v8739_v53 = vld [vmem:[#allocation33_spill] sm:$0xff] }
 0x1d3   : > { %v1870_v25 = vpop.f32.mrf.mxu3  ;;  %v7144_v2 = vpop.f32.mrf.mxu0 }
 0x1d4   : > { %v7142_v44 = vadd.f32 %v1870_v25, %v7010_v13  ;;  %8725 = vst [vmem:[#allocation96_spill] sm:$0xff] %v7144_v2  ;;  %v1667_v29 = vpop.f32.mrf.mxu2  ;;  %v828_v13 = vshll.u32 %v6851_v19, 16 }
 0x1d6   : > { %v830_v25 = vrot.slane %v828_v13, 1  ;;  %v5914_v13 = vld [vmem:[#allocation7 + $0x230] sm:$0xff] }
 0x1d7   : > { %2529 = vmatpush.bf16.msrb.mxu0 %v5914_v13 }
 0x1d9   : > { %2032 = vmatmul.bf16.gmra.mxu1 %v7039_v21  ;;  %v5906_v21 = vld [vmem:[#allocation7 + $0x1f0] sm:$0xff] }
 0x1da   : > { %2430 = vmatpush.bf16.msra.mxu3 %v5906_v21 }
 0x1db   : > { %v7148_v38 = vpop.f32.mrf.mxu3  ;;  %v1469_v43 = vpop.f32.mrf.mxu0 }
 0x1dc   : > { %v1569_v63 = vadd.f32 %v6974_v58, %v1469_v43  ;;  %v5898_v43 = vld [vmem:[#allocation7 + $0x1b0] sm:$0xff]  ;;  %v831_v58 = vor.u32 %v830_v25, %v826_v39  ;;  %v5897_v39 = vld [vmem:[#allocation7 + $0x1a8] sm:$0xff] }
 0x1dd   : > { %2331 = vmatpush.bf16.msrb.mxu2 %v5898_v43 }
 0x1de   : > { %v7154_v15 = vadd.f32 %v1667_v29, %v1569_v63  ;;  %1616 = vmatmul.bf16.gmra.mxu0 %v7151_v34  ;;  %v835_v29 = vrot.slane %v833_v26, 1 }
 0x1e0   : > { %1914 = vmatmul.bf16.gmra.mxu3 %v6734_v22  ;;  %v836_v22 = vsel %vm824_vm3, %v831_v58, %v835_v29  ;;  %v5905_v29 = vld [vmem:[#allocation7 + $0x1e8] sm:$0xff] }
 0x1e1   : > { %2332 = vmatpush.bf16.msrb.mxu2 %v5897_v39  ;;  %2431 = vmatpush.bf16.msra.mxu3 %v5905_v29  ;;  %v5895_v29 = vld [vmem:[#allocation7 + $0x198] sm:$0xff] }
 0x1e3   : > { %v1875_v16 = vpop.f32.mrf.mxu3  ;;  %v7164_v7 = vpop.f32.mrf.mxu0 }
 0x1e4   : > { %v7162_v11 = vadd.f32 %v1875_v16, %v7024_v4  ;;  %8727 = vst [vmem:[#allocation98_spill] sm:$0xff] %v7164_v7 }
 0x1e9   : > { %2037 = vmatmul.bf16.gmra.mxu1 %v7056_v37 }
 0x1eb   : > { %v7166_v63 = vpop.f32.mrf.mxu3  ;;  %v1474_v2 = vpop.f32.mrf.mxu0 }
 0x1ee   : > { %1928 = vmatmul.bf16.vlgmr.msra.gmra.mxu0 %v836_v22 }
 0x1f3   : > { %v1880_v19 = vpop.f32.mrf.mxu3  ;;  %v1476_v48 = vpop.f32.mrf.mxu0 }
 0x1f4   : > { %v7171_v4 = vadd.f32 %v1880_v19, %v7041_v33  ;;  %v5896_v48 = vld [vmem:[#allocation7 + $0x1a0] sm:$0xff] }
 0x1f5   : > { %2333 = vmatpush.bf16.msrb.mxu2 %v5896_v48  ;;  %v5904_v48 = vld [vmem:[#allocation7 + $0x1e0] sm:$0xff] }
 0x1f6   : > { %2432 = vmatpush.bf16.msra.mxu3 %v5904_v48  ;;  %v7236_v48 = vpop.f32.mrf.mxu1 }
 0x1f9   : > { %2042 = vmatmul.bf16.gmra.mxu1 %v7074_v42  ;;  %2334 = vmatpush.bf16.msrb.mxu2 %v5895_v29 }
 0x1fb   : > { %v7173_v16 = vpop.f32.mrf.mxu3  ;;  %v1587_v26 = vpop.f32.mrf.mxu0 }
 0x1fc   : > { %v5913_v26 = vld [vmem:[#allocation7 + $0x228] sm:$0xff] }
 0x1fd   : > { %2530 = vmatpush.bf16.msrb.mxu0 %v5913_v26 }
 0x1fe   : > { %1933 = vmatmul.bf16.gmra.mxu0 %v6580_v27  ;;  %v1496_v27 = vadd.f32 %v6901_v46, %v6899_v23  ;;  %v1501_v23 = vadd.f32 %v6924_v61, %v6922_v62  ;;  %v1506_v62 = vadd.f32 %v6942_v17, %v6940_v40  ;;  %v5894_v40 = vld [vmem:[#allocation7 + $0x190] sm:$0xff]  ;;  %v8734_v17 = vld [vmem:[#allocation59_spill] sm:$0xff] }
 0x1ff   : > { %2335 = vmatpush.bf16.msrb.mxu2 %v5894_v40  ;;  %v8738_v40 = vld [vmem:[#allocation34_spill] sm:$0xff] }
 0x203   : > { %v1885_v2 = vpop.f32.mrf.mxu3  ;;  %v1589_v25 = vpop.f32.mrf.mxu0 }
 0x204   : > { %v7178_v22 = vadd.f32 %v1885_v2, %v7059_v45 }
 0x209   : > { %2047 = vmatmul.bf16.gmra.mxu1 %v7092_v32 }
 0x20b   : > { %v7180_v43 = vpop.f32.mrf.mxu3  ;;  %v1592_v33 = vpop.f32.mrf.mxu0 }
 0x20c   : > { %v7183_v58 = vadd.f32 %v1592_v33, %v6891_v41 }
 0x20e   : > { %1938 = vmatmul.bf16.gmra.mxu0 %v6616_v8 }
 0x213   : > { %v1890_v21 = vpop.f32.mrf.mxu3  ;;  %v1594_v19 = vpop.f32.mrf.mxu0 }
 0x214   : > { %v7190_v45 = vadd.f32 %v1890_v21, %v7077_v47  ;;  %v7192_v13 = vadd.f32 %v1594_v19, %v1496_v27 }
 0x219   : > { %2052 = vmatmul.bf16.gmra.mxu1 %v7108_v3 }
 0x21b   : > { %v7194_v41 = vpop.f32.mrf.mxu3  ;;  %v1597_v39 = vpop.f32.mrf.mxu0 }
 0x21c   : > { %v7197_v2 = vadd.f32 %v1597_v39, %v6915_v57 }
 0x21e   : > { %1943 = vmatmul.bf16.gmra.mxu0 %v6651_v59 }
 0x223   : > { %v1895_v46 = vpop.f32.mrf.mxu3  ;;  %v1599_v25 = vpop.f32.mrf.mxu0 }
 0x224   : > { %v7204_v47 = vadd.f32 %v1895_v46, %v7095_v31  ;;  %v7206_v33 = vadd.f32 %v1599_v25, %v1501_v23  ;;  %v5912_v23 = vld [vmem:[#allocation7 + $0x220] sm:$0xff]  ;;  %v8732_v25 = vld [vmem:[#allocation29_spill] sm:$0xff] }
 0x225   : > { %2531 = vmatpush.bf16.msrb.mxu0 %v5912_v23  ;;  %v8737_v23 = vld [vmem:[#allocation62_spill] sm:$0xff] }
 0x226   : > { %8728 = vst [vmem:[#allocation99_spill] sm:$0xff] %v7204_v47  ;;  %v5902_v47 = vld [vmem:[#allocation7 + $0x1d0] sm:$0xff] }
 0x229   : > { %2057 = vmatmul.bf16.gmra.mxu1 %v7127_v1  ;;  %v8744_v1 = vld [vmem:[#allocation68_spill] sm:$0xff] }
 0x22b   : > { %v7208_v27 = vpop.f32.mrf.mxu3  ;;  %v1602_v57 = vpop.f32.mrf.mxu0 }
 0x22c   : > { %8729 = vst [vmem:[#allocation100_spill] sm:$0xff] %v7208_v27  ;;  %v7211_v21 = vadd.f32 %v1602_v57, %v6934_v5  ;;  %v8749_v27 = vld [vmem:[#allocation37_spill] sm:$0xff] }
 0x22e   : > { %1948 = vmatmul.bf16.gmra.mxu0 %v6686_v49 }
 0x233   : > { %v1900_v31 = vpop.f32.mrf.mxu3  ;;  %v1604_v19 = vpop.f32.mrf.mxu0 }
 0x234   : > { %v7218_v61 = vadd.f32 %v1900_v31, %v7113_v56  ;;  %v7220_v26 = vadd.f32 %v1604_v19, %v1506_v62  ;;  %v8733_v56 = vld [vmem:[#allocation58_spill] sm:$0xff] }
 0x235   : > { %v1511_v29 = vadd.f32 %v8734_v17, %v8733_v56  ;;  %v8740_v56 = vld [vmem:[#allocation63_spill] sm:$0xff]  ;;  %v8741_v17 = vld [vmem:[#allocation64_spill] sm:$0xff] }
 0x236   : > { %8730 = vst [vmem:[#allocation101_spill] sm:$0xff] %v7218_v61  ;;  %v8745_v61 = vld [vmem:[#allocation40_spill] sm:$0xff] }
 0x239   : > { %2062 = vmatmul.bf16.gmra.mxu1 %v7151_v34 }
 0x23b   : > { %v7222_v39 = vpop.f32.mrf.mxu3  ;;  %v1607_v5 = vpop.f32.mrf.mxu0 }
 0x23c   : > { %8731 = vst [vmem:[#allocation102_spill] sm:$0xff] %v7222_v39  ;;  %v7225_v46 = vadd.f32 %v1607_v5, %v6952_v24  ;;  %v5903_v39 = vld [vmem:[#allocation7 + $0x1d8] sm:$0xff] }
 0x23d   : > { %2433 = vmatpush.bf16.msra.mxu3 %v5903_v39 }
 0x23e   : > { %1953 = vmatmul.bf16.gmra.mxu0 %v8732_v25 }
 0x241   : > { %2434 = vmatpush.bf16.msra.mxu3 %v5902_v47  ;;  %v8753_v47 = vld [vmem:[#allocation47_spill] sm:$0xff] }
 0x243   : > { %v1905_v57 = vpop.f32.mrf.mxu3  ;;  %v1609_v31 = vpop.f32.mrf.mxu0 }
 0x244   : > { %v7232_v62 = vadd.f32 %v1905_v57, %v7133_v12  ;;  %v7234_v19 = vadd.f32 %v1609_v31, %v1511_v29  ;;  %v1516_v12 = vadd.f32 %v8741_v17, %v8740_v56  ;;  %v5911_v17 = vld [vmem:[#allocation7 + $0x218] sm:$0xff] }
 0x245   : > { %2532 = vmatpush.bf16.msrb.mxu0 %v5911_v17 }
 0x246   : > { %8735 = vst [vmem:[#allocation29_spill] sm:$0xff] %v7232_v62  ;;  %v2028_v34 = vpop.f32.mrf.mxu1  ;;  %v5893_v62 = vld [vmem:[#allocation7 + $0x188] sm:$0xff] }
 0x247   : > { %2336 = vmatpush.bf16.msrb.mxu2 %v5893_v62 }
 0x249   : > { %2067 = vmatmul.bf16.gmra.mxu1 %v8739_v53 }
 0x24b   : > { %v7238_v24 = vpop.f32.mrf.mxu3  ;;  %v1612_v5 = vpop.f32.mrf.mxu0 }
 0x24c   : > { %8736 = vst [vmem:[#allocation58_spill] sm:$0xff] %v7238_v24  ;;  %v7241_v7 = vadd.f32 %v1612_v5, %v8737_v23 }
 0x24e   : > { %1958 = vmatmul.bf16.gmra.mxu0 %v8738_v40  ;;  %v2030_v5 = vpop.f32.mrf.mxu1 }
 0x253   : > { %v1910_v57 = vpop.f32.mrf.mxu3  ;;  %v1614_v31 = vpop.f32.mrf.mxu0 }
 0x254   : > { %v7248_v29 = vadd.f32 %v1910_v57, %v7154_v15  ;;  %v7250_v24 = vadd.f32 %v1614_v31, %v1516_v12  ;;  %v8746_v15 = vld [vmem:[#allocation39_spill] sm:$0xff]  ;;  %v8747_v57 = vld [vmem:[#allocation69_spill] sm:$0xff] }
 0x256   : > { %8742 = vst [vmem:[#allocation59_spill] sm:$0xff] %v7248_v29  ;;  %v2033_v56 = vpop.f32.mrf.mxu1  ;;  %v8748_v29 = vld [vmem:[#allocation70_spill] sm:$0xff] }
 0x257   : > { %v1521_v12 = vadd.f32 %v8748_v29, %v8747_v57  ;;  %v8751_v29 = vld [vmem:[#allocation44_spill] sm:$0xff] }
 0x259   : > { %2072 = vmatmul.bf16.gmra.mxu1 %v8746_v15 }
 0x25b   : > { %v7252_v23 = vpop.f32.mrf.mxu3  ;;  %v1617_v34 = vpop.f32.mrf.mxu0 }
 0x25c   : > { %8743 = vst [vmem:[#allocation62_spill] sm:$0xff] %v7252_v23  ;;  %v7255_v53 = vadd.f32 %v1617_v34, %v8744_v1  ;;  %v1232_v23 = vrot.slane %v6781_v0, 1  ;;  %v1233_v1 = vrot.slane %v8749_v27, 1  ;;  %v5892_v34 = vld [vmem:[#allocation7 + $0x180] sm:$0xff] }
 0x25d   : > { %2337 = vmatpush.bf16.msrb.mxu2 %v5892_v34  ;;  %v5900_v27 = vld [vmem:[#allocation7 + $0x1c0] sm:$0xff] }
 0x25e   : > { %1963 = vmatmul.bf16.gmra.mxu0 %v8745_v61  ;;  %v2035_v5 = vpop.f32.mrf.mxu1  ;;  %v7266_v3 = vsel %vm1095_vm4, %v1232_v23, %v1233_v1  ;;  %v1836_v23 = vadd.f32 %v7014_v55, %v7183_v58 }
 0x25f   : > { %8750 = vst [vmem:[#allocation34_spill] sm:$0xff] %v7266_v3  ;;  %1671 = vmatmul.bf16.gmra.mxu2 %v7266_v3  ;;  %v5955_v3 = vld [vmem:[#allocation8 + $0x138] sm:$0xff] }
 0x261   : > { %3862 = vmatpush.bf16.msra.mxu2 %v5955_v3  ;;  %v1841_v3 = vadd.f32 %v7028_v18, %v7197_v2  ;;  %v1846_v18 = vadd.f32 %v7047_v50, %v7211_v21  ;;  %v5909_v50 = vld [vmem:[#allocation7 + $0x208] sm:$0xff]  ;;  %v5946_v21 = vld [vmem:[#allocation8 + $0xf0] sm:$0xff] }
 0x263   : > { %v1915_v31 = vpop.f32.mrf.mxu3  ;;  %v1619_v62 = vpop.f32.mrf.mxu0 }
 0x264   : > { %v7261_v39 = vadd.f32 %v1619_v62, %v1521_v12  ;;  %v5901_v12 = vld [vmem:[#allocation7 + $0x1c8] sm:$0xff]  ;;  %v8752_v31 = vld [vmem:[#allocation43_spill] sm:$0xff] }
 0x265   : > { %2435 = vmatpush.bf16.msra.mxu3 %v5901_v12  ;;  %v5910_v12 = vld [vmem:[#allocation7 + $0x210] sm:$0xff] }
 0x266   : > { %v2038_v57 = vpop.f32.mrf.mxu1  ;;  %2533 = vmatpush.bf16.msrb.mxu0 %v5910_v12 }
 0x269   : > { %2077 = vmatmul.bf16.gmra.mxu1 %v8752_v31  ;;  %2436 = vmatpush.bf16.msra.mxu3 %v5900_v27  ;;  %v5947_v31 = vld [vmem:[#allocation8 + $0xf8] sm:$0xff] }
 0x26a   : > { %3773 = vmatpush.bf16.msra.mxu1 %v5947_v31  ;;  %2534 = vmatpush.bf16.msrb.mxu0 %v5909_v50 }
 0x26b   : > { %v1917_v17 = vpop.f32.mrf.mxu3  ;;  %v1929_v15 = vpop.f32.mrf.mxu0 }
 0x26c   : > { %2437 = vmatmul.bf16.vlgmr.msra.gmra.mxu3 %v6616_v8 }
 0x26e   : > { %1968 = vmatmul.bf16.gmra.mxu0 %v8751_v29  ;;  %v2040_v0 = vpop.f32.mrf.mxu1  ;;  %3774 = vmatpush.bf16.msra.mxu1 %v5946_v21 }
 0x26f   : > { %2338 = vmatmul.bf16.vlgmr.msrb.gmra.mxu2 %v6584_v28  ;;  %v1838_v28 = vadd.f32 %v7020_v52, %v7192_v13  ;;  %v8756_v13 = vld [vmem:[#allocation49_spill] sm:$0xff] }
 0x273   : > { %v1931_v62 = vpop.f32.mrf.mxu0 }
 0x274   : > { %v8754_v62 = vld [vmem:[#allocation46_spill] sm:$0xff] }
 0x276   : > { %v2043_v17 = vpop.f32.mrf.mxu1 }
 0x279   : > { %2082 = vmatmul.bf16.gmra.mxu1 %v8754_v62 }
 0x27b   : > { %v1934_v15 = vpop.f32.mrf.mxu0 }
 0x27c   : > { %v1935_v1 = vadd.f32 %v1934_v15, %v1836_v23  ;;  %2442 = vmatmul.bf16.gmra.mxu3 %v6651_v59 }
 0x27e   : > { %v7275_v34 = vadd.f32 %v2033_v56, %v1935_v1  ;;  %1973 = vmatmul.bf16.gmra.mxu0 %v8753_v47  ;;  %v2045_v58 = vpop.f32.mrf.mxu1  ;;  %v8755_v1 = vld [vmem:[#allocation50_spill] sm:$0xff] }
 0x27f   : > { %2343 = vmatmul.bf16.gmra.mxu2 %v6620_v9 }
 0x283   : > { %v1936_v8 = vpop.f32.mrf.mxu0 }
 0x284   : > { %v1937_v27 = vadd.f32 %v1936_v8, %v1838_v28 }
 0x286   : > { %v7281_v55 = vadd.f32 %v2035_v5, %v1937_v27  ;;  %v2048_v52 = vpop.f32.mrf.mxu1  ;;  %v8757_v5 = vld [vmem:[#allocation80_spill] sm:$0xff]  ;;  %v8758_v27 = vld [vmem:[#allocation53_spill] sm:$0xff] }
 0x287   : > { %v1843_v31 = vadd.f32 %v8757_v5, %v7206_v33  ;;  %v8759_v33 = vld [vmem:[#allocation52_spill] sm:$0xff] }
 0x289   : > { %2087 = vmatmul.bf16.gmra.mxu1 %v8756_v13 }
 0x28b   : > { %v1939_v56 = vpop.f32.mrf.mxu0 }
 0x28c   : > { %v1940_v23 = vadd.f32 %v1939_v56, %v1841_v3  ;;  %2447 = vmatmul.bf16.gmra.mxu3 %v6686_v49 }
 0x28e   : > { %v7287_v15 = vadd.f32 %v2038_v57, %v1940_v23  ;;  %1978 = vmatmul.bf16.gmra.mxu0 %v8755_v1  ;;  %v2050_v59 = vpop.f32.mrf.mxu1 }
 0x28f   : > { %2348 = vmatmul.bf16.gmra.mxu2 %v6655_v60  ;;  %v5954_v60 = vld [vmem:[#allocation8 + $0x130] sm:$0xff] }
 0x290   : > { %3863 = vmatpush.bf16.msra.mxu2 %v5954_v60 }
 0x293   : > { %v1941_v12 = vpop.f32.mrf.mxu0 }
 0x294   : > { %v1942_v28 = vadd.f32 %v1941_v12, %v1843_v31  ;;  %v8760_v12 = vld [vmem:[#allocation21_spill] sm:$0xff] }
 0x296   : > { %v7293_v9 = vadd.f32 %v2040_v0, %v1942_v28  ;;  %v2053_v3 = vpop.f32.mrf.mxu1  ;;  %v1848_v0 = vadd.f32 %v7053_v6, %v7220_v26  ;;  %v8761_v28 = vld [vmem:[#allocation55_spill] sm:$0xff] }
 0x299   : > { %2092 = vmatmul.bf16.gmra.mxu1 %v8759_v33 }
 0x29b   : > { %v1944_v2 = vpop.f32.mrf.mxu0 }
 0x29c   : > { %v1945_v57 = vadd.f32 %v1944_v2, %v1846_v18  ;;  %2452 = vmatmul.bf16.gmra.mxu3 %v8732_v25  ;;  %v1853_v18 = vadd.f32 %v7071_v10, %v7234_v19  ;;  %v8764_v19 = vld [vmem:[#allocation57_spill] sm:$0xff] }
 0x29e   : > { %v7299_v8 = vadd.f32 %v2043_v17, %v1945_v57  ;;  %1983 = vmatmul.bf16.gmra.mxu0 %v8758_v27  ;;  %v2055_v49 = vpop.f32.mrf.mxu1  ;;  %v1851_v17 = vadd.f32 %v7063_v54, %v7225_v46  ;;  %v8762_v54 = vld [vmem:[#allocation85_spill] sm:$0xff] }
 0x29f   : > { %2353 = vmatmul.bf16.gmra.mxu2 %v6690_v51  ;;  %v1856_v46 = vadd.f32 %v8762_v54, %v7241_v7  ;;  %v5908_v7 = vld [vmem:[#allocation7 + $0x200] sm:$0xff]  ;;  %v8768_v54 = vld [vmem:[#allocation61_spill] sm:$0xff] }
 0x2a0   : > { %2535 = vmatpush.bf16.msrb.mxu0 %v5908_v7 }
 0x2a3   : > { %v1946_v56 = vpop.f32.mrf.mxu0 }
 0x2a4   : > { %v1947_v23 = vadd.f32 %v1946_v56, %v1848_v0 }
 0x2a6   : > { %v7305_v5 = vadd.f32 %v2045_v58, %v1947_v23  ;;  %v2058_v58 = vpop.f32.mrf.mxu1  ;;  %v8763_v23 = vld [vmem:[#allocation23_spill] sm:$0xff] }
 0x2a9   : > { %2097 = vmatmul.bf16.gmra.mxu1 %v8761_v28 }
 0x2ab   : > { %v1949_v31 = vpop.f32.mrf.mxu0 }
 0x2ac   : > { %v1950_v6 = vadd.f32 %v1949_v31, %v1851_v17  ;;  %2457 = vmatmul.bf16.gmra.mxu3 %v8738_v40  ;;  %v5953_v17 = vld [vmem:[#allocation8 + $0x128] sm:$0xff] }
 0x2ad   : > { %3864 = vmatpush.bf16.msra.mxu2 %v5953_v17  ;;  %v8773_v17 = vld [vmem:[#allocation27_spill] sm:$0xff] }
 0x2ae   : > { %v7311_v26 = vadd.f32 %v2048_v52, %v1950_v6  ;;  %1988 = vmatmul.bf16.gmra.mxu0 %v8760_v12  ;;  %v7319_v25 = vpop.f32.mrf.mxu1 }
 0x2af   : > { %2358 = vmatmul.bf16.gmra.mxu2 %v6730_v20 }
 0x2b3   : > { %v1951_v2 = vpop.f32.mrf.mxu0 }
 0x2b4   : > { %v1952_v57 = vadd.f32 %v1951_v2, %v1853_v18 }
 0x2b6   : > { %v7317_v51 = vadd.f32 %v2050_v59, %v1952_v57  ;;  %v2063_v10 = vpop.f32.mrf.mxu1  ;;  %v8765_v59 = vld [vmem:[#allocation88_spill] sm:$0xff] }
 0x2b7   : > { %v1858_v60 = vadd.f32 %v8765_v59, %v7250_v24  ;;  %v5945_v24 = vld [vmem:[#allocation8 + $0xe8] sm:$0xff]  ;;  %v8772_v59 = vld [vmem:[#allocation73_spill] sm:$0xff] }
 0x2b8   : > { %3775 = vmatpush.bf16.msra.mxu1 %v5945_v24 }
 0x2b9   : > { %2102 = vmatmul.bf16.gmra.mxu1 %v8764_v19 }
 0x2bb   : > { %v1954_v52 = vpop.f32.mrf.mxu0 }
 0x2bc   : > { %v1955_v0 = vadd.f32 %v1954_v52, %v1856_v46  ;;  %2462 = vmatmul.bf16.gmra.mxu3 %v8745_v61  ;;  %v1863_v46 = vadd.f32 %v7105_v36, %v7261_v39  ;;  %v8774_v39 = vld [vmem:[#allocation65_spill] sm:$0xff] }
 0x2be   : > { %v7325_v56 = vadd.f32 %v2053_v3, %v1955_v0  ;;  %1993 = vmatmul.bf16.gmra.mxu0 %v8763_v23  ;;  %v7333_v40 = vpop.f32.mrf.mxu1  ;;  %v8766_v3 = vld [vmem:[#allocation89_spill] sm:$0xff]  ;;  %v8771_v0 = vld [vmem:[#allocation72_spill] sm:$0xff] }
 0x2bf   : > { %2363 = vmatmul.bf16.gmra.mxu2 %v6773_v35  ;;  %v1861_v31 = vadd.f32 %v8766_v3, %v7255_v53  ;;  %v8770_v53 = vld [vmem:[#allocation32_spill] sm:$0xff]  ;;  %v8775_v3 = vld [vmem:[#allocation67_spill] sm:$0xff] }
 0x2c3   : > { %v1956_v50 = vpop.f32.mrf.mxu0 }
 0x2c4   : > { %v1957_v21 = vadd.f32 %v1956_v50, %v1858_v60  ;;  %v1526_v60 = vadd.f32 %v8772_v59, %v8771_v0  ;;  %v5952_v59 = vld [vmem:[#allocation8 + $0x120] sm:$0xff] }
 0x2c5   : > { %3865 = vmatpush.bf16.msra.mxu2 %v5952_v59 }
 0x2c6   : > { %v7331_v20 = vadd.f32 %v2055_v49, %v1957_v21  ;;  %v8767_v49 = vld [vmem:[#allocation25_spill] sm:$0xff]  ;;  %v2068_v57 = vpop.f32.mrf.mxu1  ;;  %v1625_v7 = vadd.f32 %v8774_v39, %v1526_v60  ;;  %v8780_v60 = vld [vmem:[#allocation30_spill] sm:$0xff]  ;;  %v5944_v39 = vld [vmem:[#allocation8 + $0xe0] sm:$0xff] }
 0x2c7   : > { %3776 = vmatpush.bf16.msra.mxu1 %v5944_v39 }
 0x2c9   : > { %2107 = vmatmul.bf16.gmra.mxu1 %v8768_v54 }
 0x2cb   : > { %v1959_v6 = vpop.f32.mrf.mxu0 }
 0x2cc   : > { %v1960_v18 = vadd.f32 %v1959_v6, %v1861_v31  ;;  %2467 = vmatmul.bf16.gmra.mxu3 %v8751_v29  ;;  %v1868_v31 = vadd.f32 %v7124_v14, %v1625_v7  ;;  %v8781_v7 = vld [vmem:[#allocation71_spill] sm:$0xff] }
 0x2ce   : > { %v7339_v2 = vadd.f32 %v2058_v58, %v1960_v18  ;;  %1998 = vmatmul.bf16.gmra.mxu0 %v8767_v49  ;;  %v7347_v61 = vpop.f32.mrf.mxu1  ;;  %v7360_v18 = vpop.f32.mrf.mxu2 }
 0x2cf   : > { %8769 = vst [vmem:[#allocation63_spill] sm:$0xff] %v7347_v61  ;;  %2368 = vmatmul.bf16.gmra.mxu2 %v8770_v53 }
 0x2d3   : > { %v1961_v35 = vpop.f32.mrf.mxu0 }
 0x2d4   : > { %v7345_v52 = vadd.f32 %v1961_v35, %v1863_v46  ;;  %v8777_v46 = vld [vmem:[#allocation38_spill] sm:$0xff]  ;;  %v8779_v35 = vld [vmem:[#allocation76_spill] sm:$0xff] }
 0x2d6   : > { %v2073_v36 = vpop.f32.mrf.mxu1 }
 0x2d9   : > { %2112 = vmatmul.bf16.gmra.mxu1 %v8775_v3 }
 0x2db   : > { %v1964_v58 = vpop.f32.mrf.mxu0 }
 0x2dc   : > { %v1965_v50 = vadd.f32 %v1964_v58, %v7118_v30  ;;  %2472 = vmatmul.bf16.gmra.mxu3 %v8753_v47 }
 0x2de   : > { %v7354_v21 = vadd.f32 %v2063_v10, %v1965_v50  ;;  %2003 = vmatmul.bf16.gmra.mxu0 %v8773_v17  ;;  %v7364_v24 = vpop.f32.mrf.mxu1  ;;  %v8778_v10 = vld [vmem:[#allocation75_spill] sm:$0xff] }
 0x2df   : > { %8776 = vst [vmem:[#allocation64_spill] sm:$0xff] %v7364_v24  ;;  %2373 = vmatmul.bf16.gmra.mxu2 %v8777_v46  ;;  %v1531_v53 = vadd.f32 %v8779_v35, %v8778_v10 }
 0x2e2   : > { %v1672_v0 = vpop.f32.mrf.mxu2 }
 0x2e3   : > { %v1966_v6 = vpop.f32.mrf.mxu0 }
 0x2e4   : > { %v7362_v29 = vadd.f32 %v1966_v6, %v1868_v31  ;;  %v1630_v31 = vadd.f32 %v8781_v7, %v1531_v53 }
 0x2e6   : > { %v2078_v50 = vpop.f32.mrf.mxu1  ;;  %v1873_v47 = vadd.f32 %v7148_v38, %v1630_v31  ;;  %v8786_v38 = vld [vmem:[#allocation35_spill] sm:$0xff] }
 0x2ea   : > { %v1674_v10 = vpop.f32.mrf.mxu2 }
 0x2eb   : > { %v1969_v30 = vpop.f32.mrf.mxu0 }
 0x2ec   : > { %v1970_v58 = vadd.f32 %v1969_v30, %v7142_v44  ;;  %v8783_v44 = vld [vmem:[#allocation42_spill] sm:$0xff]  ;;  %2477 = vmatmul.bf16.gmra.mxu3 %v8755_v1 }
 0x2ed   : > { %v8784_v30 = vld [vmem:[#allocation78_spill] sm:$0xff] }
 0x2ee   : > { %v7371_v14 = vadd.f32 %v2068_v57, %v1970_v58  ;;  %2008 = vmatmul.bf16.gmra.mxu0 %v8780_v60  ;;  %v7378_v35 = vpop.f32.mrf.mxu1  ;;  %v8785_v58 = vld [vmem:[#allocation79_spill] sm:$0xff] }
 0x2ef   : > { %8782 = vst [vmem:[#allocation68_spill] sm:$0xff] %v7378_v35  ;;  %2378 = vmatmul.bf16.gmra.mxu2 %v8783_v44  ;;  %v1536_v0 = vadd.f32 %v8785_v58, %v8784_v30  ;;  %v2438_v39 = vpop.f32.mrf.mxu3  ;;  %v8790_v30 = vld [vmem:[#allocation45_spill] sm:$0xff] }
 0x2f0   : > { %v5951_v39 = vld [vmem:[#allocation8 + $0x118] sm:$0xff] }
 0x2f1   : > { %3866 = vmatpush.bf16.msra.mxu2 %v5951_v39 }
 0x2f2   : > { %v2339_v53 = vpop.f32.mrf.mxu2 }
 0x2f3   : > { %v1971_v6 = vpop.f32.mrf.mxu0 }
 0x2f4   : > { %v7376_v46 = vadd.f32 %v1971_v6, %v1873_v47  ;;  %v8787_v47 = vld [vmem:[#allocation74_spill] sm:$0xff] }
 0x2f5   : > { %v1635_v6 = vadd.f32 %v8787_v47, %v1536_v0  ;;  %v8793_v47 = vld [vmem:[#allocation77_spill] sm:$0xff] }
 0x2f6   : > { %v2083_v31 = vpop.f32.mrf.mxu1 }
 0x2f7   : > { %v1878_v10 = vadd.f32 %v7166_v63, %v1635_v6  ;;  %v2440_v24 = vpop.f32.mrf.mxu3 }
 0x2fa   : > { %v2341_v1 = vpop.f32.mrf.mxu2 }
 0x2fb   : > { %v1974_v57 = vpop.f32.mrf.mxu0  ;;  %v5943_v1 = vld [vmem:[#allocation8 + $0xd8] sm:$0xff] }
 0x2fc   : > { %v1975_v59 = vadd.f32 %v1974_v57, %v7162_v11  ;;  %2482 = vmatmul.bf16.gmra.mxu3 %v8758_v27  ;;  %3777 = vmatpush.bf16.msra.mxu1 %v5943_v1 }
 0x2fe   : > { %v7385_v7 = vadd.f32 %v2073_v36, %v1975_v59  ;;  %2013 = vmatmul.bf16.gmra.mxu0 %v8786_v38  ;;  %v7392_v61 = vpop.f32.mrf.mxu1  ;;  %v8791_v36 = vld [vmem:[#allocation82_spill] sm:$0xff] }
 0x2ff   : > { %8789 = vst [vmem:[#allocation69_spill] sm:$0xff] %v7392_v61  ;;  %2383 = vmatmul.bf16.gmra.mxu2 %v8790_v30  ;;  %v1541_v57 = vadd.f32 %v7236_v48, %v8791_v36  ;;  %v2443_v59 = vpop.f32.mrf.mxu3  ;;  %v8797_v36 = vld [vmem:[#allocation83_spill] sm:$0xff] }
 0x301   : > { %v1640_v6 = vadd.f32 %v8793_v47, %v1541_v57  ;;  %v8798_v57 = vld [vmem:[#allocation48_spill] sm:$0xff] }
 0x302   : > { %v2344_v0 = vpop.f32.mrf.mxu2 }
 0x303   : > { %v1976_v44 = vpop.f32.mrf.mxu0  ;;  %v7399_v63 = vadd.f32 %v2443_v59, %v2344_v0  ;;  %v1883_v27 = vadd.f32 %v7173_v16, %v1640_v6 }
 0x304   : > { %v7390_v35 = vadd.f32 %v1976_v44, %v1878_v10 }
 0x306   : > { %8788 = vst [vmem:[#allocation40_spill] sm:$0xff] %v7390_v35  ;;  %v2088_v24 = vpop.f32.mrf.mxu1 }
 0x30a   : > { %v2346_v48 = vpop.f32.mrf.mxu2 }
 0x30b   : > { %v1979_v11 = vpop.f32.mrf.mxu0 }
 0x30c   : > { %v1980_v58 = vadd.f32 %v1979_v11, %v7171_v4  ;;  %v2445_v4 = vpop.f32.mrf.mxu3  ;;  %v8796_v11 = vld [vmem:[#allocation20_spill] sm:$0xff]  ;;  %2487 = vmatmul.bf16.gmra.mxu3 %v8760_v12 }
 0x30d   : > { %v7408_v30 = vadd.f32 %v2445_v4, %v2346_v48 }
 0x30e   : > { %v7401_v53 = vadd.f32 %v2078_v50, %v1980_v58  ;;  %2536 = vmatmul.bf16.vlgmr.msrb.gmra.mxu0 %v7056_v37  ;;  %v7410_v50 = vpop.f32.mrf.mxu1  ;;  %v1546_v58 = vadd.f32 %v8798_v57, %v8797_v36  ;;  %v8805_v57 = vld [vmem:[#allocation51_spill] sm:$0xff] }
 0x30f   : > { %8795 = vst [vmem:[#allocation44_spill] sm:$0xff] %v7410_v50  ;;  %2388 = vmatmul.bf16.gmra.mxu2 %v8796_v11 }
 0x310   : > { %8792 = vst [vmem:[#allocation70_spill] sm:$0xff] %v7401_v53 }
 0x312   : > { %v2349_v0 = vpop.f32.mrf.mxu2 }
 0x313   : > { %v1981_v10 = vpop.f32.mrf.mxu0 }
 0x314   : > { %v7406_v44 = vadd.f32 %v1981_v10, %v1883_v27  ;;  %v2448_v59 = vpop.f32.mrf.mxu3  ;;  %v8800_v27 = vld [vmem:[#allocation81_spill] sm:$0xff] }
 0x315   : > { %v7417_v39 = vadd.f32 %v2448_v59, %v2349_v0  ;;  %v1645_v10 = vadd.f32 %v8800_v27, %v1546_v58 }
 0x316   : > { %8794 = vst [vmem:[#allocation37_spill] sm:$0xff] %v7406_v44  ;;  %v2093_v6 = vpop.f32.mrf.mxu1 }
 0x317   : > { %v1888_v48 = vadd.f32 %v7180_v43, %v1645_v10 }
 0x31a   : > { %v2351_v1 = vpop.f32.mrf.mxu2 }
 0x31b   : > { %v1984_v37 = vpop.f32.mrf.mxu0 }
 0x31c   : > { %v1985_v16 = vadd.f32 %v1984_v37, %v7178_v22  ;;  %v2450_v11 = vpop.f32.mrf.mxu3  ;;  %v8803_v37 = vld [vmem:[#allocation22_spill] sm:$0xff]  ;;  %2492 = vmatmul.bf16.gmra.mxu3 %v8763_v23 }
 0x31d   : > { %v7426_v36 = vadd.f32 %v2450_v11, %v2351_v1 }
 0x31e   : > { %v7419_v47 = vadd.f32 %v2083_v31, %v1985_v16  ;;  %2541 = vmatmul.bf16.gmra.mxu0 %v7074_v42  ;;  %v7428_v22 = vpop.f32.mrf.mxu1  ;;  %v8804_v42 = vld [vmem:[#allocation86_spill] sm:$0xff] }
 0x31f   : > { %8802 = vst [vmem:[#allocation50_spill] sm:$0xff] %v7428_v22  ;;  %2393 = vmatmul.bf16.gmra.mxu2 %v8803_v37  ;;  %v1551_v16 = vadd.f32 %v8805_v57, %v8804_v42  ;;  %v5950_v57 = vld [vmem:[#allocation8 + $0x110] sm:$0xff] }
 0x320   : > { %8799 = vst [vmem:[#allocation47_spill] sm:$0xff] %v7419_v47  ;;  %3867 = vmatpush.bf16.msra.mxu2 %v5950_v57 }
 0x322   : > { %v2354_v43 = vpop.f32.mrf.mxu2 }
 0x323   : > { %v1986_v12 = vpop.f32.mrf.mxu0 }
 0x324   : > { %v7424_v4 = vadd.f32 %v1986_v12, %v1888_v48  ;;  %v2453_v0 = vpop.f32.mrf.mxu3  ;;  %v8807_v48 = vld [vmem:[#allocation84_spill] sm:$0xff] }
 0x325   : > { %v7435_v59 = vadd.f32 %v2453_v0, %v2354_v43  ;;  %v1650_v12 = vadd.f32 %v8807_v48, %v1551_v16  ;;  %v8811_v16 = vld [vmem:[#allocation90_spill] sm:$0xff]  ;;  %v8813_v0 = vld [vmem:[#allocation99_spill] sm:$0xff] }
 0x326   : > { %8801 = vst [vmem:[#allocation46_spill] sm:$0xff] %v7424_v4  ;;  %v2098_v10 = vpop.f32.mrf.mxu1 }
 0x327   : > { %v1893_v1 = vadd.f32 %v7194_v41, %v1650_v12  ;;  %v8812_v41 = vld [vmem:[#allocation54_spill] sm:$0xff] }
 0x328   : > { %v1556_v43 = vadd.f32 %v8812_v41, %v8811_v16 }
 0x32a   : > { %v2356_v37 = vpop.f32.mrf.mxu2 }
 0x32b   : > { %v1989_v31 = vpop.f32.mrf.mxu0 }
 0x32c   : > { %v1990_v58 = vadd.f32 %v1989_v31, %v7190_v45  ;;  %v2455_v42 = vpop.f32.mrf.mxu3  ;;  %2497 = vmatmul.bf16.gmra.mxu3 %v8767_v49 }
 0x32d   : > { %v7444_v45 = vadd.f32 %v2455_v42, %v2356_v37  ;;  %v8815_v42 = vld [vmem:[#allocation91_spill] sm:$0xff] }
 0x32e   : > { %v7437_v27 = vadd.f32 %v2088_v24, %v1990_v58  ;;  %2546 = vmatmul.bf16.gmra.mxu0 %v7092_v32  ;;  %v7446_v31 = vpop.f32.mrf.mxu1  ;;  %v5942_v24 = vld [vmem:[#allocation8 + $0xd0] sm:$0xff]  ;;  %v8810_v58 = vld [vmem:[#allocation24_spill] sm:$0xff] }
 0x32f   : > { %8809 = vst [vmem:[#allocation53_spill] sm:$0xff] %v7446_v31  ;;  %3778 = vmatpush.bf16.msra.mxu1 %v5942_v24  ;;  %2398 = vmatmul.bf16.gmra.mxu2 %v8810_v58  ;;  %v8816_v24 = vld [vmem:[#allocation87_spill] sm:$0xff]  ;;  %v8817_v58 = vld [vmem:[#allocation100_spill] sm:$0xff] }
 0x330   : > { %8806 = vst [vmem:[#allocation49_spill] sm:$0xff] %v7437_v27  ;;  %v1655_v31 = vadd.f32 %v8816_v24, %v1556_v43  ;;  %v8823_v43 = vld [vmem:[#allocation101_spill] sm:$0xff] }
 0x332   : > { %v2359_v12 = vpop.f32.mrf.mxu2  ;;  %v1898_v22 = vadd.f32 %v8817_v58, %v1655_v31 }
 0x333   : > { %v1991_v23 = vpop.f32.mrf.mxu0 }
 0x334   : > { %v7442_v11 = vadd.f32 %v1991_v23, %v1893_v1  ;;  %v2458_v1 = vpop.f32.mrf.mxu3 }
 0x335   : > { %v7453_v23 = vadd.f32 %v2458_v1, %v2359_v12  ;;  %v8822_v12 = vld [vmem:[#allocation56_spill] sm:$0xff] }
 0x336   : > { %8808 = vst [vmem:[#allocation80_spill] sm:$0xff] %v7442_v11  ;;  %v2103_v57 = vpop.f32.mrf.mxu1 }
 0x33a   : > { %v2361_v11 = vpop.f32.mrf.mxu2 }
 0x33b   : > { %v1994_v32 = vpop.f32.mrf.mxu0 }
 0x33c   : > { %v1995_v48 = vadd.f32 %v1994_v32, %v8813_v0  ;;  %v2460_v16 = vpop.f32.mrf.mxu3  ;;  %v8820_v0 = vld [vmem:[#allocation26_spill] sm:$0xff]  ;;  %2502 = vmatmul.bf16.gmra.mxu3 %v8773_v17 }
 0x33d   : > { %v7462_v41 = vadd.f32 %v2460_v16, %v2361_v11  ;;  %v8825_v11 = vld [vmem:[#allocation94_spill] sm:$0xff]  ;;  %v8826_v16 = vld [vmem:[#allocation92_spill] sm:$0xff] }
 0x33e   : > { %v7455_v37 = vadd.f32 %v2093_v6, %v1995_v48  ;;  %2551 = vmatmul.bf16.gmra.mxu0 %v8815_v42  ;;  %v7464_v32 = vpop.f32.mrf.mxu1  ;;  %v8821_v48 = vld [vmem:[#allocation93_spill] sm:$0xff] }
 0x33f   : > { %8819 = vst [vmem:[#allocation55_spill] sm:$0xff] %v7464_v32  ;;  %2403 = vmatmul.bf16.gmra.mxu2 %v8820_v0  ;;  %v1561_v1 = vadd.f32 %v8822_v12, %v8821_v48  ;;  %v8827_v0 = vld [vmem:[#allocation102_spill] sm:$0xff] }
 0x340   : > { %8814 = vst [vmem:[#allocation52_spill] sm:$0xff] %v7455_v37 }
 0x341   : > { %v1660_v32 = vadd.f32 %v8826_v16, %v1561_v1  ;;  %v8831_v1 = vld [vmem:[#allocation96_spill] sm:$0xff] }
 0x342   : > { %v2364_v31 = vpop.f32.mrf.mxu2 }
 0x343   : > { %v1996_v49 = vpop.f32.mrf.mxu0 }
 0x344   : > { %v7460_v50 = vadd.f32 %v1996_v49, %v1898_v22  ;;  %v2463_v24 = vpop.f32.mrf.mxu3 }
 0x345   : > { %v7471_v22 = vadd.f32 %v2463_v24, %v2364_v31  ;;  %v5941_v31 = vld [vmem:[#allocation8 + $0xc8] sm:$0xff] }
 0x346   : > { %8818 = vst [vmem:[#allocation21_spill] sm:$0xff] %v7460_v50  ;;  %v2108_v49 = vpop.f32.mrf.mxu1  ;;  %v1903_v50 = vadd.f32 %v8827_v0, %v1660_v32  ;;  %v8832_v24 = vld [vmem:[#allocation60_spill] sm:$0xff]  ;;  %3779 = vmatpush.bf16.msra.mxu1 %v5941_v31  ;;  %v8840_v31 = vld [vmem:[#allocation98_spill] sm:$0xff] }
 0x347   : > { %v1566_v32 = vadd.f32 %v8832_v24, %v8831_v1 }
 0x34a   : > { %v2366_v27 = vpop.f32.mrf.mxu2 }
 0x34b   : > { %v1999_v6 = vpop.f32.mrf.mxu0 }
 0x34c   : > { %v2000_v42 = vadd.f32 %v1999_v6, %v8823_v43  ;;  %v2465_v48 = vpop.f32.mrf.mxu3  ;;  %v5949_v43 = vld [vmem:[#allocation8 + $0x108] sm:$0xff]  ;;  %2507 = vmatmul.bf16.gmra.mxu3 %v8780_v60  ;;  %v8837_v60 = vld [vmem:[#allocation58_spill] sm:$0xff] }
 0x34d   : > { %v7480_v12 = vadd.f32 %v2465_v48, %v2366_v27  ;;  %3868 = vmatpush.bf16.msra.mxu2 %v5949_v43  ;;  %v8835_v48 = vld [vmem:[#allocation97_spill] sm:$0xff] }
 0x34e   : > { %v7473_v58 = vadd.f32 %v2098_v10, %v2000_v42  ;;  %2556 = vmatmul.bf16.gmra.mxu0 %v8825_v11  ;;  %v7482_v6 = vpop.f32.mrf.mxu1  ;;  %v8830_v10 = vld [vmem:[#allocation28_spill] sm:$0xff]  ;;  %v8833_v11 = vld [vmem:[#allocation29_spill] sm:$0xff] }
 0x34f   : > { %8829 = vst [vmem:[#allocation57_spill] sm:$0xff] %v7482_v6  ;;  %2408 = vmatmul.bf16.gmra.mxu2 %v8830_v10  ;;  %v8836_v10 = vld [vmem:[#allocation95_spill] sm:$0xff] }
 0x350   : > { %8824 = vst [vmem:[#allocation85_spill] sm:$0xff] %v7473_v58  ;;  %v1665_v6 = vadd.f32 %v8836_v10, %v1566_v32 }
 0x352   : > { %v2369_v16 = vpop.f32.mrf.mxu2 }
 0x353   : > { %v2001_v17 = vpop.f32.mrf.mxu0 }
 0x354   : > { %v7478_v37 = vadd.f32 %v2001_v17, %v1903_v50  ;;  %v2468_v0 = vpop.f32.mrf.mxu3 }
 0x355   : > { %v7489_v17 = vadd.f32 %v2468_v0, %v2369_v16  ;;  %v8842_v16 = vld [vmem:[#allocation59_spill] sm:$0xff] }
 0x356   : > { %8828 = vst [vmem:[#allocation23_spill] sm:$0xff] %v7478_v37  ;;  %v2113_v43 = vpop.f32.mrf.mxu1  ;;  %v1908_v37 = vadd.f32 %v8837_v60, %v1665_v6  ;;  %v8845_v60 = vld [vmem:[#allocation62_spill] sm:$0xff] }
 0x357   : > { %v8844_v43 = vld [vmem:[#allocation33_spill] sm:$0xff] }
 0x35a   : > { %v7498_v1 = vpop.f32.mrf.mxu2 }
 0x35b   : > { %v2004_v42 = vpop.f32.mrf.mxu0 }
 0x35c   : > { %v2005_v50 = vadd.f32 %v2004_v42, %v8833_v11  ;;  %v7500_v42 = vpop.f32.mrf.mxu3  ;;  %v8839_v11 = vld [vmem:[#allocation31_spill] sm:$0xff]  ;;  %2512 = vmatmul.bf16.gmra.mxu3 %v8786_v38 }
 0x35e   : > { %v7491_v27 = vadd.f32 %v2103_v57, %v2005_v50  ;;  %2561 = vmatmul.bf16.gmra.mxu0 %v8835_v48  ;;  %v2115_v24 = vpop.f32.mrf.mxu1  ;;  %v8841_v50 = vld [vmem:[#allocation66_spill] sm:$0xff] }
 0x35f   : > { %2413 = vmatmul.bf16.gmra.mxu2 %v8839_v11  ;;  %v1571_v32 = vadd.f32 %v8841_v50, %v8840_v31  ;;  %v412_v50 = vld [vmem:[%s6522_s10 + $0x38] sm:$0xff] }
 0x360   : > { %8834 = vst [vmem:[#allocation88_spill] sm:$0xff] %v7491_v27  ;;  %v5962_v27 = vld [vmem:[#allocation8 + $0x170] sm:$0xff] }
 0x361   : > { %v1670_v10 = vadd.f32 %v7360_v18, %v1571_v32 }
 0x362   : > { %v2374_v0 = vpop.f32.mrf.mxu2 }
 0x363   : > { %v2006_v58 = vpop.f32.mrf.mxu0  ;;  %v1913_v24 = vadd.f32 %v8845_v60, %v1670_v10  ;;  %v5963_v60 = vld [vmem:[#allocation8 + $0x178] sm:$0xff] }
 0x364   : > { %v7496_v61 = vadd.f32 %v2006_v58, %v1908_v37  ;;  %v2473_v37 = vpop.f32.mrf.mxu3  ;;  %3951 = vmatpush.bf16.msrb.mxu3 %v5963_v60  ;;  %v5960_v60 = vld [vmem:[#allocation8 + $0x160] sm:$0xff] }
 0x365   : > { %v7507_v58 = vadd.f32 %v2473_v37, %v2374_v0  ;;  %v8848_v0 = vld [vmem:[#allocation41_spill] sm:$0xff] }
 0x366   : > { %8838 = vst [vmem:[#allocation89_spill] sm:$0xff] %v7496_v61 }
 0x368   : > { %3952 = vmatpush.bf16.msrb.mxu3 %v5962_v27 }
 0x36a   : > { %v7516_v61 = vpop.f32.mrf.mxu2 }
 0x36b   : > { %v2009_v57 = vpop.f32.mrf.mxu0 }
 0x36c   : > { %v2010_v6 = vadd.f32 %v2009_v57, %v8842_v16  ;;  %v7518_v31 = vpop.f32.mrf.mxu3  ;;  %v411_v57 = vld [vmem:[%s6522_s10 + $0x30] sm:$0xff]  ;;  %v8847_v16 = vld [vmem:[#allocation36_spill] sm:$0xff]  ;;  %2517 = vmatmul.bf16.gmra.mxu3 %v8848_v0  ;;  %s6275_s10 = scalar_lea.hbm %s8530_s6, 512 }
 0x36d   : > { %p6277_p12 = scmp.lt.s32.totalorder %s6275_s10, %s6271_s0 }
 0x36e   : > { %v7509_v48 = vadd.f32 %v2108_v49, %v2010_v6  ;;  %2566 = vmatmul.bf16.gmra.mxu0 %v8844_v43  ;;  %v451_v49 = vpack.c.bf16 %v411_v57, %v411_v57  ;;  %v452_v6 = vpack.c.bf16 %v412_v50, %v412_v50 }
 0x36f   : > { %2418 = vmatmul.bf16.gmra.mxu2 %v8847_v16  ;;  %p6278_p13 = por %p6277_p12, %p6276_p10 }
 0x370   : > { %8843 = vst [vmem:[#allocation25_spill] sm:$0xff] %v7509_v48  ;;  %v531_v43 = vunpack.c.l.b16 %v451_v49  ;;  %v532_v18 = vunpack.c.l.b16 %v452_v6  ;;  %v5961_v6 = vld [vmem:[#allocation8 + $0x168] sm:$0xff] }
 0x371   : > { %3953 = vmatpush.bf16.msrb.mxu3 %v5961_v6  ;;  %p6279_p0 = pnand %p6278_p13, %p6274_p8 }
 0x372   : > { %v2379_v32 = vpop.f32.mrf.mxu2 }
 0x373   : > { %v2011_v38 = vpop.f32.mrf.mxu0 }
 0x374   : > { %v7514_v11 = vadd.f32 %v2011_v38, %v1913_v24  ;;  %v2478_v10 = vpop.f32.mrf.mxu3  ;;  %v552_v38 = vpack.c.b16 %v532_v18, %v531_v43  ;;  %v5948_v43 = vld [vmem:[#allocation8 + $0x100] sm:$0xff] }
 0x375   : > { %v7524_v24 = vadd.f32 %v2478_v10, %v2379_v32  ;;  %v5940_v18 = vld [vmem:[#allocation8 + $0xc0] sm:$0xff]  ;;  %3869 = vmatpush.bf16.msra.mxu2 %v5948_v43  ;;  %3954 = vmatpush.bf16.msrb.mxu3 %v5960_v60 }
 0x376   : > { %8846 = vst [vmem:[#allocation61_spill] sm:$0xff] %v7514_v11  ;;  %v8849_v11 = vld [vmem:[#allocation39_spill] sm:$0xff]  ;;  %v687_v48 = vshrl.u32 %v552_v38, 16  ;;  %v690_v16 = vshll.u32 %v552_v38, 16  ;;  %3780 = vmatpush.bf16.msra.mxu1 %v5940_v18 }
 0x377   : > { %v8851_v43 = vld [vmem:[#allocation43_spill] sm:$0xff] }
 0x378   : > { %v689_v4 = vrot.slane %v687_v48, 7 }
 0x37a   : > { %v692_v57 = vor.u32 %v690_v16, %v689_v4  ;;  %v7527_v50 = vpop.f32.mrf.mxu2  ;;  %v7538_v48 = vsel %vm6549_vm2, %v689_v4, 0  ;;  %v5959_v4 = vld [vmem:[#allocation8 + $0x158] sm:$0xff] }
 0x37b   : > { %v2014_v37 = vpop.f32.mrf.mxu0  ;;  %v2175_v38 = vshll.u32 %v7538_v48, 16  ;;  %3955 = vmatpush.bf16.msrb.mxu3 %v5959_v4 }
 0x37c   : > { %v7529_v49 = vpop.f32.mrf.mxu3  ;;  %v7533_v32 = vsel %vm6549_vm2, 0, %v692_v57 }
 0x37d   : > { %v2168_v27 = vshrl.u32 %v7533_v32, 16 }
 0x37e   : > { %2571 = vmatmul.bf16.gmra.mxu0 %v8849_v11  ;;  %v2170_v11 = vshll.u32 %v7533_v32, 16 }
 0x37f   : > { %2423 = vmatmul.bf16.gmra.mxu2 %v7533_v32 }
 0x380   : > { %v2172_v10 = vrot.slane %v2170_v11, 1  ;;  %v5958_v11 = vld [vmem:[#allocation8 + $0x150] sm:$0xff] }
 0x381   : > { %3956 = vmatpush.bf16.msrb.mxu3 %v5958_v11 }
 0x382   : > { %v2173_v16 = vor.u32 %v2172_v10, %v2168_v27  ;;  %v2384_v6 = vpop.f32.mrf.mxu2  ;;  %v5957_v27 = vld [vmem:[#allocation8 + $0x148] sm:$0xff]  ;;  %v5956_v10 = vld [vmem:[#allocation8 + $0x140] sm:$0xff] }
 0x383   : > { %v2016_v0 = vpop.f32.mrf.mxu0 }
 0x384   : > { %v2177_v0 = vrot.slane %v2175_v38, 1  ;;  %v2483_v47 = vpop.f32.mrf.mxu3 }
 0x385   : > { %v7545_v18 = vadd.f32 %v2483_v47, %v2384_v6  ;;  %3957 = vmatpush.bf16.msrb.mxu3 %v5957_v27  ;;  %v7556_v47 = vld [vmem:[%s8527_s3] ss:$0 sm:$0xff] }
 0x386   : > { %v2178_v44 = vsel %vm824_vm3, %v2173_v16, %v2177_v0 }
 0x387   : > { %2522 = vmatmul.bf16.gmra.mxu3 %v2178_v44 }
 0x389   : > { %3958 = vmatpush.bf16.msrb.mxu3 %v5956_v10  ;;  %v5931_v10 = vld [vmem:[#allocation8 + $0x78] sm:$0xff] }
 0x38a   : > { %v7547_v35 = vpop.f32.mrf.mxu2  ;;  %4273 = vmatpush.bf16.msrb.mxu2 %v5931_v10 }
 0x38b   : > { %v2537_v57 = vpop.f32.mrf.mxu0  ;;  %8852 = vst [vmem:[#allocation32_spill] sm:$0xff] %v7547_v35 }
 0x38c   : > { %v7549_v60 = vpop.f32.mrf.mxu3 }
 0x38d   : > { %8853 = vst [vmem:[#allocation72_spill] sm:$0xff] %v7549_v60 }
 0x38e   : > { %2576 = vmatmul.bf16.gmra.mxu0 %v8851_v43 }
 0x392   : > { %v2389_v44 = vpop.f32.mrf.mxu2 }
 0x393   : > { %v2539_v53 = vpop.f32.mrf.mxu0 }
 0x394   : > { %v2488_v0 = vpop.f32.mrf.mxu3 }
 0x395   : > { %v7561_v43 = vadd.f32 %v2488_v0, %v2389_v44 }
 0x39a   : > { %v7563_v11 = vpop.f32.mrf.mxu2 }
 0x39b   : > { %v2542_v38 = vpop.f32.mrf.mxu0  ;;  %8854 = vst [vmem:[#allocation73_spill] sm:$0xff] %v7563_v11 }
 0x39c   : > { %v2543_v16 = vadd.f32 %v2542_v38, %v7399_v63  ;;  %v7565_v63 = vpop.f32.mrf.mxu3 }
 0x39d   : > { %8855 = vst [vmem:[#allocation27_spill] sm:$0xff] %v7565_v63 }
 0x39e   : > { %v2629_v57 = vadd.f32 %v2543_v16, %v7275_v34  ;;  %2581 = vmatmul.bf16.gmra.mxu0 %v8754_v62 }
 0x3a0   : > { %v2669_v53 = vadd.f32 %v7556_v47, %v2629_v57 }
 0x3a2   : > { %v2705_v27 = vmax.f32 %v2669_v53, 0.0 }
 0x3a3   : > { %v2544_v6 = vpop.f32.mrf.mxu0 }
 0x3a4   : > { %v2545_v4 = vadd.f32 %v2544_v6, %v7408_v30  ;;  %v2887_v16 = vpack.c.bf16 %v2705_v27, %v2705_v27  ;;  %v2394_v30 = vpop.f32.mrf.mxu2  ;;  %v2493_v44 = vpop.f32.mrf.mxu3 }
 0x3a5   : > { %v7574_v63 = vadd.f32 %v2493_v44, %v2394_v30 }
 0x3a6   : > { %v2630_v34 = vadd.f32 %v2545_v4, %v7281_v55  ;;  %v2959_v0 = vunpack.c.l.b16 %v2887_v16 }
 0x3a8   : > { %v2670_v38 = vadd.f32 %v7556_v47, %v2630_v34 }
 0x3aa   : > { %v2706_v62 = vmax.f32 %v2670_v38, 0.0 }
 0x3ab   : > { %v2547_v60 = vpop.f32.mrf.mxu0 }
 0x3ac   : > { %v2888_v57 = vpack.c.bf16 %v2706_v62, %v2706_v62  ;;  %v2548_v35 = vadd.f32 %v2547_v60, %v7417_v39  ;;  %v5923_v62 = vld [vmem:[#allocation8 + $0x38] sm:$0xff]  ;;  %v7576_v39 = vpop.f32.mrf.mxu2  ;;  %v7578_v60 = vpop.f32.mrf.mxu3 }
 0x3ad   : > { %8856 = vst [vmem:[#allocation65_spill] sm:$0xff] %v7578_v60  ;;  %4184 = vmatpush.bf16.msrb.mxu1 %v5923_v62 }
 0x3ae   : > { %v2960_v6 = vunpack.c.l.b16 %v2888_v57  ;;  %v2631_v11 = vadd.f32 %v2548_v35, %v7287_v15  ;;  %2586 = vmatmul.bf16.gmra.mxu0 %v8756_v13 }
 0x3b0   : > { %v2994_v53 = vpack.c.b16 %v2960_v6, %v2959_v0  ;;  %v2671_v55 = vadd.f32 %v7556_v47, %v2631_v11 }
 0x3b2   : > { %v3019_v4 = vshrl.u32 %v2994_v53, 16  ;;  %v3022_v38 = vshll.u32 %v2994_v53, 16  ;;  %v2707_v16 = vmax.f32 %v2671_v55, 0.0 }
 0x3b3   : > { %v2549_v34 = vpop.f32.mrf.mxu0 }
 0x3b4   : > { %v2550_v27 = vadd.f32 %v2549_v34, %v7426_v36  ;;  %v3021_v10 = vrot.slane %v3019_v4, 7  ;;  %v2498_v62 = vpop.f32.mrf.mxu3 }
 0x3b6   : > { %v2632_v15 = vadd.f32 %v2550_v27, %v7293_v9  ;;  %v3024_v13 = vor.u32 %v3022_v38, %v3021_v10  ;;  %v3192_v35 = vsel %vm6549_vm2, %v3021_v10, 0  ;;  %v2889_v9 = vpack.c.bf16 %v2707_v16, %v2707_v16  ;;  %v2399_v38 = vpop.f32.mrf.mxu2 }
 0x3b7   : > { %v3501_v44 = vrot.slane %v3192_v35, 1  ;;  %v3277_v0 = vshll.u32 %v3192_v35, 16 }
 0x3b8   : > { %v2672_v11 = vadd.f32 %v7556_v47, %v2632_v15  ;;  %v7586_v36 = vsel %vm6549_vm2, 0, %v3024_v13  ;;  %v2961_v60 = vunpack.c.l.b16 %v2889_v9  ;;  %v7605_v9 = vadd.f32 %v2498_v62, %v2399_v38 }
 0x3b9   : > { %v3272_v57 = vshll.u32 %v7586_v36, 16  ;;  %3781 = vmatmul.bf16.vlgmr.msra.gmra.mxu1 %v7586_v36  ;;  %v3500_v30 = vrot.slane %v7586_v36, 1  ;;  %v3270_v53 = vshrl.u32 %v7586_v36, 16  ;;  %v3279_v13 = vrot.slane %v3277_v0, 1 }
 0x3ba   : > { %v2708_v6 = vmax.f32 %v2672_v11, 0.0 }
 0x3bb   : > { %v2552_v55 = vpop.f32.mrf.mxu0  ;;  %v7593_v4 = vsel %vm1095_vm4, %v3500_v30, %v3501_v44  ;;  %v3274_v34 = vrot.slane %v3272_v57, 1 }
 0x3bc   : > { %v2890_v27 = vpack.c.bf16 %v2708_v6, %v2708_v6  ;;  %v2553_v10 = vadd.f32 %v2552_v55, %v7435_v59  ;;  %3959 = vmatmul.bf16.vlgmr.msrb.gmra.mxu3 %v7593_v4 }
 0x3bd   : > { %v3275_v15 = vor.u32 %v3274_v34, %v3270_v53 }
 0x3be   : > { %v2962_v35 = vunpack.c.l.b16 %v2890_v27  ;;  %v2633_v16 = vadd.f32 %v2553_v10, %v7299_v8  ;;  %2591 = vmatmul.bf16.gmra.mxu0 %v8759_v33  ;;  %v7607_v53 = vpop.f32.mrf.mxu2  ;;  %v7609_v8 = vpop.f32.mrf.mxu3  ;;  %v5930_v10 = vld [vmem:[#allocation8 + $0x70] sm:$0xff] }
 0x3bf   : > { %v7600_v11 = vsel %vm824_vm3, %v3275_v15, %v3279_v13  ;;  %4274 = vmatpush.bf16.msrb.mxu2 %v5930_v10 }
 0x3c0   : > { %8857 = vst [vmem:[#allocation67_spill] sm:$0xff] %v7600_v11  ;;  %v2995_v30 = vpack.c.b16 %v2962_v35, %v2961_v60  ;;  %3870 = vmatmul.bf16.vlgmr.msra.gmra.mxu2 %v7600_v11  ;;  %v2673_v59 = vadd.f32 %v7556_v47, %v2633_v16 }
 0x3c2   : > { %v3026_v57 = vshrl.u32 %v2995_v30, 16  ;;  %v3029_v55 = vshll.u32 %v2995_v30, 16  ;;  %v2709_v33 = vmax.f32 %v2673_v59, 0.0 }
 0x3c3   : > { %v2554_v44 = vpop.f32.mrf.mxu0 }
 0x3c4   : > { %v3028_v6 = vrot.slane %v3026_v57, 7  ;;  %v2555_v0 = vadd.f32 %v2554_v44, %v7444_v45  ;;  %v2891_v35 = vpack.c.bf16 %v2709_v33, %v2709_v33 }
 0x3c6   : > { %v2634_v34 = vadd.f32 %v2555_v0, %v7305_v5  ;;  %v3031_v60 = vor.u32 %v3029_v55, %v3028_v6  ;;  %v3193_v27 = vsel %vm6549_vm2, %v3028_v6, 0  ;;  %v2404_v0 = vpop.f32.mrf.mxu2  ;;  %v2963_v11 = vunpack.c.l.b16 %v2891_v35  ;;  %v5922_v35 = vld [vmem:[#allocation8 + $0x30] sm:$0xff] }
 0x3c7   : > { %v3504_v38 = vrot.slane %v3193_v27, 1  ;;  %v3289_v5 = vshll.u32 %v3193_v27, 16  ;;  %4185 = vmatpush.bf16.msrb.mxu1 %v5922_v35 }
 0x3c8   : > { %v2674_v15 = vadd.f32 %v7556_v47, %v2634_v34  ;;  %v7617_v13 = vsel %vm6549_vm2, 0, %v3031_v60  ;;  %v2503_v34 = vpop.f32.mrf.mxu3 }
 0x3c9   : > { %3786 = vmatmul.bf16.gmra.mxu1 %v7617_v13  ;;  %v3503_v45 = vrot.slane %v7617_v13, 1  ;;  %v3284_v62 = vshll.u32 %v7617_v13, 16  ;;  %v3282_v59 = vshrl.u32 %v7617_v13, 16  ;;  %v3291_v10 = vrot.slane %v3289_v5, 1 }
 0x3ca   : > { %v2710_v16 = vmax.f32 %v2674_v15, 0.0 }
 0x3cb   : > { %v2557_v30 = vpop.f32.mrf.mxu0  ;;  %v7623_v57 = vsel %vm1095_vm4, %v3503_v45, %v3504_v38  ;;  %v3286_v44 = vrot.slane %v3284_v62, 1 }
 0x3cc   : > { %v2892_v6 = vpack.c.bf16 %v2710_v16, %v2710_v16  ;;  %v2558_v55 = vadd.f32 %v2557_v30, %v7453_v23  ;;  %3964 = vmatmul.bf16.gmra.mxu3 %v7623_v57 }
 0x3cd   : > { %v3287_v60 = vor.u32 %v3286_v44, %v3282_v59  ;;  %v7636_v59 = vadd.f32 %v2503_v34, %v2404_v0 }
 0x3ce   : > { %v2964_v27 = vunpack.c.l.b16 %v2892_v6  ;;  %v2635_v33 = vadd.f32 %v2558_v55, %v7311_v26  ;;  %2596 = vmatmul.bf16.gmra.mxu0 %v8761_v28  ;;  %v7638_v26 = vpop.f32.mrf.mxu2 }
 0x3cf   : > { %v7631_v15 = vsel %vm824_vm3, %v3287_v60, %v3291_v10 }
 0x3d0   : > { %8858 = vst [vmem:[#allocation38_spill] sm:$0xff] %v7631_v15  ;;  %v2996_v45 = vpack.c.b16 %v2964_v27, %v2963_v11  ;;  %3875 = vmatmul.bf16.gmra.mxu2 %v7631_v15  ;;  %v2675_v23 = vadd.f32 %v7556_v47, %v2635_v33  ;;  %v7640_v28 = vpop.f32.mrf.mxu3 }
 0x3d2   : > { %v3033_v38 = vshrl.u32 %v2996_v45, 16  ;;  %v3036_v30 = vshll.u32 %v2996_v45, 16  ;;  %v2711_v44 = vmax.f32 %v2675_v23, 0.0 }
 0x3d3   : > { %v2559_v62 = vpop.f32.mrf.mxu0 }
 0x3d4   : > { %v3035_v16 = vrot.slane %v3033_v38, 7  ;;  %v2560_v5 = vadd.f32 %v2559_v62, %v7462_v41 }
 0x3d6   : > { %v2636_v11 = vadd.f32 %v2560_v5, %v7317_v51  ;;  %v3038_v6 = vor.u32 %v3036_v30, %v3035_v16  ;;  %v3194_v55 = vsel %vm6549_vm2, %v3035_v16, 0  ;;  %v2893_v51 = vpack.c.bf16 %v2711_v44, %v2711_v44  ;;  %v2409_v5 = vpop.f32.mrf.mxu2 }
 0x3d7   : > { %v3507_v34 = vrot.slane %v3194_v55, 1  ;;  %v3301_v27 = vshll.u32 %v3194_v55, 16 }
 0x3d8   : > { %v2676_v60 = vadd.f32 %v7556_v47, %v2636_v11  ;;  %v7648_v41 = vsel %vm6549_vm2, 0, %v3038_v6  ;;  %v2508_v35 = vpop.f32.mrf.mxu3  ;;  %v2965_v15 = vunpack.c.l.b16 %v2893_v51 }
 0x3d9   : > { %3791 = vmatmul.bf16.gmra.mxu1 %v7648_v41  ;;  %v3506_v0 = vrot.slane %v7648_v41, 1  ;;  %v3296_v10 = vshll.u32 %v7648_v41, 16  ;;  %v3294_v23 = vshrl.u32 %v7648_v41, 16  ;;  %v3303_v6 = vrot.slane %v3301_v27, 1 }
 0x3da   : > { %v2712_v33 = vmax.f32 %v2676_v60, 0.0  ;;  %v7667_v51 = vadd.f32 %v2508_v35, %v2409_v5 }
 0x3db   : > { %v2562_v45 = vpop.f32.mrf.mxu0  ;;  %v7654_v38 = vsel %vm1095_vm4, %v3506_v0, %v3507_v34  ;;  %v3298_v62 = vrot.slane %v3296_v10, 1 }
 0x3dc   : > { %v2894_v16 = vpack.c.bf16 %v2712_v33, %v2712_v33  ;;  %v2563_v30 = vadd.f32 %v2562_v45, %v7471_v22  ;;  %3969 = vmatmul.bf16.gmra.mxu3 %v7654_v38 }
 0x3dd   : > { %v3299_v11 = vor.u32 %v3298_v62, %v3294_v23 }
 0x3de   : > { %v2966_v55 = vunpack.c.l.b16 %v2894_v16  ;;  %v2637_v44 = vadd.f32 %v2563_v30, %v7325_v56  ;;  %2601 = vmatmul.bf16.gmra.mxu0 %v8764_v19  ;;  %v7669_v23 = vpop.f32.mrf.mxu2  ;;  %v5929_v30 = vld [vmem:[#allocation8 + $0x68] sm:$0xff] }
 0x3df   : > { %v7662_v60 = vsel %vm824_vm3, %v3299_v11, %v3303_v6  ;;  %4275 = vmatpush.bf16.msrb.mxu2 %v5929_v30 }
 0x3e0   : > { %8859 = vst [vmem:[#allocation75_spill] sm:$0xff] %v7662_v60  ;;  %v2997_v0 = vpack.c.b16 %v2966_v55, %v2965_v15  ;;  %3880 = vmatmul.bf16.gmra.mxu2 %v7662_v60  ;;  %v2677_v22 = vadd.f32 %v7556_v47, %v2637_v44  ;;  %v7671_v56 = vpop.f32.mrf.mxu3 }
 0x3e2   : > { %v3040_v34 = vshrl.u32 %v2997_v0, 16  ;;  %v3043_v45 = vshll.u32 %v2997_v0, 16  ;;  %v2713_v19 = vmax.f32 %v2677_v22, 0.0 }
 0x3e3   : > { %v2564_v10 = vpop.f32.mrf.mxu0 }
 0x3e4   : > { %v3042_v33 = vrot.slane %v3040_v34, 7  ;;  %v2565_v27 = vadd.f32 %v2564_v10, %v7480_v12  ;;  %v2895_v55 = vpack.c.bf16 %v2713_v19, %v2713_v19 }
 0x3e6   : > { %v2638_v62 = vadd.f32 %v2565_v27, %v7331_v20  ;;  %v3045_v15 = vor.u32 %v3043_v45, %v3042_v33  ;;  %v3195_v16 = vsel %vm6549_vm2, %v3042_v33, 0  ;;  %v2414_v27 = vpop.f32.mrf.mxu2  ;;  %v2967_v60 = vunpack.c.l.b16 %v2895_v55  ;;  %v5970_v55 = vld [vmem:[#allocation8 + $0x1b0] sm:$0xff] }
 0x3e7   : > { %v3510_v5 = vrot.slane %v3195_v16, 1  ;;  %v3313_v20 = vshll.u32 %v3195_v16, 16 }
 0x3e8   : > { %v2678_v11 = vadd.f32 %v7556_v47, %v2638_v62  ;;  %v7679_v6 = vsel %vm6549_vm2, 0, %v3045_v15  ;;  %v2513_v62 = vpop.f32.mrf.mxu3 }
 0x3e9   : > { %3796 = vmatmul.bf16.gmra.mxu1 %v7679_v6  ;;  %v3509_v12 = vrot.slane %v7679_v6, 1  ;;  %v3308_v35 = vshll.u32 %v7679_v6, 16  ;;  %v3306_v22 = vshrl.u32 %v7679_v6, 16  ;;  %v3315_v30 = vrot.slane %v3313_v20, 1 }
 0x3ea   : > { %v2714_v44 = vmax.f32 %v2678_v11, 0.0  ;;  %v5971_v11 = vld [vmem:[#allocation8 + $0x1b8] sm:$0xff] }
 0x3eb   : > { %v2567_v0 = vpop.f32.mrf.mxu0  ;;  %v7685_v34 = vsel %vm1095_vm4, %v3509_v12, %v3510_v5  ;;  %v3310_v10 = vrot.slane %v3308_v35, 1  ;;  %4663 = vmatpush.bf16.msra.mxu0 %v5971_v11 }
 0x3ec   : > { %v2896_v33 = vpack.c.bf16 %v2714_v44, %v2714_v44  ;;  %v2568_v45 = vadd.f32 %v2567_v0, %v7489_v17  ;;  %3974 = vmatmul.bf16.gmra.mxu3 %v7685_v34  ;;  %v2471_v17 = vadd.f32 %v7500_v42, %v7498_v1 }
 0x3ed   : > { %v3311_v15 = vor.u32 %v3310_v10, %v3306_v22  ;;  %v5921_v10 = vld [vmem:[#allocation8 + $0x28] sm:$0xff] }
 0x3ee   : > { %v2968_v16 = vunpack.c.l.b16 %v2896_v33  ;;  %v2639_v19 = vadd.f32 %v2568_v45, %v7339_v2  ;;  %2606 = vmatmul.bf16.gmra.mxu0 %v8768_v54  ;;  %v2061_v2 = vadd.f32 %v7319_v25, %v7345_v52  ;;  %v7701_v33 = vadd.f32 %v2513_v62, %v2414_v27  ;;  %4186 = vmatpush.bf16.msrb.mxu1 %v5921_v10  ;;  %v5969_v25 = vld [vmem:[#allocation8 + $0x1a8] sm:$0xff] }
 0x3ef   : > { %v7693_v12 = vsel %vm824_vm3, %v3311_v15, %v3315_v30  ;;  %4664 = vmatpush.bf16.msra.mxu0 %v5970_v55 }
 0x3f0   : > { %v2998_v5 = vpack.c.b16 %v2968_v16, %v2967_v60  ;;  %3885 = vmatmul.bf16.gmra.mxu2 %v7693_v12  ;;  %v2679_v20 = vadd.f32 %v7556_v47, %v2639_v19  ;;  %v7703_v60 = vpop.f32.mrf.mxu2  ;;  %v7705_v45 = vpop.f32.mrf.mxu3 }
 0x3f2   : > { %v3047_v35 = vshrl.u32 %v2998_v5, 16  ;;  %v3050_v0 = vshll.u32 %v2998_v5, 16  ;;  %v2715_v1 = vmax.f32 %v2679_v20, 0.0 }
 0x3f3   : > { %v2569_v44 = vpop.f32.mrf.mxu0  ;;  %4665 = vmatpush.bf16.msra.mxu0 %v5969_v25 }
 0x3f4   : > { %v3049_v54 = vrot.slane %v3047_v35, 7  ;;  %v2570_v22 = vadd.f32 %v2569_v44, %v2471_v17  ;;  %v2897_v5 = vpack.c.bf16 %v2715_v1, %v2715_v1  ;;  %v5968_v35 = vld [vmem:[#allocation8 + $0x1a0] sm:$0xff] }
 0x3f6   : > { %v2640_v42 = vadd.f32 %v2570_v22, %v2061_v2  ;;  %v3052_v15 = vor.u32 %v3050_v0, %v3049_v54  ;;  %v3196_v30 = vsel %vm6549_vm2, %v3049_v54, 0 }
 0x3f7   : > { %v3513_v62 = vrot.slane %v3196_v30, 1  ;;  %v3325_v11 = vshll.u32 %v3196_v30, 16  ;;  %4666 = vmatpush.bf16.msra.mxu0 %v5968_v35 }
 0x3f8   : > { %v2680_v52 = vadd.f32 %v7556_v47, %v2640_v42  ;;  %v7712_v16 = vsel %vm6549_vm2, 0, %v3052_v15  ;;  %v2419_v22 = vpop.f32.mrf.mxu2  ;;  %v2969_v15 = vunpack.c.l.b16 %v2897_v5  ;;  %v2518_v25 = vpop.f32.mrf.mxu3  ;;  %v5966_v5 = vld [vmem:[#allocation8 + $0x190] sm:$0xff] }
 0x3f9   : > { %3801 = vmatmul.bf16.gmra.mxu1 %v7712_v16  ;;  %v3512_v27 = vrot.slane %v7712_v16, 1  ;;  %v3320_v19 = vshll.u32 %v7712_v16, 16  ;;  %v3318_v2 = vshrl.u32 %v7712_v16, 16  ;;  %v3327_v42 = vrot.slane %v3325_v11, 1 }
 0x3fa   : > { %v2716_v17 = vmax.f32 %v2680_v52, 0.0  ;;  %v5967_v52 = vld [vmem:[#allocation8 + $0x198] sm:$0xff] }
 0x3fb   : > { %v2572_v20 = vpop.f32.mrf.mxu0  ;;  %v7718_v55 = vsel %vm1095_vm4, %v3512_v27, %v3513_v62  ;;  %v3322_v44 = vrot.slane %v3320_v19, 1  ;;  %4667 = vmatpush.bf16.msra.mxu0 %v5967_v52 }
 0x3fc   : > { %v2898_v54 = vpack.c.bf16 %v2716_v17, %v2716_v17  ;;  %v2573_v0 = vadd.f32 %v2572_v20, %v7507_v58  ;;  %3979 = vmatmul.bf16.gmra.mxu3 %v7718_v55  ;;  %v2476_v58 = vadd.f32 %v7518_v31, %v7516_v61  ;;  %v5928_v31 = vld [vmem:[#allocation8 + $0x60] sm:$0xff] }
 0x3fd   : > { %v3323_v10 = vor.u32 %v3322_v44, %v3318_v2  ;;  %v7734_v2 = vadd.f32 %v2518_v25, %v2419_v22  ;;  %4276 = vmatpush.bf16.msrb.mxu2 %v5928_v31  ;;  %v8860_v31 = vld [vmem:[#allocation34_spill] sm:$0xff] }
 0x3fe   : > { %v2970_v1 = vunpack.c.l.b16 %v2898_v54  ;;  %v2641_v30 = vadd.f32 %v2573_v0, %v7354_v21  ;;  %2611 = vmatmul.bf16.gmra.mxu0 %v8775_v3  ;;  %v2066_v21 = vadd.f32 %v7333_v40, %v7362_v29 }
 0x3ff   : > { %v7726_v27 = vsel %vm824_vm3, %v3323_v10, %v3327_v42  ;;  %4668 = vmatpush.bf16.msra.mxu0 %v5966_v5  ;;  %v5965_v42 = vld [vmem:[#allocation8 + $0x188] sm:$0xff] }
 0x400   : > { %v2999_v62 = vpack.c.b16 %v2970_v1, %v2969_v15  ;;  %3890 = vmatmul.bf16.gmra.mxu2 %v7726_v27  ;;  %v2681_v11 = vadd.f32 %v7556_v47, %v2641_v30  ;;  %v7736_v44 = vpop.f32.mrf.mxu2  ;;  %v7745_v29 = vpop.f32.mrf.mxu3 }
 0x402   : > { %v3054_v19 = vshrl.u32 %v2999_v62, 16  ;;  %v3057_v35 = vshll.u32 %v2999_v62, 16  ;;  %v2717_v54 = vmax.f32 %v2681_v11, 0.0 }
 0x403   : > { %v2574_v3 = vpop.f32.mrf.mxu0  ;;  %4669 = vmatpush.bf16.msra.mxu0 %v5965_v42 }
 0x404   : > { %v3056_v17 = vrot.slane %v3054_v19, 7  ;;  %v2575_v20 = vadd.f32 %v2574_v3, %v2476_v58  ;;  %v2899_v52 = vpack.c.bf16 %v2717_v54, %v2717_v54  ;;  %v5964_v58 = vld [vmem:[#allocation8 + $0x180] sm:$0xff] }
 0x406   : > { %v2642_v0 = vadd.f32 %v2575_v20, %v2066_v21  ;;  %v3059_v10 = vor.u32 %v3057_v35, %v3056_v17  ;;  %v3197_v61 = vsel %vm6549_vm2, %v3056_v17, 0 }
 0x407   : > { %v3516_v1 = vrot.slane %v3197_v61, 1  ;;  %v3337_v25 = vshll.u32 %v3197_v61, 16  ;;  %4670 = vmatpush.bf16.msra.mxu0 %v5964_v58 }
 0x408   : > { %v2682_v15 = vadd.f32 %v7556_v47, %v2642_v0  ;;  %v7743_v40 = vsel %vm6549_vm2, 0, %v3059_v10  ;;  %v2424_v35 = vpop.f32.mrf.mxu2  ;;  %v2971_v10 = vunpack.c.l.b16 %v2899_v52  ;;  %v8861_v52 = vld [vmem:[#allocation63_spill] sm:$0xff] }
 0x409   : > { %3806 = vmatmul.bf16.gmra.mxu1 %v7743_v40  ;;  %v3515_v22 = vrot.slane %v7743_v40, 1  ;;  %v3332_v30 = vshll.u32 %v7743_v40, 16  ;;  %v3330_v5 = vshrl.u32 %v7743_v40, 16  ;;  %v3339_v0 = vrot.slane %v3337_v25, 1 }
 0x40a   : > { %v2718_v62 = vmax.f32 %v2682_v15, 0.0 }
 0x40b   : > { %v2577_v19 = vpop.f32.mrf.mxu0  ;;  %v7751_v11 = vsel %vm1095_vm4, %v3515_v22, %v3516_v1  ;;  %v3334_v21 = vrot.slane %v3332_v30, 1  ;;  %v2523_v22 = vpop.f32.mrf.mxu3 }
 0x40c   : > { %v2900_v3 = vpack.c.bf16 %v2718_v62, %v2718_v62  ;;  %v2578_v17 = vadd.f32 %v2577_v19, %v7524_v24  ;;  %3984 = vmatmul.bf16.gmra.mxu3 %v7751_v11  ;;  %v2481_v24 = vadd.f32 %v7529_v49, %v7527_v50  ;;  %v2071_v62 = vadd.f32 %v8861_v52, %v7376_v46 }
 0x40d   : > { %v3335_v20 = vor.u32 %v3334_v21, %v3330_v5  ;;  %v5920_v5 = vld [vmem:[#allocation8 + $0x20] sm:$0xff]  ;;  %v2182_v50 = vrot.slane %v7533_v32, 1  ;;  %v2183_v49 = vrot.slane %v7538_v48, 1 }
 0x40e   : > { %v2972_v54 = vunpack.c.l.b16 %v2900_v3  ;;  %v2643_v61 = vadd.f32 %v2578_v17, %v7371_v14  ;;  %2616 = vmatmul.bf16.gmra.mxu0 %v8860_v31  ;;  %4187 = vmatpush.bf16.msrb.mxu1 %v5920_v5 }
 0x40f   : > { %v7759_v42 = vsel %vm824_vm3, %v3335_v20, %v3339_v0 }
 0x410   : > { %v3000_v15 = vpack.c.b16 %v2972_v54, %v2971_v10  ;;  %3895 = vmatmul.bf16.gmra.mxu2 %v7759_v42  ;;  %v2683_v30 = vadd.f32 %v7556_v47, %v2643_v61  ;;  %v2426_v21 = vpop.f32.mrf.mxu2 }
 0x412   : > { %v3061_v1 = vshrl.u32 %v3000_v15, 16  ;;  %v3064_v58 = vshll.u32 %v3000_v15, 16  ;;  %v2719_v3 = vmax.f32 %v2683_v30, 0.0 }
 0x413   : > { %v2579_v25 = vpop.f32.mrf.mxu0  ;;  %v2525_v10 = vpop.f32.mrf.mxu3 }
 0x414   : > { %v3063_v14 = vrot.slane %v3061_v1, 7  ;;  %v2580_v19 = vadd.f32 %v2579_v25, %v2481_v24  ;;  %v2901_v22 = vpack.c.bf16 %v2719_v3, %v2719_v3  ;;  %v2184_v1 = vsel %vm1095_vm4, %v2182_v50, %v2183_v49  ;;  %v8864_v10 = vld [vmem:[#allocation40_spill] sm:$0xff] }
 0x416   : > { %v2644_v17 = vadd.f32 %v2580_v19, %v2071_v62  ;;  %v3066_v35 = vor.u32 %v3064_v58, %v3063_v14  ;;  %v3198_v20 = vsel %vm6549_vm2, %v3063_v14, 0  ;;  %v2973_v19 = vunpack.c.l.b16 %v2901_v22 }
 0x417   : > { %v3519_v61 = vrot.slane %v3198_v20, 1  ;;  %v3349_v15 = vshll.u32 %v3198_v20, 16  ;;  %v8863_v20 = vld [vmem:[#allocation72_spill] sm:$0xff] }
 0x418   : > { %v2684_v0 = vadd.f32 %v7556_v47, %v2644_v17  ;;  %v7774_v46 = vsel %vm6549_vm2, 0, %v3066_v35  ;;  %v8862_v35 = vld [vmem:[#allocation32_spill] sm:$0xff] }
 0x419   : > { %3811 = vmatmul.bf16.gmra.mxu1 %v7774_v46  ;;  %v3518_v54 = vrot.slane %v7774_v46, 1  ;;  %v3344_v31 = vshll.u32 %v7774_v46, 16  ;;  %v3342_v30 = vshrl.u32 %v7774_v46, 16  ;;  %v3351_v58 = vrot.slane %v3349_v15, 1 }
 0x41a   : > { %v2720_v24 = vmax.f32 %v2684_v0, 0.0  ;;  %v2486_v50 = vadd.f32 %v8863_v20, %v8862_v35 }
 0x41b   : > { %v2582_v32 = vpop.f32.mrf.mxu0  ;;  %v7780_v48 = vsel %vm1095_vm4, %v3518_v54, %v3519_v61  ;;  %v3346_v25 = vrot.slane %v3344_v31, 1  ;;  %v8865_v54 = vld [vmem:[#allocation64_spill] sm:$0xff] }
 0x41c   : > { %v2902_v52 = vpack.c.bf16 %v2720_v24, %v2720_v24  ;;  %v2583_v62 = vadd.f32 %v2582_v32, %v7545_v18  ;;  %3989 = vmatmul.bf16.gmra.mxu3 %v7780_v48  ;;  %v2076_v61 = vadd.f32 %v8865_v54, %v8864_v10 }
 0x41d   : > { %v3347_v14 = vor.u32 %v3346_v25, %v3342_v30  ;;  %v5927_v30 = vld [vmem:[#allocation8 + $0x58] sm:$0xff] }
 0x41e   : > { %v2974_v5 = vunpack.c.l.b16 %v2902_v52  ;;  %v2645_v21 = vadd.f32 %v2583_v62, %v7385_v7  ;;  %2621 = vmatmul.bf16.gmra.mxu0 %v2184_v1  ;;  %4277 = vmatpush.bf16.msrb.mxu2 %v5927_v30 }
 0x41f   : > { %v7788_v3 = vsel %vm824_vm3, %v3347_v14, %v3351_v58 }
 0x420   : > { %v3001_v17 = vpack.c.b16 %v2974_v5, %v2973_v19  ;;  %3900 = vmatmul.bf16.gmra.mxu2 %v7788_v3  ;;  %v2685_v18 = vadd.f32 %v7556_v47, %v2645_v21 }
 0x422   : > { %v3068_v49 = vshrl.u32 %v3001_v17, 16  ;;  %v3071_v15 = vshll.u32 %v3001_v17, 16  ;;  %v2721_v22 = vmax.f32 %v2685_v18, 0.0 }
 0x423   : > { %v2584_v0 = vpop.f32.mrf.mxu0 }
 0x424   : > { %v3070_v31 = vrot.slane %v3068_v49, 7  ;;  %v2585_v7 = vadd.f32 %v2584_v0, %v2486_v50  ;;  %v2903_v5 = vpack.c.bf16 %v2721_v22, %v2721_v22 }
 0x426   : > { %v2646_v24 = vadd.f32 %v2585_v7, %v2076_v61  ;;  %v3073_v32 = vor.u32 %v3071_v15, %v3070_v31  ;;  %v3199_v1 = vsel %vm6549_vm2, %v3070_v31, 0  ;;  %v2975_v54 = vunpack.c.l.b16 %v2903_v5  ;;  %v8866_v31 = vld [vmem:[#allocation70_spill] sm:$0xff] }
 0x427   : > { %v3522_v14 = vrot.slane %v3199_v1, 1  ;;  %v3361_v19 = vshll.u32 %v3199_v1, 16 }
 0x428   : > { %v2686_v25 = vadd.f32 %v7556_v47, %v2646_v24  ;;  %v7801_v52 = vsel %vm6549_vm2, 0, %v3073_v32  ;;  %v8868_v24 = vld [vmem:[#allocation73_spill] sm:$0xff]  ;;  %v8869_v32 = vld [vmem:[#allocation27_spill] sm:$0xff] }
 0x429   : > { %3816 = vmatmul.bf16.gmra.mxu1 %v7801_v52  ;;  %v3521_v62 = vrot.slane %v7801_v52, 1  ;;  %v3356_v58 = vshll.u32 %v7801_v52, 16  ;;  %v3354_v20 = vshrl.u32 %v7801_v52, 16  ;;  %v3363_v10 = vrot.slane %v3361_v19, 1 }
 0x42a   : > { %v2722_v21 = vmax.f32 %v2686_v25, 0.0  ;;  %v2491_v1 = vadd.f32 %v8869_v32, %v8868_v24 }
 0x42b   : > { %v2587_v17 = vpop.f32.mrf.mxu0  ;;  %v7807_v35 = vsel %vm1095_vm4, %v3521_v62, %v3522_v14  ;;  %v3358_v50 = vrot.slane %v3356_v58, 1  ;;  %v8870_v62 = vld [vmem:[#allocation37_spill] sm:$0xff]  ;;  %v8871_v14 = vld [vmem:[#allocation68_spill] sm:$0xff] }
 0x42c   : > { %v2904_v49 = vpack.c.bf16 %v2722_v21, %v2722_v21  ;;  %v2588_v18 = vadd.f32 %v2587_v17, %v7561_v43  ;;  %3994 = vmatmul.bf16.gmra.mxu3 %v7807_v35  ;;  %v2081_v58 = vadd.f32 %v8871_v14, %v8870_v62  ;;  %v5919_v17 = vld [vmem:[#allocation8 + $0x18] sm:$0xff] }
 0x42d   : > { %v3359_v0 = vor.u32 %v3358_v50, %v3354_v20  ;;  %4188 = vmatpush.bf16.msrb.mxu1 %v5919_v17  ;;  %v8873_v17 = vld [vmem:[#allocation47_spill] sm:$0xff] }
 0x42e   : > { %v2976_v61 = vunpack.c.l.b16 %v2904_v49  ;;  %v2647_v15 = vadd.f32 %v2588_v18, %v8866_v31  ;;  %4671 = vmatmul.bf16.vlgmr.msra.gmra.mxu0 %v7617_v13 }
 0x42f   : > { %v7815_v7 = vsel %vm824_vm3, %v3359_v0, %v3363_v10 }
 0x430   : > { %8867 = vst [vmem:[#allocation76_spill] sm:$0xff] %v7815_v7  ;;  %v3002_v22 = vpack.c.b16 %v2976_v61, %v2975_v54  ;;  %3905 = vmatmul.bf16.gmra.mxu2 %v7815_v7  ;;  %v2687_v30 = vadd.f32 %v7556_v47, %v2647_v15 }
 0x432   : > { %v3075_v43 = vshrl.u32 %v3002_v22, 16  ;;  %v3078_v5 = vshll.u32 %v3002_v22, 16  ;;  %v2723_v20 = vmax.f32 %v2687_v30, 0.0 }
 0x433   : > { %v2589_v25 = vpop.f32.mrf.mxu0 }
 0x434   : > { %v3077_v19 = vrot.slane %v3075_v43, 7  ;;  %v2590_v21 = vadd.f32 %v2589_v25, %v2491_v1  ;;  %v2905_v24 = vpack.c.bf16 %v2723_v20, %v2723_v20 }
 0x436   : > { %v2648_v50 = vadd.f32 %v2590_v21, %v2081_v58  ;;  %v3782_v49 = vpop.f32.mrf.mxu1  ;;  %v3080_v18 = vor.u32 %v3078_v5, %v3077_v19  ;;  %v3200_v0 = vsel %vm6549_vm2, %v3077_v19, 0  ;;  %v2977_v5 = vunpack.c.l.b16 %v2905_v24  ;;  %v8877_v24 = vld [vmem:[#allocation69_spill] sm:$0xff] }
 0x437   : > { %v3525_v31 = vrot.slane %v3200_v0, 1  ;;  %v3373_v22 = vshll.u32 %v3200_v0, 16 }
 0x438   : > { %v2688_v10 = vadd.f32 %v7556_v47, %v2648_v50  ;;  %v7828_v54 = vsel %vm6549_vm2, 0, %v3080_v18 }
 0x439   : > { %3821 = vmatmul.bf16.gmra.mxu1 %v7828_v54  ;;  %v3524_v61 = vrot.slane %v7828_v54, 1  ;;  %v3368_v15 = vshll.u32 %v7828_v54, 16  ;;  %v3366_v30 = vshrl.u32 %v7828_v54, 16  ;;  %v3375_v19 = vrot.slane %v3373_v22, 1  ;;  %v8876_v22 = vld [vmem:[#allocation46_spill] sm:$0xff] }
 0x43a   : > { %v2724_v32 = vmax.f32 %v2688_v10, 0.0 }
 0x43b   : > { %v2592_v1 = vpop.f32.mrf.mxu0  ;;  %v7834_v43 = vsel %vm1095_vm4, %v3524_v61, %v3525_v31  ;;  %v3370_v25 = vrot.slane %v3368_v15, 1 }
 0x43c   : > { %8872 = vst [vmem:[#allocation30_spill] sm:$0xff] %v7834_v43  ;;  %v2906_v62 = vpack.c.bf16 %v2724_v32, %v2724_v32  ;;  %v2593_v14 = vadd.f32 %v2592_v1, %v7574_v63  ;;  %3999 = vmatmul.bf16.gmra.mxu3 %v7834_v43  ;;  %v8875_v63 = vld [vmem:[#allocation65_spill] sm:$0xff]  ;;  %v2086_v32 = vadd.f32 %v8877_v24, %v8876_v22 }
 0x43d   : > { %v3371_v58 = vor.u32 %v3370_v25, %v3366_v30  ;;  %v2496_v61 = vadd.f32 %v8875_v63, %v7576_v39  ;;  %v5926_v39 = vld [vmem:[#allocation8 + $0x50] sm:$0xff] }
 0x43e   : > { %v2978_v21 = vunpack.c.l.b16 %v2906_v62  ;;  %v2649_v50 = vadd.f32 %v2593_v14, %v8873_v17  ;;  %v3784_v20 = vpop.f32.mrf.mxu1  ;;  %4676 = vmatmul.bf16.gmra.mxu0 %v7648_v41  ;;  %4278 = vmatpush.bf16.msrb.mxu2 %v5926_v39 }
 0x43f   : > { %v3960_v18 = vpop.f32.mrf.mxu3  ;;  %v7842_v0 = vsel %vm824_vm3, %v3371_v58, %v3375_v19 }
 0x440   : > { %8874 = vst [vmem:[#allocation71_spill] sm:$0xff] %v7842_v0  ;;  %v3003_v10 = vpack.c.b16 %v2978_v21, %v2977_v5  ;;  %3910 = vmatmul.bf16.gmra.mxu2 %v7842_v0  ;;  %v2689_v15 = vadd.f32 %v7556_v47, %v2649_v50 }
 0x442   : > { %v3082_v31 = vshrl.u32 %v3003_v10, 16  ;;  %v3085_v62 = vshll.u32 %v3003_v10, 16  ;;  %v2725_v58 = vmax.f32 %v2689_v15, 0.0 }
 0x443   : > { %v2594_v1 = vpop.f32.mrf.mxu0  ;;  %v3871_v30 = vpop.f32.mrf.mxu2 }
 0x444   : > { %v3084_v25 = vrot.slane %v3082_v31, 7  ;;  %v2595_v14 = vadd.f32 %v2594_v1, %v2496_v61  ;;  %v3872_v17 = vadd.f32 %v3871_v30, %v3782_v49  ;;  %v2907_v15 = vpack.c.bf16 %v2725_v58, %v2725_v58  ;;  %v8879_v58 = vld [vmem:[#allocation49_spill] sm:$0xff] }
 0x446   : > { %v2650_v19 = vadd.f32 %v2595_v14, %v2086_v32  ;;  %v3787_v5 = vpop.f32.mrf.mxu1  ;;  %v3087_v21 = vor.u32 %v3085_v62, %v3084_v25  ;;  %v3201_v0 = vsel %vm6549_vm2, %v3084_v25, 0  ;;  %v7852_v43 = vadd.f32 %v3960_v18, %v3872_v17 }
 0x447   : > { %v3962_v63 = vpop.f32.mrf.mxu3  ;;  %v3528_v10 = vrot.slane %v3201_v0, 1  ;;  %v3385_v31 = vshll.u32 %v3201_v0, 16  ;;  %v2979_v39 = vunpack.c.l.b16 %v2907_v15  ;;  %v8881_v15 = vld [vmem:[#allocation80_spill] sm:$0xff] }
 0x448   : > { %v2690_v50 = vadd.f32 %v7556_v47, %v2650_v19  ;;  %v7857_v22 = vsel %vm6549_vm2, 0, %v3087_v21 }
 0x449   : > { %3826 = vmatmul.bf16.gmra.mxu1 %v7857_v22  ;;  %v3527_v49 = vrot.slane %v7857_v22, 1  ;;  %v3380_v61 = vshll.u32 %v7857_v22, 16  ;;  %v3378_v30 = vshrl.u32 %v7857_v22, 16  ;;  %v3387_v21 = vrot.slane %v3385_v31, 1 }
 0x44a   : > { %v2726_v24 = vmax.f32 %v2690_v50, 0.0 }
 0x44b   : > { %v2597_v32 = vpop.f32.mrf.mxu0  ;;  %v3873_v18 = vpop.f32.mrf.mxu2  ;;  %v7863_v1 = vsel %vm1095_vm4, %v3527_v49, %v3528_v10  ;;  %v3382_v25 = vrot.slane %v3380_v61, 1 }
 0x44c   : > { %8878 = vst [vmem:[#allocation42_spill] sm:$0xff] %v7863_v1  ;;  %v2908_v62 = vpack.c.bf16 %v2726_v24, %v2726_v24  ;;  %v2598_v14 = vadd.f32 %v2597_v32, %v7605_v9  ;;  %v3874_v17 = vadd.f32 %v3873_v18, %v3784_v20  ;;  %4004 = vmatmul.bf16.gmra.mxu3 %v7863_v1  ;;  %v8882_v32 = vld [vmem:[#allocation44_spill] sm:$0xff] }
 0x44d   : > { %v3383_v19 = vor.u32 %v3382_v25, %v3378_v30  ;;  %v2501_v9 = vadd.f32 %v7609_v8, %v7607_v53  ;;  %v2091_v18 = vadd.f32 %v8882_v32, %v8881_v15 }
 0x44e   : > { %v2980_v0 = vunpack.c.l.b16 %v2908_v62  ;;  %v2651_v50 = vadd.f32 %v2598_v14, %v8879_v58  ;;  %v3789_v7 = vpop.f32.mrf.mxu1  ;;  %4681 = vmatmul.bf16.gmra.mxu0 %v7679_v6  ;;  %v7870_v49 = vadd.f32 %v3962_v63, %v3874_v17 }
 0x44f   : > { %v3965_v10 = vpop.f32.mrf.mxu3  ;;  %v7873_v61 = vsel %vm824_vm3, %v3383_v19, %v3387_v21  ;;  %v5918_v19 = vld [vmem:[#allocation8 + $0x10] sm:$0xff] }
 0x450   : > { %8880 = vst [vmem:[#allocation78_spill] sm:$0xff] %v7873_v61  ;;  %v3004_v24 = vpack.c.b16 %v2980_v0, %v2979_v39  ;;  %3915 = vmatmul.bf16.gmra.mxu2 %v7873_v61  ;;  %v2691_v31 = vadd.f32 %v7556_v47, %v2651_v50  ;;  %4189 = vmatpush.bf16.msrb.mxu1 %v5918_v19 }
 0x452   : > { %v3089_v20 = vshrl.u32 %v3004_v24, 16  ;;  %v3092_v62 = vshll.u32 %v3004_v24, 16  ;;  %v2727_v21 = vmax.f32 %v2691_v31, 0.0 }
 0x453   : > { %v2599_v30 = vpop.f32.mrf.mxu0  ;;  %v3876_v25 = vpop.f32.mrf.mxu2 }
 0x454   : > { %v3091_v63 = vrot.slane %v3089_v20, 7  ;;  %v2600_v14 = vadd.f32 %v2599_v30, %v2501_v9  ;;  %v3877_v17 = vadd.f32 %v3876_v25, %v3787_v5  ;;  %v2909_v32 = vpack.c.bf16 %v2727_v21, %v2727_v21  ;;  %v8884_v21 = vld [vmem:[#allocation52_spill] sm:$0xff] }
 0x456   : > { %v2652_v39 = vadd.f32 %v2600_v14, %v2091_v18  ;;  %v3792_v0 = vpop.f32.mrf.mxu1  ;;  %v3094_v58 = vor.u32 %v3092_v62, %v3091_v63  ;;  %v3202_v53 = vsel %vm6549_vm2, %v3091_v63, 0  ;;  %v7883_v50 = vadd.f32 %v3965_v10, %v3877_v17 }
 0x457   : > { %v3967_v8 = vpop.f32.mrf.mxu3  ;;  %v3531_v24 = vrot.slane %v3202_v53, 1  ;;  %v3397_v31 = vshll.u32 %v3202_v53, 16 }
 0x458   : > { %v2692_v15 = vadd.f32 %v7556_v47, %v2652_v39  ;;  %v7888_v20 = vsel %vm6549_vm2, 0, %v3094_v58  ;;  %v2981_v58 = vunpack.c.l.b16 %v2909_v32 }
 0x459   : > { %3831 = vmatmul.bf16.gmra.mxu1 %v7888_v20  ;;  %v3530_v5 = vrot.slane %v7888_v20, 1  ;;  %v3392_v9 = vshll.u32 %v7888_v20, 16  ;;  %v3390_v47 = vshrl.u32 %v7888_v20, 16  ;;  %v3399_v39 = vrot.slane %v3397_v31, 1  ;;  %v7912_v31 = vld [vmem:[%s8527_s3] ss:$0 sm:$0xff] }
 0x45a   : > { %v2728_v18 = vmax.f32 %v2692_v15, 0.0 }
 0x45b   : > { %v2602_v30 = vpop.f32.mrf.mxu0  ;;  %v3878_v25 = vpop.f32.mrf.mxu2  ;;  %v7894_v10 = vsel %vm1095_vm4, %v3530_v5, %v3531_v24  ;;  %v3394_v63 = vrot.slane %v3392_v9, 1 }
 0x45c   : > { %8883 = vst [vmem:[#allocation79_spill] sm:$0xff] %v7894_v10  ;;  %v2910_v62 = vpack.c.bf16 %v2728_v18, %v2728_v18  ;;  %v2603_v14 = vadd.f32 %v2602_v30, %v7636_v59  ;;  %v3879_v17 = vadd.f32 %v3878_v25, %v3789_v7  ;;  %4009 = vmatmul.bf16.gmra.mxu3 %v7894_v10  ;;  %v8887_v30 = vld [vmem:[#allocation50_spill] sm:$0xff] }
 0x45d   : > { %v3395_v19 = vor.u32 %v3394_v63, %v3390_v47  ;;  %v2506_v59 = vadd.f32 %v7640_v28, %v7638_v26 }
 0x45e   : > { %v2982_v53 = vunpack.c.l.b16 %v2910_v62  ;;  %v2653_v15 = vadd.f32 %v2603_v14, %v8884_v21  ;;  %v3794_v61 = vpop.f32.mrf.mxu1  ;;  %4686 = vmatmul.bf16.gmra.mxu0 %v7712_v16  ;;  %v7901_v5 = vadd.f32 %v3967_v8, %v3879_v17  ;;  %v8886_v8 = vld [vmem:[#allocation21_spill] sm:$0xff]  ;;  %v5925_v21 = vld [vmem:[#allocation8 + $0x48] sm:$0xff] }
 0x45f   : > { %v3970_v24 = vpop.f32.mrf.mxu3  ;;  %v7904_v9 = vsel %vm824_vm3, %v3395_v19, %v3399_v39  ;;  %v2096_v25 = vadd.f32 %v8887_v30, %v8886_v8  ;;  %4279 = vmatpush.bf16.msrb.mxu2 %v5925_v21 }
 0x460   : > { %8885 = vst [vmem:[#allocation35_spill] sm:$0xff] %v7904_v9  ;;  %v3005_v18 = vpack.c.b16 %v2982_v53, %v2981_v58  ;;  %3920 = vmatmul.bf16.gmra.mxu2 %v7904_v9  ;;  %v2693_v32 = vadd.f32 %v7912_v31, %v2653_v15 }
 0x462   : > { %v3096_v7 = vshrl.u32 %v3005_v18, 16  ;;  %v3099_v14 = vshll.u32 %v3005_v18, 16  ;;  %v2729_v39 = vmax.f32 %v2693_v32, 0.0 }
 0x463   : > { %v2604_v47 = vpop.f32.mrf.mxu0  ;;  %v3881_v63 = vpop.f32.mrf.mxu2 }
 0x464   : > { %v3098_v62 = vrot.slane %v3096_v7, 7  ;;  %v2605_v17 = vadd.f32 %v2604_v47, %v2506_v59  ;;  %v3882_v19 = vadd.f32 %v3881_v63, %v3792_v0  ;;  %v2911_v32 = vpack.c.bf16 %v2729_v39, %v2729_v39  ;;  %v8889_v39 = vld [vmem:[#allocation85_spill] sm:$0xff] }
 0x466   : > { %v2654_v58 = vadd.f32 %v2605_v17, %v2096_v25  ;;  %v3797_v26 = vpop.f32.mrf.mxu1  ;;  %v3101_v28 = vor.u32 %v3099_v14, %v3098_v62  ;;  %v3203_v53 = vsel %vm6549_vm2, %v3098_v62, 0  ;;  %v7919_v10 = vadd.f32 %v3970_v24, %v3882_v19 }
 0x467   : > { %v3972_v9 = vpop.f32.mrf.mxu3  ;;  %v3534_v18 = vrot.slane %v3203_v53, 1  ;;  %v3409_v7 = vshll.u32 %v3203_v53, 16  ;;  %v2983_v21 = vunpack.c.l.b16 %v2911_v32  ;;  %v8891_v32 = vld [vmem:[#allocation23_spill] sm:$0xff] }
 0x468   : > { %v2694_v15 = vadd.f32 %v7912_v31, %v2654_v58  ;;  %v7924_v8 = vsel %vm6549_vm2, 0, %v3101_v28 }
 0x469   : > { %3836 = vmatmul.bf16.gmra.mxu1 %v7924_v8  ;;  %v3533_v0 = vrot.slane %v7924_v8, 1  ;;  %v3404_v59 = vshll.u32 %v7924_v8, 16  ;;  %v3402_v63 = vshrl.u32 %v7924_v8, 16  ;;  %v3411_v28 = vrot.slane %v3409_v7, 1 }
 0x46a   : > { %v2730_v30 = vmax.f32 %v2694_v15, 0.0 }
 0x46b   : > { %v2607_v25 = vpop.f32.mrf.mxu0  ;;  %v3883_v24 = vpop.f32.mrf.mxu2  ;;  %v7930_v47 = vsel %vm1095_vm4, %v3533_v0, %v3534_v18  ;;  %v3406_v62 = vrot.slane %v3404_v59, 1 }
 0x46c   : > { %8888 = vst [vmem:[#allocation74_spill] sm:$0xff] %v7930_v47  ;;  %v2912_v14 = vpack.c.bf16 %v2730_v30, %v2730_v30  ;;  %v2608_v17 = vadd.f32 %v2607_v25, %v7667_v51  ;;  %v3884_v19 = vadd.f32 %v3883_v24, %v3794_v61  ;;  %4014 = vmatmul.bf16.gmra.mxu3 %v7930_v47  ;;  %v8892_v25 = vld [vmem:[#allocation53_spill] sm:$0xff] }
 0x46d   : > { %v3407_v58 = vor.u32 %v3406_v62, %v3402_v63  ;;  %v2511_v51 = vadd.f32 %v7671_v56, %v7669_v23  ;;  %v2101_v24 = vadd.f32 %v8892_v25, %v8891_v32 }
 0x46e   : > { %v2984_v53 = vunpack.c.l.b16 %v2912_v14  ;;  %v2655_v15 = vadd.f32 %v2608_v17, %v8889_v39  ;;  %v3799_v1 = vpop.f32.mrf.mxu1  ;;  %4691 = vmatmul.bf16.gmra.mxu0 %v7743_v40  ;;  %v7937_v0 = vadd.f32 %v3972_v9, %v3884_v19 }
 0x46f   : > { %v3975_v18 = vpop.f32.mrf.mxu3  ;;  %v7940_v59 = vsel %vm824_vm3, %v3407_v58, %v3411_v28  ;;  %v5917_v58 = vld [vmem:[#allocation8 + $0x8] sm:$0xff] }
 0x470   : > { %8890 = vst [vmem:[#allocation45_spill] sm:$0xff] %v7940_v59  ;;  %v3006_v30 = vpack.c.b16 %v2984_v53, %v2983_v21  ;;  %3925 = vmatmul.bf16.gmra.mxu2 %v7940_v59  ;;  %v2695_v7 = vadd.f32 %v7912_v31, %v2655_v15  ;;  %4190 = vmatpush.bf16.msrb.mxu1 %v5917_v58 }
 0x472   : > { %v3103_v61 = vshrl.u32 %v3006_v30, 16  ;;  %v3106_v14 = vshll.u32 %v3006_v30, 16  ;;  %v2731_v28 = vmax.f32 %v2695_v7, 0.0 }
 0x473   : > { %v2609_v63 = vpop.f32.mrf.mxu0  ;;  %v3886_v62 = vpop.f32.mrf.mxu2 }
 0x474   : > { %v3105_v9 = vrot.slane %v3103_v61, 7  ;;  %v2610_v17 = vadd.f32 %v2609_v63, %v2511_v51  ;;  %v3887_v19 = vadd.f32 %v3886_v62, %v3797_v26  ;;  %v2913_v25 = vpack.c.bf16 %v2731_v28, %v2731_v28 }
 0x476   : > { %v2656_v21 = vadd.f32 %v2610_v17, %v2101_v24  ;;  %v3802_v53 = vpop.f32.mrf.mxu1  ;;  %v3108_v39 = vor.u32 %v3106_v14, %v3105_v9  ;;  %v3204_v23 = vsel %vm6549_vm2, %v3105_v9, 0  ;;  %v7950_v15 = vadd.f32 %v3975_v18, %v3887_v19 }
 0x477   : > { %v3977_v56 = vpop.f32.mrf.mxu3  ;;  %v3537_v30 = vrot.slane %v3204_v23, 1  ;;  %v3421_v7 = vshll.u32 %v3204_v23, 16  ;;  %v2985_v23 = vunpack.c.l.b16 %v2913_v25 }
 0x478   : > { %8893 = vst [vmem:[#allocation82_spill] sm:$0xff] %v7950_v15  ;;  %v2696_v32 = vadd.f32 %v7912_v31, %v2656_v21  ;;  %v7955_v61 = vsel %vm6549_vm2, 0, %v3108_v39  ;;  %v5939_v21 = vld [vmem:[#allocation8 + $0xb8] sm:$0xff] }
 0x479   : > { %3841 = vmatmul.bf16.gmra.mxu1 %v7955_v61  ;;  %v3536_v26 = vrot.slane %v7955_v61, 1  ;;  %v3416_v51 = vshll.u32 %v7955_v61, 16  ;;  %v3414_v9 = vshrl.u32 %v7955_v61, 16  ;;  %v3423_v59 = vrot.slane %v3421_v7, 1  ;;  %4362 = vmatpush.bf16.msra.mxu3 %v5939_v21 }
 0x47a   : > { %v2732_v24 = vmax.f32 %v2696_v32, 0.0  ;;  %v8895_v32 = vld [vmem:[#allocation88_spill] sm:$0xff]  ;;  %v2516_v7 = vadd.f32 %v7705_v45, %v7703_v60 }
 0x47b   : > { %v2612_v63 = vpop.f32.mrf.mxu0  ;;  %v3888_v62 = vpop.f32.mrf.mxu2  ;;  %v7961_v18 = vsel %vm1095_vm4, %v3536_v26, %v3537_v30  ;;  %v3418_v14 = vrot.slane %v3416_v51, 1 }
 0x47c   : > { %8894 = vst [vmem:[#allocation77_spill] sm:$0xff] %v7961_v18  ;;  %v2914_v17 = vpack.c.bf16 %v2732_v24, %v2732_v24  ;;  %v2613_v19 = vadd.f32 %v2612_v63, %v7701_v33  ;;  %v3889_v58 = vadd.f32 %v3888_v62, %v3799_v1  ;;  %4019 = vmatmul.bf16.gmra.mxu3 %v7961_v18  ;;  %v5924_v1 = vld [vmem:[#allocation8 + $0x40] sm:$0xff]  ;;  %v5938_v24 = vld [vmem:[#allocation8 + $0xb0] sm:$0xff] }
 0x47d   : > { %v3419_v39 = vor.u32 %v3418_v14, %v3414_v9  ;;  %4280 = vmatpush.bf16.msrb.mxu2 %v5924_v1  ;;  %4363 = vmatpush.bf16.msra.mxu3 %v5938_v24  ;;  %v8897_v62 = vld [vmem:[#allocation89_spill] sm:$0xff] }
 0x47e   : > { %v2986_v28 = vunpack.c.l.b16 %v2914_v17  ;;  %v2657_v47 = vadd.f32 %v2613_v19, %v8895_v32  ;;  %v3804_v15 = vpop.f32.mrf.mxu1  ;;  %4696 = vmatmul.bf16.gmra.mxu0 %v7774_v46  ;;  %v7968_v26 = vadd.f32 %v3977_v56, %v3889_v58  ;;  %v8898_v56 = vld [vmem:[#allocation55_spill] sm:$0xff] }
 0x47f   : > { %v3980_v30 = vpop.f32.mrf.mxu3  ;;  %v7971_v51 = vsel %vm824_vm3, %v3419_v39, %v3423_v59  ;;  %v2106_v9 = vadd.f32 %v8898_v56, %v8897_v62  ;;  %v5916_v39 = vld [vmem:[#allocation8] sm:$0xff] }
 0x480   : > { %8896 = vst [vmem:[#allocation20_spill] sm:$0xff] %v7971_v51  ;;  %v3007_v33 = vpack.c.b16 %v2986_v28, %v2985_v23  ;;  %3930 = vmatmul.bf16.gmra.mxu2 %v7971_v51  ;;  %v2697_v63 = vadd.f32 %v7912_v31, %v2657_v47  ;;  %v5937_v23 = vld [vmem:[#allocation8 + $0xa8] sm:$0xff]  ;;  %4191 = vmatpush.bf16.msrb.mxu1 %v5916_v39 }
 0x481   : > { %4364 = vmatpush.bf16.msra.mxu3 %v5937_v23  ;;  %v5935_v23 = vld [vmem:[#allocation8 + $0x98] sm:$0xff] }
 0x482   : > { %v3110_v25 = vshrl.u32 %v3007_v33, 16  ;;  %v3113_v19 = vshll.u32 %v3007_v33, 16  ;;  %v2733_v28 = vmax.f32 %v2697_v63, 0.0 }
 0x483   : > { %v2614_v14 = vpop.f32.mrf.mxu0  ;;  %v3891_v17 = vpop.f32.mrf.mxu2 }
 0x484   : > { %v3112_v59 = vrot.slane %v3110_v25, 7  ;;  %v2615_v58 = vadd.f32 %v2614_v14, %v2516_v7  ;;  %v3892_v21 = vadd.f32 %v3891_v17, %v3802_v53  ;;  %v5936_v53 = vld [vmem:[#allocation8 + $0xa0] sm:$0xff]  ;;  %v2915_v56 = vpack.c.bf16 %v2733_v28, %v2733_v28 }
 0x485   : > { %4365 = vmatpush.bf16.msra.mxu3 %v5936_v53 }
 0x486   : > { %v2658_v32 = vadd.f32 %v2615_v58, %v2106_v9  ;;  %v3807_v51 = vpop.f32.mrf.mxu1  ;;  %v3115_v60 = vor.u32 %v3113_v19, %v3112_v59  ;;  %v3205_v45 = vsel %vm6549_vm2, %v3112_v59, 0  ;;  %v7981_v1 = vadd.f32 %v3980_v30, %v3892_v21 }
 0x487   : > { %v3982_v47 = vpop.f32.mrf.mxu3  ;;  %v3540_v25 = vrot.slane %v3205_v45, 1  ;;  %v3433_v62 = vshll.u32 %v3205_v45, 16  ;;  %v2987_v28 = vunpack.c.l.b16 %v2915_v56 }
 0x488   : > { %v2698_v24 = vadd.f32 %v7912_v31, %v2658_v32  ;;  %v7986_v33 = vsel %vm6549_vm2, 0, %v3115_v60 }
 0x489   : > { %3846 = vmatmul.bf16.gmra.mxu1 %v7986_v33  ;;  %v3539_v7 = vrot.slane %v7986_v33, 1  ;;  %v3428_v63 = vshll.u32 %v7986_v33, 16  ;;  %v3426_v59 = vshrl.u32 %v7986_v33, 16  ;;  %v3435_v60 = vrot.slane %v3433_v62, 1  ;;  %4366 = vmatpush.bf16.msra.mxu3 %v5935_v23 }
 0x48a   : > { %v2734_v9 = vmax.f32 %v2698_v24, 0.0  ;;  %v8899_v24 = vld [vmem:[#allocation25_spill] sm:$0xff]  ;;  %v2521_v62 = vadd.f32 %v7745_v29, %v7736_v44 }
 0x48b   : > { %v2617_v30 = vpop.f32.mrf.mxu0  ;;  %v3893_v14 = vpop.f32.mrf.mxu2  ;;  %v7992_v17 = vsel %vm1095_vm4, %v3539_v7, %v3540_v25  ;;  %v3430_v19 = vrot.slane %v3428_v63, 1 }
 0x48c   : > { %v2916_v58 = vpack.c.bf16 %v2734_v9, %v2734_v9  ;;  %v2618_v21 = vadd.f32 %v2617_v30, %v7734_v2  ;;  %v3894_v39 = vadd.f32 %v3893_v14, %v3804_v15  ;;  %4024 = vmatmul.bf16.gmra.mxu3 %v7992_v17  ;;  %v5934_v15 = vld [vmem:[#allocation8 + $0x90] sm:$0xff] }
 0x48d   : > { %v3431_v32 = vor.u32 %v3430_v19, %v3426_v59  ;;  %4367 = vmatpush.bf16.msra.mxu3 %v5934_v15  ;;  %v8901_v30 = vld [vmem:[#allocation61_spill] sm:$0xff] }
 0x48e   : > { %v2988_v45 = vunpack.c.l.b16 %v2916_v58  ;;  %v2659_v53 = vadd.f32 %v2618_v21, %v8899_v24  ;;  %v3809_v18 = vpop.f32.mrf.mxu1  ;;  %4701 = vmatmul.bf16.gmra.mxu0 %v7801_v52  ;;  %v7999_v7 = vadd.f32 %v3982_v47, %v3894_v39  ;;  %v8902_v14 = vld [vmem:[#allocation57_spill] sm:$0xff] }
 0x48f   : > { %v3985_v25 = vpop.f32.mrf.mxu3  ;;  %v8002_v63 = vsel %vm824_vm3, %v3431_v32, %v3435_v60  ;;  %v2111_v59 = vadd.f32 %v8902_v14, %v8901_v30  ;;  %v5933_v32 = vld [vmem:[#allocation8 + $0x88] sm:$0xff] }
 0x490   : > { %8900 = vst [vmem:[#allocation83_spill] sm:$0xff] %v8002_v63  ;;  %v3008_v2 = vpack.c.b16 %v2988_v45, %v2987_v28  ;;  %3935 = vmatmul.bf16.gmra.mxu2 %v8002_v63  ;;  %v2699_v9 = vadd.f32 %v7912_v31, %v2659_v53 }
 0x491   : > { %4368 = vmatpush.bf16.msra.mxu3 %v5933_v32 }
 0x492   : > { %v3117_v56 = vshrl.u32 %v3008_v2, 16  ;;  %v3120_v21 = vshll.u32 %v3008_v2, 16  ;;  %v2735_v60 = vmax.f32 %v2699_v9, 0.0  ;;  %v6357_v2 = vmov 0.0|0.0  }
 0x493   : > { %v2619_v47 = vpop.f32.mrf.mxu0  ;;  %v3896_v19 = vpop.f32.mrf.mxu2 }
 0x494   : > { %v3119_v58 = vrot.slane %v3117_v56, 7  ;;  %v2620_v39 = vadd.f32 %v2619_v47, %v2521_v62  ;;  %v3897_v23 = vadd.f32 %v3896_v19, %v3807_v51  ;;  %v2957_v51 = vunpack.c.l.b16 %v6357_v2  ;;  %v5932_v62 = vld [vmem:[#allocation8 + $0x80] sm:$0xff] }
 0x495   : > { %v2917_v47 = vpack.c.bf16 %v2735_v60, %v2735_v60  ;;  %4369 = vmatpush.bf16.msra.mxu3 %v5932_v62 }
 0x496   : > { %v2660_v28 = vadd.f32 %v2620_v39, %v2111_v59  ;;  %v3812_v45 = vpop.f32.mrf.mxu1  ;;  %v3122_v24 = vor.u32 %v3120_v21, %v3119_v58  ;;  %v3206_v44 = vsel %vm6549_vm2, %v3119_v58, 0  ;;  %v8012_v53 = vadd.f32 %v3985_v25, %v3897_v23 }
 0x497   : > { %v3987_v29 = vpop.f32.mrf.mxu3  ;;  %v3543_v30 = vrot.slane %v3206_v44, 1  ;;  %v3445_v59 = vshll.u32 %v3206_v44, 16  ;;  %v2993_v2 = vpack.c.b16 %v2957_v51, %v2957_v51  ;;  %v2989_v63 = vunpack.c.l.b16 %v2917_v47 }
 0x498   : > { %v2700_v15 = vadd.f32 %v7912_v31, %v2660_v28  ;;  %v8017_v56 = vsel %vm6549_vm2, 0, %v3122_v24 }
 0x499   : > { %3851 = vmatmul.bf16.gmra.mxu1 %v8017_v56  ;;  %v3542_v9 = vrot.slane %v8017_v56, 1  ;;  %v3440_v14 = vshll.u32 %v8017_v56, 16  ;;  %v3438_v21 = vshrl.u32 %v8017_v56, 16  ;;  %v3447_v24 = vrot.slane %v3445_v59, 1 }
 0x49a   : > { %v2736_v25 = vmax.f32 %v2700_v15, 0.0 }
 0x49b   : > { %v2622_v19 = vpop.f32.mrf.mxu0  ;;  %v3898_v31 = vpop.f32.mrf.mxu2  ;;  %v8023_v58 = vsel %vm1095_vm4, %v3542_v9, %v3543_v30  ;;  %v3442_v39 = vrot.slane %v3440_v14, 1  ;;  %v3012_v14 = vshrl.u32 %v2993_v2, 16 }
 0x49c   : > { %v2918_v23 = vpack.c.bf16 %v2736_v25, %v2736_v25  ;;  %v3899_v32 = vadd.f32 %v3898_v31, %v3809_v18  ;;  %4029 = vmatmul.bf16.gmra.mxu3 %v8023_v58  ;;  %v5987_v18 = vld [vmem:[#allocation8 + $0x238] sm:$0xff] }
 0x49d   : > { %v3443_v28 = vor.u32 %v3442_v39, %v3438_v21  ;;  %4841 = vmatpush.bf16.msra.mxu2 %v5987_v18  ;;  %v5979_v21 = vld [vmem:[#allocation8 + $0x1f8] sm:$0xff]  ;;  %v3014_v39 = vrot.slane %v3012_v14, 7 }
 0x49e   : > { %v2990_v44 = vunpack.c.l.b16 %v2918_v23  ;;  %v3814_v60 = vpop.f32.mrf.mxu1  ;;  %4706 = vmatmul.bf16.gmra.mxu0 %v7828_v54  ;;  %v8028_v15 = vadd.f32 %v3987_v29, %v3899_v32  ;;  %4752 = vmatpush.bf16.msra.mxu1 %v5979_v21 }
 0x49f   : > { %v3990_v62 = vpop.f32.mrf.mxu3  ;;  %v8031_v9 = vsel %vm824_vm3, %v3443_v28, %v3447_v24  ;;  %v3015_v28 = vshll.u32 %v2993_v2, 16 }
 0x4a0   : > { %v3009_v30 = vpack.c.b16 %v2990_v44, %v2989_v63  ;;  %3940 = vmatmul.bf16.gmra.mxu2 %v8031_v9 }
 0x4a2   : > { %v3124_v25 = vshrl.u32 %v3009_v30, 16  ;;  %v3127_v31 = vshll.u32 %v3009_v30, 16 }
 0x4a3   : > { %v2624_v59 = vpop.f32.mrf.mxu0  ;;  %v3901_v51 = vpop.f32.mrf.mxu2 }
 0x4a4   : > { %v3902_v47 = vadd.f32 %v3901_v51, %v3812_v45  ;;  %v3126_v19 = vrot.slane %v3124_v25, 7  ;;  %v3017_v25 = vor.u32 %v3015_v28, %v3014_v39 }
 0x4a6   : > { %v3817_v29 = vpop.f32.mrf.mxu1  ;;  %v3129_v23 = vor.u32 %v3127_v31, %v3126_v19  ;;  %v3207_v32 = vsel %vm6549_vm2, %v3126_v19, 0  ;;  %v8036_v63 = vadd.f32 %v3990_v62, %v3902_v47 }
 0x4a7   : > { %v3992_v24 = vpop.f32.mrf.mxu3  ;;  %v3626_v30 = vrot.slane %v3207_v32, 1  ;;  %v3618_v14 = vshll.u32 %v3207_v32, 16 }
 0x4a8   : > { %v8040_v44 = vsel %vm6549_vm2, 0, %v3129_v23  ;;  %v8053_v23 = vsel %vm6549_vm2, 0, %v3017_v25 }
 0x4a9   : > { %3856 = vmatmul.bf16.gmra.mxu1 %v8040_v44  ;;  %v3625_v45 = vrot.slane %v8040_v44, 1  ;;  %v3613_v18 = vshll.u32 %v8040_v44, 16  ;;  %v3611_v62 = vshrl.u32 %v8040_v44, 16  ;;  %v3620_v31 = vrot.slane %v3618_v14, 1 }
 0x4aa   : > { %v3497_v25 = vrot.slane %v8053_v23, 1 }
 0x4ab   : > { %v3903_v59 = vpop.f32.mrf.mxu2  ;;  %v8046_v2 = vsel %vm1095_vm4, %v3625_v45, %v3626_v30  ;;  %v3615_v51 = vrot.slane %v3613_v18, 1  ;;  %v3191_v30 = vsel %vm6549_vm2, %v3014_v39, 0 }
 0x4ac   : > { %8903 = vst [vmem:[#allocation48_spill] sm:$0xff] %v8046_v2  ;;  %v3904_v47 = vadd.f32 %v3903_v59, %v3814_v60  ;;  %4034 = vmatmul.bf16.gmra.mxu3 %v8046_v2  ;;  %v3260_v60 = vshll.u32 %v8053_v23, 16  ;;  %v3258_v59 = vshrl.u32 %v8053_v23, 16 }
 0x4ad   : > { %v3616_v19 = vor.u32 %v3615_v51, %v3611_v62  ;;  %v3498_v62 = vrot.slane %v3191_v30, 1  ;;  %v3265_v51 = vshll.u32 %v3191_v30, 16 }
 0x4ae   : > { %v3819_v21 = vpop.f32.mrf.mxu1  ;;  %4711 = vmatmul.bf16.gmra.mxu0 %v7857_v22  ;;  %v8055_v32 = vadd.f32 %v3992_v24, %v3904_v47  ;;  %v3262_v24 = vrot.slane %v3260_v60, 1 }
 0x4af   : > { %v3995_v28 = vpop.f32.mrf.mxu3  ;;  %v8058_v45 = vsel %vm824_vm3, %v3616_v19, %v3620_v31  ;;  %v8070_v31 = vsel %vm1095_vm4, %v3497_v25, %v3498_v62  ;;  %v3267_v39 = vrot.slane %v3265_v51, 1  ;;  %v5978_v62 = vld [vmem:[#allocation8 + $0x1f0] sm:$0xff] }
 0x4b0   : > { %8904 = vst [vmem:[#allocation81_spill] sm:$0xff] %v8058_v45  ;;  %3945 = vmatmul.bf16.gmra.mxu2 %v8058_v45  ;;  %v3263_v37 = vor.u32 %v3262_v24, %v3258_v59  ;;  %4753 = vmatpush.bf16.msra.mxu1 %v5978_v62 }
 0x4b1   : > { %8905 = vst [vmem:[#allocation22_spill] sm:$0xff] %v8070_v31 }
 0x4b3   : > { %v3906_v18 = vpop.f32.mrf.mxu2 }
 0x4b4   : > { %v3907_v14 = vadd.f32 %v3906_v18, %v3817_v29  ;;  %v8074_v18 = vsel %vm824_vm3, %v3263_v37, %v3267_v39 }
 0x4b5   : > { %8906 = vst [vmem:[#allocation86_spill] sm:$0xff] %v8074_v18 }
 0x4b6   : > { %v3822_v47 = vpop.f32.mrf.mxu1  ;;  %v8066_v2 = vadd.f32 %v3995_v28, %v3907_v14  ;;  %v5986_v14 = vld [vmem:[#allocation8 + $0x230] sm:$0xff] }
 0x4b7   : > { %v3997_v19 = vpop.f32.mrf.mxu3  ;;  %4842 = vmatpush.bf16.msra.mxu2 %v5986_v14  ;;  %v8907_v14 = vld [vmem:[#allocation67_spill] sm:$0xff] }
 0x4b9   : > { %4192 = vmatmul.bf16.vlgmr.msrb.gmra.mxu1 %v8053_v23 }
 0x4bb   : > { %v3908_v45 = vpop.f32.mrf.mxu2 }
 0x4bc   : > { %v3909_v29 = vadd.f32 %v3908_v45, %v3819_v21  ;;  %4370 = vmatmul.bf16.vlgmr.msra.gmra.mxu3 %v8070_v31  ;;  %v8090_v31 = vpop.f32.mrf.mxu0 }
 0x4bd   : > { %8908 = vst [vmem:[#allocation51_spill] sm:$0xff] %v8090_v31 }
 0x4be   : > { %v3824_v60 = vpop.f32.mrf.mxu1  ;;  %4716 = vmatmul.bf16.gmra.mxu0 %v7888_v20  ;;  %v8077_v28 = vadd.f32 %v3997_v19, %v3909_v29 }
 0x4bf   : > { %v4000_v30 = vpop.f32.mrf.mxu3 }
 0x4c0   : > { %4281 = vmatmul.bf16.vlgmr.msrb.gmra.mxu2 %v8074_v18 }
 0x4c3   : > { %v3911_v25 = vpop.f32.mrf.mxu2 }
 0x4c4   : > { %v3912_v59 = vadd.f32 %v3911_v25, %v3822_v47 }
 0x4c6   : > { %v3827_v24 = vpop.f32.mrf.mxu1  ;;  %v8080_v21 = vadd.f32 %v4000_v30, %v3912_v59 }
 0x4c7   : > { %v4002_v45 = vpop.f32.mrf.mxu3 }
 0x4c9   : > { %4197 = vmatmul.bf16.gmra.mxu1 %v7586_v36 }
 0x4cb   : > { %v3913_v51 = vpop.f32.mrf.mxu2 }
 0x4cc   : > { %v3914_v37 = vadd.f32 %v3913_v51, %v3824_v60  ;;  %4375 = vmatmul.bf16.gmra.mxu3 %v7593_v4 }
 0x4ce   : > { %v3829_v19 = vpop.f32.mrf.mxu1  ;;  %4721 = vmatmul.bf16.gmra.mxu0 %v7924_v8  ;;  %v8085_v39 = vadd.f32 %v4002_v45, %v3914_v37  ;;  %v8909_v37 = vld [vmem:[#allocation38_spill] sm:$0xff] }
 0x4cf   : > { %v4005_v29 = vpop.f32.mrf.mxu3 }
 0x4d0   : > { %4286 = vmatmul.bf16.gmra.mxu2 %v8907_v14 }
 0x4d3   : > { %v3916_v47 = vpop.f32.mrf.mxu2 }
 0x4d4   : > { %v3917_v25 = vadd.f32 %v3916_v47, %v3827_v24  ;;  %v5985_v24 = vld [vmem:[#allocation8 + $0x228] sm:$0xff] }
 0x4d5   : > { %4843 = vmatpush.bf16.msra.mxu2 %v5985_v24 }
 0x4d6   : > { %v3832_v62 = vpop.f32.mrf.mxu1  ;;  %v8088_v30 = vadd.f32 %v4005_v29, %v3917_v25  ;;  %v8098_v29 = vpop.f32.mrf.mxu0  ;;  %v5977_v25 = vld [vmem:[#allocation8 + $0x1e8] sm:$0xff] }
 0x4d7   : > { %v4007_v59 = vpop.f32.mrf.mxu3  ;;  %8910 = vst [vmem:[#allocation84_spill] sm:$0xff] %v8098_v29  ;;  %4754 = vmatpush.bf16.msra.mxu1 %v5977_v25 }
 0x4d9   : > { %4202 = vmatmul.bf16.gmra.mxu1 %v7617_v13 }
 0x4db   : > { %v3918_v36 = vpop.f32.mrf.mxu2 }
 0x4dc   : > { %v3919_v4 = vadd.f32 %v3918_v36, %v3829_v19  ;;  %4380 = vmatmul.bf16.gmra.mxu3 %v7623_v57 }
 0x4de   : > { %v3834_v60 = vpop.f32.mrf.mxu1  ;;  %4726 = vmatmul.bf16.gmra.mxu0 %v7955_v61  ;;  %v8095_v45 = vadd.f32 %v4007_v59, %v3919_v4  ;;  %v8103_v59 = vpop.f32.mrf.mxu0 }
 0x4df   : > { %v4010_v51 = vpop.f32.mrf.mxu3  ;;  %8912 = vst [vmem:[#allocation90_spill] sm:$0xff] %v8103_v59 }
 0x4e0   : > { %4291 = vmatmul.bf16.gmra.mxu2 %v8909_v37 }
 0x4e3   : > { %v3921_v14 = vpop.f32.mrf.mxu2 }
 0x4e4   : > { %v3922_v47 = vadd.f32 %v3921_v14, %v3832_v62  ;;  %v8914_v14 = vld [vmem:[#allocation75_spill] sm:$0xff] }
 0x4e6   : > { %v3837_v13 = vpop.f32.mrf.mxu1  ;;  %v8100_v19 = vadd.f32 %v4010_v51, %v3922_v47  ;;  %v8110_v47 = vpop.f32.mrf.mxu0 }
 0x4e7   : > { %v4012_v36 = vpop.f32.mrf.mxu3  ;;  %8915 = vst [vmem:[#allocation99_spill] sm:$0xff] %v8110_v47 }
 0x4e8   : > { %8911 = vst [vmem:[#allocation24_spill] sm:$0xff] %v8100_v19 }
 0x4e9   : > { %4207 = vmatmul.bf16.gmra.mxu1 %v7648_v41 }
 0x4eb   : > { %v3923_v18 = vpop.f32.mrf.mxu2 }
 0x4ec   : > { %v3924_v4 = vadd.f32 %v3923_v18, %v3834_v60  ;;  %4385 = vmatmul.bf16.gmra.mxu3 %v7654_v38 }
 0x4ee   : > { %v3839_v31 = vpop.f32.mrf.mxu1  ;;  %4731 = vmatmul.bf16.gmra.mxu0 %v7986_v33  ;;  %v8107_v24 = vadd.f32 %v4012_v36, %v3924_v4 }
 0x4ef   : > { %v4015_v62 = vpop.f32.mrf.mxu3 }
 0x4f0   : > { %8913 = vst [vmem:[#allocation54_spill] sm:$0xff] %v8107_v24  ;;  %4296 = vmatmul.bf16.gmra.mxu2 %v8914_v14  ;;  %v8119_v24 = vpop.f32.mrf.mxu0 }
 0x4f1   : > { %8916 = vst [vmem:[#allocation91_spill] sm:$0xff] %v8119_v24 }
 0x4f3   : > { %v3926_v25 = vpop.f32.mrf.mxu2 }
 0x4f4   : > { %v3927_v51 = vadd.f32 %v3926_v25, %v3837_v13  ;;  %v5984_v13 = vld [vmem:[#allocation8 + $0x220] sm:$0xff] }
 0x4f5   : > { %4844 = vmatpush.bf16.msra.mxu2 %v5984_v13 }
 0x4f6   : > { %v3842_v29 = vpop.f32.mrf.mxu1  ;;  %v8112_v41 = vadd.f32 %v4015_v62, %v3927_v51  ;;  %v5976_v51 = vld [vmem:[#allocation8 + $0x1e0] sm:$0xff] }
 0x4f7   : > { %v4017_v19 = vpop.f32.mrf.mxu3  ;;  %4755 = vmatpush.bf16.msra.mxu1 %v5976_v51 }
 0x4f8   : > { %v8125_v47 = vpop.f32.mrf.mxu0 }
 0x4f9   : > { %4212 = vmatmul.bf16.gmra.mxu1 %v7679_v6  ;;  %8917 = vst [vmem:[#allocation87_spill] sm:$0xff] %v8125_v47 }
 0x4fb   : > { %v3928_v18 = vpop.f32.mrf.mxu2 }
 0x4fc   : > { %v3929_v60 = vadd.f32 %v3928_v18, %v3839_v31  ;;  %4390 = vmatmul.bf16.gmra.mxu3 %v7685_v34 }
 0x4fe   : > { %v3844_v59 = vpop.f32.mrf.mxu1  ;;  %4736 = vmatmul.bf16.gmra.mxu0 %v8017_v56  ;;  %v8117_v36 = vadd.f32 %v4017_v19, %v3929_v60 }
 0x4ff   : > { %v4020_v4 = vpop.f32.mrf.mxu3 }
 0x500   : > { %4301 = vmatmul.bf16.gmra.mxu2 %v7693_v12 }
 0x503   : > { %v3931_v62 = vpop.f32.mrf.mxu2 }
 0x504   : > { %v3932_v25 = vadd.f32 %v3931_v62, %v3842_v29 }
 0x506   : > { %v3847_v6 = vpop.f32.mrf.mxu1  ;;  %v8122_v31 = vadd.f32 %v4020_v4, %v3932_v25  ;;  %v8132_v4 = vpop.f32.mrf.mxu0 }
 0x507   : > { %v4022_v18 = vpop.f32.mrf.mxu3  ;;  %8919 = vst [vmem:[#allocation26_spill] sm:$0xff] %v8132_v4 }
 0x509   : > { %4217 = vmatmul.bf16.gmra.mxu1 %v7712_v16 }
 0x50b   : > { %v3933_v19 = vpop.f32.mrf.mxu2 }
 0x50c   : > { %v3934_v60 = vadd.f32 %v3933_v19, %v3844_v59  ;;  %4395 = vmatmul.bf16.gmra.mxu3 %v7718_v55 }
 0x50e   : > { %v3849_v24 = vpop.f32.mrf.mxu1  ;;  %4741 = vmatmul.bf16.gmra.mxu0 %v8040_v44  ;;  %v8129_v13 = vadd.f32 %v4022_v18, %v3934_v60  ;;  %v8138_v44 = vpop.f32.mrf.mxu0 }
 0x50f   : > { %v4025_v29 = vpop.f32.mrf.mxu3  ;;  %8920 = vst [vmem:[#allocation93_spill] sm:$0xff] %v8138_v44 }
 0x510   : > { %8918 = vst [vmem:[#allocation100_spill] sm:$0xff] %v8129_v13  ;;  %4306 = vmatmul.bf16.gmra.mxu2 %v7726_v27 }
 0x513   : > { %v3936_v62 = vpop.f32.mrf.mxu2 }
 0x514   : > { %v3937_v25 = vadd.f32 %v3936_v62, %v3847_v6  ;;  %v5983_v6 = vld [vmem:[#allocation8 + $0x218] sm:$0xff] }
 0x515   : > { %4845 = vmatpush.bf16.msra.mxu2 %v5983_v6 }
 0x516   : > { %v3852_v51 = vpop.f32.mrf.mxu1  ;;  %v8134_v16 = vadd.f32 %v4025_v29, %v3937_v25 }
 0x517   : > { %v4027_v47 = vpop.f32.mrf.mxu3 }
 0x519   : > { %4222 = vmatmul.bf16.gmra.mxu1 %v7743_v40  ;;  %v5975_v40 = vld [vmem:[#allocation8 + $0x1d8] sm:$0xff] }
 0x51a   : > { %4756 = vmatpush.bf16.msra.mxu1 %v5975_v40 }
 0x51b   : > { %v3938_v59 = vpop.f32.mrf.mxu2 }
 0x51c   : > { %v3939_v19 = vadd.f32 %v3938_v59, %v3849_v24  ;;  %4400 = vmatmul.bf16.gmra.mxu3 %v7751_v11 }
 0x51e   : > { %v3854_v18 = vpop.f32.mrf.mxu1  ;;  %v8140_v60 = vadd.f32 %v4027_v47, %v3939_v19  ;;  %4746 = vmatmul.bf16.gmra.mxu0 %v8053_v23 }
 0x51f   : > { %v4030_v13 = vpop.f32.mrf.mxu3 }
 0x520   : > { %8921 = vst [vmem:[#allocation56_spill] sm:$0xff] %v8140_v60  ;;  %4311 = vmatmul.bf16.gmra.mxu2 %v7759_v42 }
 0x523   : > { %v3941_v29 = vpop.f32.mrf.mxu2 }
 0x524   : > { %v3942_v62 = vadd.f32 %v3941_v29, %v3852_v51 }
 0x526   : > { %v3857_v25 = vpop.f32.mrf.mxu1  ;;  %v8144_v4 = vadd.f32 %v4030_v13, %v3942_v62 }
 0x527   : > { %v4032_v24 = vpop.f32.mrf.mxu3 }
 0x529   : > { %4227 = vmatmul.bf16.gmra.mxu1 %v7774_v46 }
 0x52b   : > { %v3943_v59 = vpop.f32.mrf.mxu2 }
 0x52c   : > { %v3944_v47 = vadd.f32 %v3943_v59, %v3854_v18  ;;  %4405 = vmatmul.bf16.gmra.mxu3 %v7780_v48 }
 0x52e   : > { %v3859_v23 = vpop.f32.mrf.mxu1  ;;  %v8148_v19 = vadd.f32 %v4032_v24, %v3944_v47 }
 0x52f   : > { %v4035_v44 = vpop.f32.mrf.mxu3 }
 0x530   : > { %8922 = vst [vmem:[#allocation101_spill] sm:$0xff] %v8148_v19  ;;  %4316 = vmatmul.bf16.gmra.mxu2 %v7788_v3  ;;  %v8923_v19 = vld [vmem:[#allocation76_spill] sm:$0xff] }
 0x533   : > { %v3946_v6 = vpop.f32.mrf.mxu2 }
 0x534   : > { %v3947_v51 = vadd.f32 %v3946_v6, %v3857_v25  ;;  %v5982_v25 = vld [vmem:[#allocation8 + $0x210] sm:$0xff] }
 0x535   : > { %4846 = vmatpush.bf16.msra.mxu2 %v5982_v25 }
 0x536   : > { %v4193_v29 = vpop.f32.mrf.mxu1  ;;  %v8151_v60 = vadd.f32 %v4035_v44, %v3947_v51 }
 0x537   : > { %v4194_v13 = vadd.f32 %v4193_v29, %v7852_v43  ;;  %v4037_v62 = vpop.f32.mrf.mxu3 }
 0x539   : > { %4232 = vmatmul.bf16.gmra.mxu1 %v7801_v52  ;;  %v5974_v52 = vld [vmem:[#allocation8 + $0x1d0] sm:$0xff] }
 0x53a   : > { %4757 = vmatpush.bf16.msra.mxu1 %v5974_v52 }
 0x53b   : > { %v3948_v46 = vpop.f32.mrf.mxu2 }
 0x53c   : > { %v3949_v18 = vadd.f32 %v3948_v46, %v3859_v23  ;;  %4410 = vmatmul.bf16.gmra.mxu3 %v7807_v35 }
 0x53e   : > { %v4195_v40 = vpop.f32.mrf.mxu1  ;;  %v8156_v24 = vadd.f32 %v4037_v62, %v3949_v18 }
 0x53f   : > { %v4196_v59 = vadd.f32 %v4195_v40, %v7870_v49  ;;  %v4371_v47 = vpop.f32.mrf.mxu3  ;;  %v8925_v49 = vld [vmem:[#allocation30_spill] sm:$0xff] }
 0x540   : > { %4321 = vmatmul.bf16.gmra.mxu2 %v8923_v19 }
 0x543   : > { %v4282_v44 = vpop.f32.mrf.mxu2 }
 0x544   : > { %v4283_v6 = vadd.f32 %v4282_v44, %v4194_v13 }
 0x546   : > { %v8160_v43 = vadd.f32 %v4371_v47, %v4283_v6  ;;  %v4198_v51 = vpop.f32.mrf.mxu1  ;;  %v8927_v47 = vld [vmem:[#allocation71_spill] sm:$0xff] }
 0x547   : > { %v4199_v23 = vadd.f32 %v4198_v51, %v7883_v50  ;;  %v4373_v29 = vpop.f32.mrf.mxu3 }
 0x548   : > { %8924 = vst [vmem:[#allocation94_spill] sm:$0xff] %v8160_v43 }
 0x549   : > { %4237 = vmatmul.bf16.gmra.mxu1 %v7828_v54 }
 0x54b   : > { %v4284_v62 = vpop.f32.mrf.mxu2 }
 0x54c   : > { %v4285_v46 = vadd.f32 %v4284_v62, %v4196_v59  ;;  %4415 = vmatmul.bf16.gmra.mxu3 %v8925_v49 }
 0x54e   : > { %v8165_v18 = vadd.f32 %v4373_v29, %v4285_v46  ;;  %v4200_v40 = vpop.f32.mrf.mxu1  ;;  %v8928_v29 = vld [vmem:[#allocation42_spill] sm:$0xff] }
 0x54f   : > { %v4201_v25 = vadd.f32 %v4200_v40, %v7901_v5  ;;  %v4376_v13 = vpop.f32.mrf.mxu3 }
 0x550   : > { %8926 = vst [vmem:[#allocation92_spill] sm:$0xff] %v8165_v18  ;;  %4326 = vmatmul.bf16.gmra.mxu2 %v8927_v47  ;;  %v8930_v18 = vld [vmem:[#allocation78_spill] sm:$0xff] }
 0x553   : > { %v4287_v44 = vpop.f32.mrf.mxu2 }
 0x554   : > { %v4288_v6 = vadd.f32 %v4287_v44, %v4199_v23  ;;  %v5981_v23 = vld [vmem:[#allocation8 + $0x208] sm:$0xff] }
 0x555   : > { %4847 = vmatpush.bf16.msra.mxu2 %v5981_v23 }
 0x556   : > { %v8169_v43 = vadd.f32 %v4376_v13, %v4288_v6  ;;  %v4203_v50 = vpop.f32.mrf.mxu1 }
 0x557   : > { %v4204_v51 = vadd.f32 %v4203_v50, %v7919_v10  ;;  %v4378_v54 = vpop.f32.mrf.mxu3  ;;  %v8932_v50 = vld [vmem:[#allocation82_spill] sm:$0xff] }
 0x559   : > { %4242 = vmatmul.bf16.gmra.mxu1 %v7857_v22  ;;  %v5973_v22 = vld [vmem:[#allocation8 + $0x1c8] sm:$0xff] }
 0x55a   : > { %4758 = vmatpush.bf16.msra.mxu1 %v5973_v22 }
 0x55b   : > { %v4289_v59 = vpop.f32.mrf.mxu2 }
 0x55c   : > { %v4290_v52 = vadd.f32 %v4289_v59, %v4201_v25  ;;  %4420 = vmatmul.bf16.gmra.mxu3 %v8928_v29 }
 0x55e   : > { %v8174_v62 = vadd.f32 %v4378_v54, %v4290_v52  ;;  %v4205_v5 = vpop.f32.mrf.mxu1 }
 0x55f   : > { %v4206_v46 = vadd.f32 %v4205_v5, %v7937_v0  ;;  %v4381_v40 = vpop.f32.mrf.mxu3  ;;  %v8933_v0 = vld [vmem:[#allocation79_spill] sm:$0xff] }
 0x560   : > { %8929 = vst [vmem:[#allocation102_spill] sm:$0xff] %v8174_v62  ;;  %4331 = vmatmul.bf16.gmra.mxu2 %v8930_v18 }
 0x563   : > { %v4292_v13 = vpop.f32.mrf.mxu2 }
 0x564   : > { %v4293_v44 = vadd.f32 %v4292_v13, %v4204_v51  ;;  %v8934_v51 = vld [vmem:[#allocation35_spill] sm:$0xff] }
 0x566   : > { %v8178_v10 = vadd.f32 %v4381_v40, %v4293_v44  ;;  %v4208_v6 = vpop.f32.mrf.mxu1 }
 0x567   : > { %v4209_v25 = vadd.f32 %v4208_v6, %v8932_v50  ;;  %v4383_v59 = vpop.f32.mrf.mxu3  ;;  %v8935_v50 = vld [vmem:[#allocation74_spill] sm:$0xff] }
 0x568   : > { %8931 = vst [vmem:[#allocation28_spill] sm:$0xff] %v8178_v10 }
 0x569   : > { %4247 = vmatmul.bf16.gmra.mxu1 %v7888_v20 }
 0x56b   : > { %v4294_v54 = vpop.f32.mrf.mxu2 }
 0x56c   : > { %v4295_v52 = vadd.f32 %v4294_v54, %v4206_v46  ;;  %4425 = vmatmul.bf16.gmra.mxu3 %v8933_v0 }
 0x56e   : > { %v8183_v5 = vadd.f32 %v4383_v59, %v4295_v52  ;;  %v4210_v62 = vpop.f32.mrf.mxu1  ;;  %v8936_v52 = vld [vmem:[#allocation45_spill] sm:$0xff] }
 0x56f   : > { %v4211_v23 = vadd.f32 %v4210_v62, %v7968_v26  ;;  %v4386_v40 = vpop.f32.mrf.mxu3 }
 0x570   : > { %4336 = vmatmul.bf16.gmra.mxu2 %v8934_v51 }
 0x573   : > { %v4297_v13 = vpop.f32.mrf.mxu2 }
 0x574   : > { %v4298_v44 = vadd.f32 %v4297_v13, %v4209_v25  ;;  %v5980_v25 = vld [vmem:[#allocation8 + $0x200] sm:$0xff] }
 0x575   : > { %4848 = vmatpush.bf16.msra.mxu2 %v5980_v25 }
 0x576   : > { %v8187_v10 = vadd.f32 %v4386_v40, %v4298_v44  ;;  %v4213_v6 = vpop.f32.mrf.mxu1  ;;  %v5972_v44 = vld [vmem:[#allocation8 + $0x1c0] sm:$0xff] }
 0x577   : > { %v4214_v22 = vadd.f32 %v4213_v6, %v7981_v1  ;;  %v4388_v59 = vpop.f32.mrf.mxu3  ;;  %4759 = vmatpush.bf16.msra.mxu1 %v5972_v44  ;;  %v8939_v44 = vld [vmem:[#allocation83_spill] sm:$0xff] }
 0x579   : > { %4252 = vmatmul.bf16.gmra.mxu1 %v7924_v8 }
 0x57b   : > { %v4299_v20 = vpop.f32.mrf.mxu2 }
 0x57c   : > { %v4300_v46 = vadd.f32 %v4299_v20, %v4211_v23  ;;  %4430 = vmatmul.bf16.gmra.mxu3 %v8935_v50  ;;  %v8937_v20 = vld [vmem:[#allocation77_spill] sm:$0xff] }
 0x57e   : > { %v8192_v54 = vadd.f32 %v4388_v59, %v4300_v46  ;;  %v4215_v26 = vpop.f32.mrf.mxu1  ;;  %v8938_v59 = vld [vmem:[#allocation20_spill] sm:$0xff] }
 0x57f   : > { %v4216_v62 = vadd.f32 %v4215_v26, %v7999_v7 }
 0x580   : > { %4341 = vmatmul.bf16.gmra.mxu2 %v8936_v52 }
 0x583   : > { %v4302_v40 = vpop.f32.mrf.mxu2 }
 0x584   : > { %v8196_v13 = vadd.f32 %v4302_v40, %v4214_v22 }
 0x586   : > { %v4218_v1 = vpop.f32.mrf.mxu1 }
 0x587   : > { %v4219_v8 = vadd.f32 %v4218_v1, %v8012_v53 }
 0x589   : > { %4257 = vmatmul.bf16.gmra.mxu1 %v7955_v61 }
 0x58b   : > { %v4304_v23 = vpop.f32.mrf.mxu2 }
 0x58c   : > { %v8200_v6 = vadd.f32 %v4304_v23, %v4216_v62  ;;  %4435 = vmatmul.bf16.gmra.mxu3 %v8937_v20 }
 0x58e   : > { %v4220_v7 = vpop.f32.mrf.mxu1 }
 0x58f   : > { %v4221_v46 = vadd.f32 %v4220_v7, %v8028_v15 }
 0x590   : > { %4346 = vmatmul.bf16.gmra.mxu2 %v8938_v59 }
 0x593   : > { %v4307_v26 = vpop.f32.mrf.mxu2 }
 0x594   : > { %v8205_v22 = vadd.f32 %v4307_v26, %v4219_v8 }
 0x596   : > { %v4223_v25 = vpop.f32.mrf.mxu1 }
 0x597   : > { %v4224_v40 = vadd.f32 %v4223_v25, %v8036_v63 }
 0x599   : > { %4262 = vmatmul.bf16.gmra.mxu1 %v7986_v33 }
 0x59b   : > { %v4309_v53 = vpop.f32.mrf.mxu2 }
 0x59c   : > { %v8209_v61 = vadd.f32 %v4309_v53, %v4221_v46  ;;  %4440 = vmatmul.bf16.gmra.mxu3 %v7992_v17 }
 0x59e   : > { %v4225_v62 = vpop.f32.mrf.mxu1 }
 0x59f   : > { %v4226_v1 = vadd.f32 %v4225_v62, %v8055_v32 }
 0x5a0   : > { %4351 = vmatmul.bf16.gmra.mxu2 %v8939_v44 }
 0x5a3   : > { %v4312_v15 = vpop.f32.mrf.mxu2 }
 0x5a4   : > { %v8214_v23 = vadd.f32 %v4312_v15, %v4224_v40 }
 0x5a6   : > { %v4228_v8 = vpop.f32.mrf.mxu1 }
 0x5a7   : > { %v4229_v7 = vadd.f32 %v4228_v8, %v8066_v2 }
 0x5a9   : > { %4267 = vmatmul.bf16.gmra.mxu1 %v8017_v56 }
 0x5ab   : > { %v4314_v63 = vpop.f32.mrf.mxu2 }
 0x5ac   : > { %v8218_v33 = vadd.f32 %v4314_v63, %v4226_v1  ;;  %4445 = vmatmul.bf16.gmra.mxu3 %v8023_v58 }
 0x5ae   : > { %v4230_v46 = vpop.f32.mrf.mxu1 }
 0x5af   : > { %v4231_v26 = vadd.f32 %v4230_v46, %v8077_v28 }
 0x5b0   : > { %4356 = vmatmul.bf16.gmra.mxu2 %v8031_v9 }
 0x5b3   : > { %v4317_v32 = vpop.f32.mrf.mxu2 }
 0x5b4   : > { %v8223_v25 = vadd.f32 %v4317_v32, %v4229_v7  ;;  %v8940_v32 = vld [vmem:[#allocation24_spill] sm:$0xff] }
 0x5b6   : > { %v4233_v40 = vpop.f32.mrf.mxu1 }
 0x5b7   : > { %v4234_v53 = vadd.f32 %v4233_v40, %v8080_v21 }
 0x5b9   : > { %4760 = vmatmul.bf16.vlgmr.msra.gmra.mxu1 %v8909_v37 }
 0x5bb   : > { %v4319_v2 = vpop.f32.mrf.mxu2 }
 0x5bc   : > { %v8227_v56 = vadd.f32 %v4319_v2, %v4231_v26  ;;  %v8941_v2 = vld [vmem:[#allocation54_spill] sm:$0xff] }
 0x5be   : > { %v4235_v62 = vpop.f32.mrf.mxu1 }
 0x5bf   : > { %v4236_v1 = vadd.f32 %v4235_v62, %v8085_v39 }
 0x5c0   : > { %4849 = vmatmul.bf16.vlgmr.msra.gmra.mxu2 %v7623_v57 }
 0x5c3   : > { %v4322_v15 = vpop.f32.mrf.mxu2 }
 0x5c4   : > { %v8231_v28 = vadd.f32 %v4322_v15, %v4234_v53 }
 0x5c6   : > { %v4238_v8 = vpop.f32.mrf.mxu1 }
 0x5c7   : > { %v4239_v7 = vadd.f32 %v4238_v8, %v8088_v30 }
 0x5c9   : > { %4765 = vmatmul.bf16.gmra.mxu1 %v8914_v14 }
 0x5cb   : > { %v4324_v63 = vpop.f32.mrf.mxu2 }
 0x5cc   : > { %v8235_v21 = vadd.f32 %v4324_v63, %v4236_v1 }
 0x5ce   : > { %v4240_v37 = vpop.f32.mrf.mxu1 }
 0x5cf   : > { %v4241_v46 = vadd.f32 %v4240_v37, %v8095_v45 }
 0x5d0   : > { %4854 = vmatmul.bf16.gmra.mxu2 %v7654_v38 }
 0x5d3   : > { %v4327_v26 = vpop.f32.mrf.mxu2 }
 0x5d4   : > { %v8239_v39 = vadd.f32 %v4327_v26, %v4239_v7 }
 0x5d6   : > { %v4243_v57 = vpop.f32.mrf.mxu1 }
 0x5d7   : > { %v4244_v40 = vadd.f32 %v4243_v57, %v8940_v32  ;;  %v8942_v32 = vld [vmem:[#allocation100_spill] sm:$0xff] }
 0x5d9   : > { %4770 = vmatmul.bf16.gmra.mxu1 %v7693_v12 }
 0x5db   : > { %v4329_v53 = vpop.f32.mrf.mxu2 }
 0x5dc   : > { %v8243_v30 = vadd.f32 %v4329_v53, %v4241_v46 }
 0x5de   : > { %v4245_v14 = vpop.f32.mrf.mxu1 }
 0x5df   : > { %v4246_v62 = vadd.f32 %v4245_v14, %v8941_v2 }
 0x5e0   : > { %4859 = vmatmul.bf16.gmra.mxu2 %v7685_v34 }
 0x5e3   : > { %v4332_v1 = vpop.f32.mrf.mxu2 }
 0x5e4   : > { %v8247_v45 = vadd.f32 %v4332_v1, %v4244_v40 }
 0x5e6   : > { %v4248_v38 = vpop.f32.mrf.mxu1 }
 0x5e7   : > { %v4249_v15 = vadd.f32 %v4248_v38, %v8112_v41 }
 0x5e9   : > { %4775 = vmatmul.bf16.gmra.mxu1 %v7726_v27 }
 0x5eb   : > { %v4334_v8 = vpop.f32.mrf.mxu2 }
 0x5ec   : > { %v8251_v7 = vadd.f32 %v4334_v8, %v4246_v62  ;;  %v8943_v62 = vld [vmem:[#allocation56_spill] sm:$0xff] }
 0x5ee   : > { %v4250_v12 = vpop.f32.mrf.mxu1 }
 0x5ef   : > { %v4251_v63 = vadd.f32 %v4250_v12, %v8117_v36 }
 0x5f0   : > { %4864 = vmatmul.bf16.gmra.mxu2 %v7718_v55 }
 0x5f3   : > { %v4337_v37 = vpop.f32.mrf.mxu2 }
 0x5f4   : > { %v8255_v46 = vadd.f32 %v4337_v37, %v4249_v15 }
 0x5f6   : > { %v4253_v34 = vpop.f32.mrf.mxu1 }
 0x5f7   : > { %v4254_v26 = vadd.f32 %v4253_v34, %v8122_v31 }
 0x5f9   : > { %4780 = vmatmul.bf16.gmra.mxu1 %v7759_v42 }
 0x5fb   : > { %v4339_v57 = vpop.f32.mrf.mxu2 }
 0x5fc   : > { %v8259_v41 = vadd.f32 %v4339_v57, %v4251_v63  ;;  %v8944_v63 = vld [vmem:[#allocation101_spill] sm:$0xff] }
 0x5fe   : > { %v4255_v27 = vpop.f32.mrf.mxu1 }
 0x5ff   : > { %v4256_v40 = vadd.f32 %v4255_v27, %v8942_v32 }
 0x600   : > { %4869 = vmatmul.bf16.gmra.mxu2 %v7751_v11 }
 0x603   : > { %v4342_v53 = vpop.f32.mrf.mxu2 }
 0x604   : > { %v8263_v36 = vadd.f32 %v4342_v53, %v4254_v26 }
 0x606   : > { %v4258_v55 = vpop.f32.mrf.mxu1 }
 0x607   : > { %v4259_v14 = vadd.f32 %v4258_v55, %v8134_v16 }
 0x609   : > { %4785 = vmatmul.bf16.gmra.mxu1 %v7788_v3 }
 0x60b   : > { %v4344_v2 = vpop.f32.mrf.mxu2 }
 0x60c   : > { %v8267_v31 = vadd.f32 %v4344_v2, %v4256_v40 }
 0x60e   : > { %v4260_v42 = vpop.f32.mrf.mxu1 }
 0x60f   : > { %v4261_v1 = vadd.f32 %v4260_v42, %v8943_v62  ;;  %v8946_v62 = vld [vmem:[#allocation94_spill] sm:$0xff] }
 0x610   : > { %4874 = vmatmul.bf16.gmra.mxu2 %v7780_v48 }
 0x613   : > { %v4347_v38 = vpop.f32.mrf.mxu2 }
 0x614   : > { %v8271_v15 = vadd.f32 %v4347_v38, %v4259_v14 }
 0x616   : > { %v4263_v11 = vpop.f32.mrf.mxu1 }
 0x617   : > { %v4264_v8 = vadd.f32 %v4263_v11, %v8144_v4  ;;  %v8947_v11 = vld [vmem:[#allocation84_spill] sm:$0xff] }
 0x619   : > { %4790 = vmatmul.bf16.gmra.mxu1 %v8923_v19 }
 0x61b   : > { %v4349_v12 = vpop.f32.mrf.mxu2 }
 0x61c   : > { %v8275_v16 = vadd.f32 %v4349_v12, %v4261_v1 }
 0x61e   : > { %v4265_v3 = vpop.f32.mrf.mxu1 }
 0x61f   : > { %v4266_v37 = vadd.f32 %v4265_v3, %v8944_v63 }
 0x620   : > { %4879 = vmatmul.bf16.gmra.mxu2 %v7807_v35 }
 0x623   : > { %v4352_v34 = vpop.f32.mrf.mxu2 }
 0x624   : > { %v8279_v26 = vadd.f32 %v4352_v34, %v4264_v8  ;;  %v8948_v34 = vld [vmem:[#allocation92_spill] sm:$0xff] }
 0x626   : > { %v4268_v48 = vpop.f32.mrf.mxu1 }
 0x627   : > { %v4269_v57 = vadd.f32 %v4268_v48, %v8151_v60 }
 0x629   : > { %4795 = vmatmul.bf16.gmra.mxu1 %v8927_v47  ;;  %v8945_v47 = vld [vmem:[#allocation51_spill] sm:$0xff] }
 0x62b   : > { %v4354_v27 = vpop.f32.mrf.mxu2 }
 0x62c   : > { %v8283_v4 = vadd.f32 %v4354_v27, %v4266_v37 }
 0x62e   : > { %v4270_v19 = vpop.f32.mrf.mxu1 }
 0x62f   : > { %v4271_v32 = vadd.f32 %v4270_v19, %v8156_v24  ;;  %v8949_v19 = vld [vmem:[#allocation90_spill] sm:$0xff] }
 0x630   : > { %4884 = vmatmul.bf16.gmra.mxu2 %v8925_v49  ;;  %v8297_v49 = vld [vmem:[%s8529_s5] ss:$0 sm:$0xff] }
 0x633   : > { %v4357_v40 = vpop.f32.mrf.mxu2 }
 0x634   : > { %v8287_v53 = vadd.f32 %v4357_v40, %v4269_v57  ;;  %v6104_v40 = vld [vmem:[%s6514_s28 + $0x8] sm:$0xff] }
 0x636   : > { %v4761_v35 = vpop.f32.mrf.mxu1 }
 0x637   : > { %v4762_v2 = vadd.f32 %v4761_v35, %v8945_v47 }
 0x639   : > { %4800 = vmatmul.bf16.gmra.mxu1 %v8930_v18 }
 0x63b   : > { %v4359_v55 = vpop.f32.mrf.mxu2 }
 0x63c   : > { %v8290_v14 = vadd.f32 %v4359_v55, %v4271_v32 }
 0x63e   : > { %v4763_v60 = vpop.f32.mrf.mxu1 }
 0x63f   : > { %v4764_v8 = vadd.f32 %v4763_v60, %v8947_v11 }
 0x640   : > { %4889 = vmatmul.bf16.gmra.mxu2 %v8928_v29  ;;  %v6103_v29 = vld [vmem:[%s6514_s28] sm:$0xff] }
 0x643   : > { %v4850_v42 = vpop.f32.mrf.mxu2 }
 0x644   : > { %v4851_v24 = vadd.f32 %v4850_v42, %v4762_v2  ;;  %v8316_v2 = vpop.f32.mrf.mxu3 }
 0x646   : > { %v4930_v1 = vadd.f32 %v4851_v24, %v8946_v62  ;;  %v4766_v38 = vpop.f32.mrf.mxu1 }
 0x647   : > { %v4767_v32 = vadd.f32 %v4766_v38, %v8949_v19  ;;  %v6105_v38 = vld [vmem:[%s6514_s28 + $0x10] sm:$0xff] }
 0x648   : > { %v4966_v18 = vadd.f32 %v8297_v49, %v4930_v1 }
 0x649   : > { %4805 = vmatmul.bf16.gmra.mxu1 %v8934_v51  ;;  %v8312_v51 = vpop.f32.mrf.mxu0 }
 0x64a   : > { %v4998_v12 = vadd.f32 %v6103_v29, %v4966_v18 }
 0x64b   : > { %v4852_v3 = vpop.f32.mrf.mxu2 }
 0x64c   : > { %v5030_v63 = vmax.f32 %v4998_v12, 0.0  ;;  %v4853_v37 = vadd.f32 %v4852_v3, %v4764_v8  ;;  %v8951_v3 = vld [vmem:[#allocation102_spill] sm:$0xff] }
 0x64e   : > { %5062 = vst [vmem:[%s8306_s15] sm:$0xff] %v5030_v63  ;;  %v4931_v48 = vadd.f32 %v4853_v37, %v8948_v34  ;;  %v4768_v57 = vpop.f32.mrf.mxu1  ;;  %v8328_v37 = vpop.f32.mrf.mxu3 }
 0x650   : > { %v4967_v27 = vadd.f32 %v8297_v49, %v4931_v48  ;;  %4894 = vmatmul.bf16.gmra.mxu2 %v8933_v0  ;;  %v8950_v0 = vld [vmem:[#allocation99_spill] sm:$0xff] }
 0x651   : > { %v4769_v1 = vadd.f32 %v4768_v57, %v8950_v0  ;;  %v8324_v8 = vpop.f32.mrf.mxu0  ;;  %v6106_v57 = vld [vmem:[%s6514_s28 + $0x18] sm:$0xff]  ;;  %v6107_v0 = vld [vmem:[%s6514_s28 + $0x20] sm:$0xff] }
 0x652   : > { %v4999_v35 = vadd.f32 %v6104_v40, %v4967_v27 }
 0x653   : > { %v4855_v55 = vpop.f32.mrf.mxu2 }
 0x654   : > { %v5031_v60 = vmax.f32 %v4999_v35, 0.0  ;;  %v4856_v47 = vadd.f32 %v4855_v55, %v4767_v32  ;;  %v8953_v55 = vld [vmem:[#allocation28_spill] sm:$0xff] }
 0x656   : > { %5063 = vst [vmem:[%s8306_s15 + $0x8] sm:$0xff] %v5031_v60  ;;  %v4932_v42 = vadd.f32 %v4856_v47, %v8169_v43  ;;  %v4771_v24 = vpop.f32.mrf.mxu1 }
 0x658   : > { %v4968_v62 = vadd.f32 %v8297_v49, %v4932_v42 }
 0x659   : > { %4810 = vmatmul.bf16.gmra.mxu1 %v8936_v52  ;;  %v8952_v52 = vld [vmem:[#allocation91_spill] sm:$0xff]  ;;  %v8334_v35 = vpop.f32.mrf.mxu0 }
 0x65a   : > { %v5000_v18 = vadd.f32 %v6105_v38, %v4968_v62  ;;  %v4772_v48 = vadd.f32 %v4771_v24, %v8952_v52  ;;  %v8339_v62 = vpop.f32.mrf.mxu3 }
 0x65b   : > { %v4857_v11 = vpop.f32.mrf.mxu2 }
 0x65c   : > { %v5032_v29 = vmax.f32 %v5000_v18, 0.0  ;;  %v4858_v12 = vadd.f32 %v4857_v11, %v4769_v1 }
 0x65e   : > { %5064 = vst [vmem:[%s8306_s15 + $0x10] sm:$0xff] %v5032_v29  ;;  %v4933_v63 = vadd.f32 %v4858_v12, %v8951_v3  ;;  %v4773_v43 = vpop.f32.mrf.mxu1 }
 0x660   : > { %v4969_v34 = vadd.f32 %v8297_v49, %v4933_v63  ;;  %4899 = vmatmul.bf16.gmra.mxu2 %v8935_v50  ;;  %v8954_v50 = vld [vmem:[#allocation87_spill] sm:$0xff] }
 0x661   : > { %v4774_v24 = vadd.f32 %v4773_v43, %v8954_v50  ;;  %v8346_v3 = vpop.f32.mrf.mxu0  ;;  %v6108_v43 = vld [vmem:[%s6514_s28 + $0x28] sm:$0xff] }
 0x662   : > { %v5001_v27 = vadd.f32 %v6106_v57, %v4969_v34 }
 0x663   : > { %v4860_v19 = vpop.f32.mrf.mxu2 }
 0x664   : > { %v5033_v32 = vmax.f32 %v5001_v27, 0.0  ;;  %v4861_v40 = vadd.f32 %v4860_v19, %v4772_v48  ;;  %v8352_v48 = vpop.f32.mrf.mxu3 }
 0x666   : > { %5065 = vst [vmem:[%s8306_s15 + $0x18] sm:$0xff] %v5033_v32  ;;  %v4934_v60 = vadd.f32 %v4861_v40, %v8953_v55  ;;  %v4776_v47 = vpop.f32.mrf.mxu1  ;;  %v8956_v55 = vld [vmem:[#allocation93_spill] sm:$0xff] }
 0x668   : > { %v4970_v42 = vadd.f32 %v8297_v49, %v4934_v60 }
 0x669   : > { %4815 = vmatmul.bf16.gmra.mxu1 %v8938_v59  ;;  %v8955_v59 = vld [vmem:[#allocation26_spill] sm:$0xff] }
 0x66a   : > { %v5002_v1 = vadd.f32 %v6107_v0, %v4970_v42  ;;  %v4777_v34 = vadd.f32 %v4776_v47, %v8955_v59  ;;  %v6109_v47 = vld [vmem:[%s6514_s28 + $0x30] sm:$0xff]  ;;  %v4392_v59 = vadd.f32 %v8316_v2, %v8196_v13  ;;  %v4394_v13 = vadd.f32 %v8328_v37, %v8200_v6 }
 0x66b   : > { %v4862_v38 = vpop.f32.mrf.mxu2  ;;  %v4397_v6 = vadd.f32 %v8339_v62, %v8205_v22  ;;  %v4399_v22 = vadd.f32 %v8352_v48, %v8209_v61 }
 0x66c   : > { %v5034_v18 = vmax.f32 %v5002_v1, 0.0  ;;  %v4863_v11 = vadd.f32 %v4862_v38, %v4774_v24  ;;  %v8362_v1 = vpop.f32.mrf.mxu3 }
 0x66d   : > { %v4402_v61 = vadd.f32 %v8362_v1, %v8214_v23 }
 0x66e   : > { %5066 = vst [vmem:[%s8306_s15 + $0x20] sm:$0xff] %v5034_v18  ;;  %v4935_v29 = vadd.f32 %v4863_v11, %v8183_v5  ;;  %v4778_v12 = vpop.f32.mrf.mxu1  ;;  %v6110_v11 = vld [vmem:[%s6514_s28 + $0x38] sm:$0xff] }
 0x66f   : > { %v4779_v60 = vadd.f32 %v4778_v12, %v8956_v55 }
 0x670   : > { %v4971_v63 = vadd.f32 %v8297_v49, %v4935_v29  ;;  %4904 = vmatmul.bf16.gmra.mxu2 %v8937_v20  ;;  %v8358_v20 = vpop.f32.mrf.mxu0 }
 0x672   : > { %v5003_v52 = vadd.f32 %v6108_v43, %v4971_v63 }
 0x673   : > { %v4865_v57 = vpop.f32.mrf.mxu2 }
 0x674   : > { %v5035_v27 = vmax.f32 %v5003_v52, 0.0  ;;  %v4866_v19 = vadd.f32 %v4865_v57, %v4777_v34  ;;  %v4403_v57 = vpop.f32.mrf.mxu3 }
 0x675   : > { %v4404_v23 = vadd.f32 %v4403_v57, %v8218_v33 }
 0x676   : > { %5067 = vst [vmem:[%s8306_s15 + $0x28] sm:$0xff] %v5035_v27  ;;  %v4936_v5 = vadd.f32 %v4866_v19, %v8187_v10  ;;  %v4781_v32 = vpop.f32.mrf.mxu1  ;;  %v6111_v27 = vld [vmem:[%s6514_s28 + $0x40] sm:$0xff] }
 0x678   : > { %v4972_v40 = vadd.f32 %v8297_v49, %v4936_v5  ;;  %v8370_v63 = vpop.f32.mrf.mxu0 }
 0x679   : > { %4820 = vmatmul.bf16.gmra.mxu1 %v8939_v44  ;;  %v4782_v44 = vadd.f32 %v4781_v32, %v8312_v51 }
 0x67a   : > { %v5004_v42 = vadd.f32 %v6109_v47, %v4972_v40 }
 0x67b   : > { %v4867_v50 = vpop.f32.mrf.mxu2 }
 0x67c   : > { %v5036_v24 = vmax.f32 %v5004_v42, 0.0  ;;  %v4868_v0 = vadd.f32 %v4867_v50, %v4779_v60  ;;  %v6112_v42 = vld [vmem:[%s6514_s28 + $0x48] sm:$0xff] }
 0x67e   : > { %5068 = vst [vmem:[%s8306_s15 + $0x30] sm:$0xff] %v5036_v24  ;;  %v4937_v10 = vadd.f32 %v4868_v0, %v8192_v54  ;;  %v4783_v38 = vpop.f32.mrf.mxu1 }
 0x67f   : > { %v4784_v51 = vadd.f32 %v4783_v38, %v8324_v8 }
 0x680   : > { %v4973_v18 = vadd.f32 %v8297_v49, %v4937_v10  ;;  %4909 = vmatmul.bf16.gmra.mxu2 %v7992_v17  ;;  %v4707_v40 = vpop.f32.mrf.mxu0 }
 0x682   : > { %v5005_v29 = vadd.f32 %v6110_v11, %v4973_v18  ;;  %v6113_v11 = vld [vmem:[%s6514_s28 + $0x50] sm:$0xff] }
 0x683   : > { %v4870_v12 = vpop.f32.mrf.mxu2 }
 0x684   : > { %v5037_v34 = vmax.f32 %v5005_v29, 0.0  ;;  %v4871_v43 = vadd.f32 %v4870_v12, %v4782_v44 }
 0x686   : > { %5069 = vst [vmem:[%s8306_s15 + $0x38] sm:$0xff] %v5037_v34  ;;  %v4938_v54 = vadd.f32 %v4871_v43, %v4392_v59  ;;  %v4786_v52 = vpop.f32.mrf.mxu1 }
 0x687   : > { %v4787_v8 = vadd.f32 %v4786_v52, %v8334_v35 }
 0x688   : > { %v4974_v17 = vadd.f32 %v8297_v49, %v4938_v54  ;;  %v4709_v18 = vpop.f32.mrf.mxu0 }
 0x689   : > { %4825 = vmatmul.bf16.gmra.mxu1 %v8031_v9  ;;  %v4406_v9 = vpop.f32.mrf.mxu3 }
 0x68a   : > { %v5006_v19 = vadd.f32 %v6111_v27, %v4974_v17  ;;  %v8958_v17 = vld [vmem:[#allocation48_spill] sm:$0xff]  ;;  %v6114_v27 = vld [vmem:[%s6514_s28 + $0x58] sm:$0xff] }
 0x68b   : > { %v4872_v5 = vpop.f32.mrf.mxu2 }
 0x68c   : > { %v5038_v2 = vmax.f32 %v5006_v19, 0.0  ;;  %v4873_v32 = vadd.f32 %v4872_v5, %v4784_v51 }
 0x68e   : > { %5070 = vst [vmem:[%s8306_s15 + $0x40] sm:$0xff] %v5038_v2  ;;  %v4939_v55 = vadd.f32 %v4873_v32, %v4394_v13  ;;  %v4788_v60 = vpop.f32.mrf.mxu1 }
 0x68f   : > { %v4789_v35 = vadd.f32 %v4788_v60, %v8346_v3 }
 0x690   : > { %v4975_v47 = vadd.f32 %v8297_v49, %v4939_v55  ;;  %4914 = vmatmul.bf16.gmra.mxu2 %v8023_v58  ;;  %v8957_v58 = vld [vmem:[#allocation81_spill] sm:$0xff]  ;;  %v4712_v51 = vpop.f32.mrf.mxu0 }
 0x691   : > { %v4408_v12 = vpop.f32.mrf.mxu3 }
 0x692   : > { %v5007_v50 = vadd.f32 %v6112_v42, %v4975_v47  ;;  %v8959_v47 = vld [vmem:[#allocation86_spill] sm:$0xff] }
 0x693   : > { %v4875_v24 = vpop.f32.mrf.mxu2 }
 0x694   : > { %v5039_v37 = vmax.f32 %v5007_v50, 0.0  ;;  %v4876_v0 = vadd.f32 %v4875_v24, %v4787_v8  ;;  %v6115_v8 = vld [vmem:[%s6514_s28 + $0x60] sm:$0xff] }
 0x696   : > { %5071 = vst [vmem:[%s8306_s15 + $0x48] sm:$0xff] %v5039_v37  ;;  %v4940_v10 = vadd.f32 %v4876_v0, %v4397_v6  ;;  %v4791_v38 = vpop.f32.mrf.mxu1 }
 0x697   : > { %v4792_v3 = vadd.f32 %v4791_v38, %v8358_v20 }
 0x698   : > { %v4976_v44 = vadd.f32 %v8297_v49, %v4940_v10  ;;  %v4714_v24 = vpop.f32.mrf.mxu0 }
 0x699   : > { %4830 = vmatmul.bf16.gmra.mxu1 %v8957_v58  ;;  %v4411_v2 = vpop.f32.mrf.mxu3 }
 0x69a   : > { %v5008_v29 = vadd.f32 %v6113_v11, %v4976_v44  ;;  %v8960_v44 = vld [vmem:[#allocation22_spill] sm:$0xff] }
 0x69b   : > { %v4877_v59 = vpop.f32.mrf.mxu2 }
 0x69c   : > { %v5040_v62 = vmax.f32 %v5008_v29, 0.0  ;;  %v4878_v34 = vadd.f32 %v4877_v59, %v4789_v35  ;;  %v4407_v29 = vadd.f32 %v4406_v9, %v8223_v25 }
 0x69e   : > { %5072 = vst [vmem:[%s8306_s15 + $0x50] sm:$0xff] %v5040_v62  ;;  %v4941_v43 = vadd.f32 %v4878_v34, %v4399_v22  ;;  %v4793_v54 = vpop.f32.mrf.mxu1 }
 0x69f   : > { %v4794_v20 = vadd.f32 %v4793_v54, %v8370_v63  ;;  %v6116_v63 = vld [vmem:[%s6514_s28 + $0x68] sm:$0xff] }
 0x6a0   : > { %v4977_v52 = vadd.f32 %v8297_v49, %v4941_v43  ;;  %4919 = vmatmul.bf16.gmra.mxu2 %v8958_v17  ;;  %v4717_v59 = vpop.f32.mrf.mxu0 }
 0x6a1   : > { %v4413_v10 = vpop.f32.mrf.mxu3 }
 0x6a2   : > { %v5009_v19 = vadd.f32 %v6114_v27, %v4977_v52  ;;  %v6117_v52 = vld [vmem:[%s6514_s28 + $0x70] sm:$0xff] }
 0x6a3   : > { %v4880_v5 = vpop.f32.mrf.mxu2 }
 0x6a4   : > { %v5041_v48 = vmax.f32 %v5009_v19, 0.0  ;;  %v4881_v13 = vadd.f32 %v4880_v5, %v4792_v3  ;;  %v4409_v3 = vadd.f32 %v4408_v12, %v8227_v56 }
 0x6a6   : > { %5073 = vst [vmem:[%s8306_s15 + $0x58] sm:$0xff] %v5041_v48  ;;  %v4942_v32 = vadd.f32 %v4881_v13, %v4402_v61  ;;  %v4796_v55 = vpop.f32.mrf.mxu1  ;;  %v6118_v13 = vld [vmem:[%s6514_s28 + $0x78] sm:$0xff] }
 0x6a7   : > { %v4797_v58 = vadd.f32 %v4796_v55, %v4707_v40 }
 0x6a8   : > { %v4978_v60 = vadd.f32 %v8297_v49, %v4942_v32  ;;  %v4719_v5 = vpop.f32.mrf.mxu0 }
 0x6a9   : > { %4835 = vmatmul.bf16.gmra.mxu1 %v8959_v47  ;;  %v4416_v43 = vpop.f32.mrf.mxu3 }
 0x6aa   : > { %v5010_v42 = vadd.f32 %v6115_v8, %v4978_v60  ;;  %v4412_v60 = vadd.f32 %v4411_v2, %v8231_v28 }
 0x6ab   : > { %v4882_v50 = vpop.f32.mrf.mxu2 }
 0x6ac   : > { %v5042_v1 = vmax.f32 %v5010_v42, 0.0  ;;  %v4883_v6 = vadd.f32 %v4882_v50, %v4794_v20 }
 0x6ae   : > { %5074 = vst [vmem:[%s8306_s15 + $0x60] sm:$0xff] %v5042_v1  ;;  %v4943_v37 = vadd.f32 %v4883_v6, %v4404_v23  ;;  %v4798_v0 = vpop.f32.mrf.mxu1  ;;  %v6119_v23 = vld [vmem:[%s6514_s28 + $0x80] sm:$0xff]  ;;  %v4414_v6 = vadd.f32 %v4413_v10, %v8235_v21 }
 0x6af   : > { %v4799_v54 = vadd.f32 %v4798_v0, %v4709_v18 }
 0x6b0   : > { %v4979_v38 = vadd.f32 %v8297_v49, %v4943_v37  ;;  %4924 = vmatmul.bf16.gmra.mxu2 %v8960_v44  ;;  %v4722_v42 = vpop.f32.mrf.mxu0 }
 0x6b1   : > { %v4418_v55 = vpop.f32.mrf.mxu3 }
 0x6b2   : > { %v5011_v35 = vadd.f32 %v6116_v63, %v4979_v38  ;;  %v6120_v63 = vld [vmem:[%s6514_s28 + $0x88] sm:$0xff] }
 0x6b3   : > { %v4885_v11 = vpop.f32.mrf.mxu2 }
 0x6b4   : > { %v5043_v33 = vmax.f32 %v5011_v35, 0.0  ;;  %v4886_v57 = vadd.f32 %v4885_v11, %v4797_v58 }
 0x6b6   : > { %5075 = vst [vmem:[%s8306_s15 + $0x68] sm:$0xff] %v5043_v33  ;;  %v4944_v22 = vadd.f32 %v4886_v57, %v4407_v29  ;;  %v4801_v62 = vpop.f32.mrf.mxu1  ;;  %v4417_v29 = vadd.f32 %v4416_v43, %v8239_v39 }
 0x6b7   : > { %v4802_v48 = vadd.f32 %v4801_v62, %v4712_v51 }
 0x6b8   : > { %v4980_v34 = vadd.f32 %v8297_v49, %v4944_v22 }
 0x6b9   : > { %v4421_v28 = vpop.f32.mrf.mxu3 }
 0x6ba   : > { %v5012_v17 = vadd.f32 %v6117_v52, %v4980_v34 }
 0x6bb   : > { %v4887_v40 = vpop.f32.mrf.mxu2 }
 0x6bc   : > { %v5044_v27 = vmax.f32 %v5012_v17, 0.0  ;;  %v4888_v25 = vadd.f32 %v4887_v40, %v4799_v54  ;;  %v6121_v54 = vld [vmem:[%s6514_s28 + $0x90] sm:$0xff]  ;;  %v4419_v17 = vadd.f32 %v4418_v55, %v8243_v30 }
 0x6be   : > { %5076 = vst [vmem:[%s8306_s15 + $0x70] sm:$0xff] %v5044_v27  ;;  %v4945_v9 = vadd.f32 %v4888_v25, %v4409_v3  ;;  %v4803_v19 = vpop.f32.mrf.mxu1 }
 0x6bf   : > { %v4804_v50 = vadd.f32 %v4803_v19, %v4714_v24  ;;  %v4724_v24 = vpop.f32.mrf.mxu0 }
 0x6c0   : > { %v4981_v61 = vadd.f32 %v8297_v49, %v4945_v9 }
 0x6c1   : > { %v4423_v22 = vpop.f32.mrf.mxu3 }
 0x6c2   : > { %v5013_v32 = vadd.f32 %v6118_v13, %v4981_v61  ;;  %v6122_v61 = vld [vmem:[%s6514_s28 + $0x98] sm:$0xff]  ;;  %v4422_v13 = vadd.f32 %v4421_v28, %v8247_v45  ;;  %v6124_v28 = vld [vmem:[%s6514_s28 + $0xa8] sm:$0xff] }
 0x6c3   : > { %v4890_v18 = vpop.f32.mrf.mxu2 }
 0x6c4   : > { %v5045_v47 = vmax.f32 %v5013_v32, 0.0  ;;  %v4891_v56 = vadd.f32 %v4890_v18, %v4802_v48 }
 0x6c6   : > { %5077 = vst [vmem:[%s8306_s15 + $0x78] sm:$0xff] %v5045_v47  ;;  %v4946_v12 = vadd.f32 %v4891_v56, %v4412_v60  ;;  %v4806_v20 = vpop.f32.mrf.mxu1 }
 0x6c7   : > { %v4807_v58 = vadd.f32 %v4806_v20, %v4717_v59  ;;  %v4727_v39 = vpop.f32.mrf.mxu0 }
 0x6c8   : > { %v4982_v8 = vadd.f32 %v8297_v49, %v4946_v12  ;;  %v6123_v12 = vld [vmem:[%s6514_s28 + $0xa0] sm:$0xff] }
 0x6c9   : > { %v4426_v9 = vpop.f32.mrf.mxu3 }
 0x6ca   : > { %v5014_v1 = vadd.f32 %v6119_v23, %v4982_v8 }
 0x6cb   : > { %v4892_v51 = vpop.f32.mrf.mxu2 }
 0x6cc   : > { %v5046_v37 = vmax.f32 %v5014_v1, 0.0  ;;  %v4893_v0 = vadd.f32 %v4892_v51, %v4804_v50  ;;  %v4424_v50 = vadd.f32 %v4423_v22, %v8251_v7 }
 0x6ce   : > { %5078 = vst [vmem:[%s8306_s15 + $0x80] sm:$0xff] %v5046_v37  ;;  %v4947_v2 = vadd.f32 %v4893_v0, %v4414_v6  ;;  %v4808_v38 = vpop.f32.mrf.mxu1 }
 0x6cf   : > { %v4809_v34 = vadd.f32 %v4808_v38, %v4719_v5  ;;  %v4729_v60 = vpop.f32.mrf.mxu0 }
 0x6d0   : > { %v4983_v44 = vadd.f32 %v8297_v49, %v4947_v2 }
 0x6d1   : > { %v4428_v8 = vpop.f32.mrf.mxu3 }
 0x6d2   : > { %v5015_v35 = vadd.f32 %v6120_v63, %v4983_v44  ;;  %v4427_v44 = vadd.f32 %v4426_v9, %v8255_v46  ;;  %v4429_v22 = vadd.f32 %v4428_v8, %v8259_v41  ;;  %v6128_v8 = vld [vmem:[%s6514_s28 + $0xc8] sm:$0xff] }
 0x6d3   : > { %v4895_v11 = vpop.f32.mrf.mxu2 }
 0x6d4   : > { %v5047_v33 = vmax.f32 %v5015_v35, 0.0  ;;  %v4896_v21 = vadd.f32 %v4895_v11, %v4807_v58 }
 0x6d6   : > { %5079 = vst [vmem:[%s8306_s15 + $0x88] sm:$0xff] %v5047_v33  ;;  %v4948_v10 = vadd.f32 %v4896_v21, %v4417_v29  ;;  %v4811_v57 = vpop.f32.mrf.mxu1  ;;  %v6125_v33 = vld [vmem:[%s6514_s28 + $0xb0] sm:$0xff] }
 0x6d7   : > { %v4812_v19 = vadd.f32 %v4811_v57, %v4722_v42  ;;  %v4732_v37 = vpop.f32.mrf.mxu0 }
 0x6d8   : > { %v4984_v62 = vadd.f32 %v8297_v49, %v4948_v10 }
 0x6d9   : > { %v4431_v7 = vpop.f32.mrf.mxu3 }
 0x6da   : > { %v5016_v52 = vadd.f32 %v6121_v54, %v4984_v62 }
 0x6db   : > { %v4897_v59 = vpop.f32.mrf.mxu2 }
 0x6dc   : > { %v5048_v40 = vmax.f32 %v5016_v52, 0.0  ;;  %v4898_v3 = vadd.f32 %v4897_v59, %v4809_v34 }
 0x6de   : > { %5080 = vst [vmem:[%s8306_s15 + $0x90] sm:$0xff] %v5048_v40  ;;  %v4949_v43 = vadd.f32 %v4898_v3, %v4419_v17  ;;  %v4813_v27 = vpop.f32.mrf.mxu1  ;;  %v6126_v40 = vld [vmem:[%s6514_s28 + $0xb8] sm:$0xff] }
 0x6df   : > { %v4814_v56 = vadd.f32 %v4813_v27, %v4724_v24  ;;  %v4734_v57 = vpop.f32.mrf.mxu0 }
 0x6e0   : > { %v4985_v25 = vadd.f32 %v8297_v49, %v4949_v43  ;;  %v4432_v43 = vadd.f32 %v4431_v7, %v8263_v36 }
 0x6e1   : > { %v4433_v52 = vpop.f32.mrf.mxu3 }
 0x6e2   : > { %v5017_v48 = vadd.f32 %v6122_v61, %v4985_v25 }
 0x6e3   : > { %v4900_v5 = vpop.f32.mrf.mxu2 }
 0x6e4   : > { %v5049_v32 = vmax.f32 %v5017_v48, 0.0  ;;  %v4901_v30 = vadd.f32 %v4900_v5, %v4812_v19 }
 0x6e6   : > { %5081 = vst [vmem:[%s8306_s15 + $0x98] sm:$0xff] %v5049_v32  ;;  %v4950_v55 = vadd.f32 %v4901_v30, %v4422_v13  ;;  %v4816_v18 = vpop.f32.mrf.mxu1  ;;  %v6127_v13 = vld [vmem:[%s6514_s28 + $0xc0] sm:$0xff] }
 0x6e7   : > { %v4817_v0 = vadd.f32 %v4816_v18, %v4727_v39  ;;  %v4737_v41 = vpop.f32.mrf.mxu0 }
 0x6e8   : > { %v4986_v47 = vadd.f32 %v8297_v49, %v4950_v55  ;;  %v4434_v55 = vadd.f32 %v4433_v52, %v8267_v31 }
 0x6e9   : > { %v4436_v48 = vpop.f32.mrf.mxu3 }
 0x6ea   : > { %v5018_v20 = vadd.f32 %v6123_v12, %v4986_v47 }
 0x6eb   : > { %v4902_v42 = vpop.f32.mrf.mxu2 }
 0x6ec   : > { %v5050_v23 = vmax.f32 %v5018_v20, 0.0  ;;  %v4903_v45 = vadd.f32 %v4902_v42, %v4814_v56 }
 0x6ee   : > { %5082 = vst [vmem:[%s8306_s15 + $0xa0] sm:$0xff] %v5050_v23  ;;  %v4951_v1 = vadd.f32 %v4903_v45, %v4424_v50  ;;  %v4818_v51 = vpop.f32.mrf.mxu1  ;;  %v4437_v45 = vadd.f32 %v4436_v48, %v8271_v15 }
 0x6ef   : > { %v4819_v29 = vadd.f32 %v4818_v51, %v4729_v60  ;;  %v4739_v47 = vpop.f32.mrf.mxu0 }
 0x6f0   : > { %v4987_v6 = vadd.f32 %v8297_v49, %v4951_v1 }
 0x6f1   : > { %v4438_v50 = vpop.f32.mrf.mxu3 }
 0x6f2   : > { %v5019_v2 = vadd.f32 %v6124_v28, %v4987_v6  ;;  %v6129_v28 = vld [vmem:[%s6514_s28 + $0xd0] sm:$0xff] }
 0x6f3   : > { %v4905_v38 = vpop.f32.mrf.mxu2 }
 0x6f4   : > { %v5051_v58 = vmax.f32 %v5019_v2, 0.0  ;;  %v4906_v63 = vadd.f32 %v4905_v38, %v4817_v0 }
 0x6f6   : > { %5083 = vst [vmem:[%s8306_s15 + $0xa8] sm:$0xff] %v5051_v58  ;;  %v4952_v35 = vadd.f32 %v4906_v63, %v4427_v44  ;;  %v4821_v11 = vpop.f32.mrf.mxu1  ;;  %v4439_v58 = vadd.f32 %v4438_v50, %v8275_v16 }
 0x6f7   : > { %v4822_v17 = vadd.f32 %v4821_v11, %v4732_v37  ;;  %v4742_v37 = vpop.f32.mrf.mxu0 }
 0x6f8   : > { %v4988_v24 = vadd.f32 %v8297_v49, %v4952_v35 }
 0x6f9   : > { %v4441_v15 = vpop.f32.mrf.mxu3 }
 0x6fa   : > { %v5020_v21 = vadd.f32 %v6125_v33, %v4988_v24 }
 0x6fb   : > { %v4907_v10 = vpop.f32.mrf.mxu2 }
 0x6fc   : > { %v5052_v62 = vmax.f32 %v5020_v21, 0.0  ;;  %v4908_v46 = vadd.f32 %v4907_v10, %v4819_v29  ;;  %v6130_v29 = vld [vmem:[%s6514_s28 + $0xd8] sm:$0xff]  ;;  %v4442_v10 = vadd.f32 %v4441_v15, %v8279_v26 }
 0x6fe   : > { %5084 = vst [vmem:[%s8306_s15 + $0xb0] sm:$0xff] %v5052_v62  ;;  %v4953_v34 = vadd.f32 %v4908_v46, %v4429_v22  ;;  %v4823_v54 = vpop.f32.mrf.mxu1 }
 0x6ff   : > { %v4824_v5 = vadd.f32 %v4823_v54, %v4734_v57  ;;  %v4744_v62 = vpop.f32.mrf.mxu0 }
 0x700   : > { %v4989_v59 = vadd.f32 %v8297_v49, %v4953_v34 }
 0x701   : > { %v4443_v34 = vpop.f32.mrf.mxu3 }
 0x702   : > { %v5021_v3 = vadd.f32 %v6126_v40, %v4989_v59  ;;  %v6131_v59 = vld [vmem:[%s6514_s28 + $0xe0] sm:$0xff] }
 0x703   : > { %v4910_v39 = vpop.f32.mrf.mxu2 }
 0x704   : > { %v5053_v27 = vmax.f32 %v5021_v3, 0.0  ;;  %v4911_v25 = vadd.f32 %v4910_v39, %v4822_v17  ;;  %v4444_v3 = vadd.f32 %v4443_v34, %v8283_v4 }
 0x706   : > { %5085 = vst [vmem:[%s8306_s15 + $0xb8] sm:$0xff] %v5053_v27  ;;  %v4954_v9 = vadd.f32 %v4911_v25, %v4432_v43  ;;  %v4826_v19 = vpop.f32.mrf.mxu1 }
 0x707   : > { %v4827_v20 = vadd.f32 %v4826_v19, %v4737_v41  ;;  %v4747_v43 = vpop.f32.mrf.mxu0 }
 0x708   : > { %v4990_v61 = vadd.f32 %v8297_v49, %v4954_v9 }
 0x709   : > { %v4446_v19 = vpop.f32.mrf.mxu3 }
 0x70a   : > { %v5022_v32 = vadd.f32 %v6127_v13, %v4990_v61  ;;  %v6132_v61 = vld [vmem:[%s6514_s28 + $0xe8] sm:$0xff]  ;;  %v4447_v13 = vadd.f32 %v4446_v19, %v8287_v53 }
 0x70b   : > { %v4912_v30 = vpop.f32.mrf.mxu2 }
 0x70c   : > { %v5054_v18 = vmax.f32 %v5022_v32, 0.0  ;;  %v4913_v36 = vadd.f32 %v4912_v30, %v4824_v5 }
 0x70e   : > { %5086 = vst [vmem:[%s8306_s15 + $0xc0] sm:$0xff] %v5054_v18  ;;  %v4955_v60 = vadd.f32 %v4913_v36, %v4434_v55  ;;  %v4828_v12 = vpop.f32.mrf.mxu1 }
 0x70f   : > { %v4829_v0 = vadd.f32 %v4828_v12, %v4739_v47  ;;  %v4749_v55 = vpop.f32.mrf.mxu0  ;;  %v6133_v47 = vld [vmem:[%s6514_s28 + $0xf0] sm:$0xff] }
 0x710   : > { %v4991_v56 = vadd.f32 %v8297_v49, %v4955_v60 }
 0x711   : > { %v4448_v12 = vpop.f32.mrf.mxu3 }
 0x712   : > { %v5023_v42 = vadd.f32 %v6128_v8, %v4991_v56  ;;  %v4449_v53 = vadd.f32 %v4448_v12, %v8290_v14 }
 0x713   : > { %v4915_v23 = vpop.f32.mrf.mxu2 }
 0x714   : > { %v5055_v1 = vmax.f32 %v5023_v42, 0.0  ;;  %v4916_v31 = vadd.f32 %v4915_v23, %v4827_v20 }
 0x716   : > { %5087 = vst [vmem:[%s8306_s15 + $0xc8] sm:$0xff] %v5055_v1  ;;  %v4956_v51 = vadd.f32 %v4916_v31, %v4437_v45  ;;  %v4831_v38 = vpop.f32.mrf.mxu1  ;;  %v6134_v45 = vld [vmem:[%s6514_s28 + $0xf8] sm:$0xff] }
 0x717   : > { %v4832_v24 = vadd.f32 %v4831_v38, %v4742_v37 }
 0x718   : > { %v4992_v6 = vadd.f32 %v8297_v49, %v4956_v51 }
 0x71a   : > { %v5024_v2 = vadd.f32 %v6129_v28, %v4992_v6 }
 0x71b   : > { %v4917_v44 = vpop.f32.mrf.mxu2 }
 0x71c   : > { %v5056_v63 = vmax.f32 %v5024_v2, 0.0  ;;  %v4918_v7 = vadd.f32 %v4917_v44, %v4829_v0 }
 0x71e   : > { %5088 = vst [vmem:[%s8306_s15 + $0xd0] sm:$0xff] %v5056_v63  ;;  %v4957_v35 = vadd.f32 %v4918_v7, %v4439_v58  ;;  %v4833_v16 = vpop.f32.mrf.mxu1 }
 0x71f   : > { %v4834_v52 = vadd.f32 %v4833_v16, %v4744_v62 }
 0x720   : > { %v4993_v11 = vadd.f32 %v8297_v49, %v4957_v35 }
 0x722   : > { %v5025_v33 = vadd.f32 %v6130_v29, %v4993_v11 }
 0x723   : > { %v4920_v21 = vpop.f32.mrf.mxu2 }
 0x724   : > { %v5057_v57 = vmax.f32 %v5025_v33, 0.0  ;;  %v4921_v22 = vadd.f32 %v4920_v21, %v4832_v24 }
 0x726   : > { %5089 = vst [vmem:[%s8306_s15 + $0xd8] sm:$0xff] %v5057_v57  ;;  %v4958_v46 = vadd.f32 %v4921_v22, %v4442_v10  ;;  %v4836_v27 = vpop.f32.mrf.mxu1 }
 0x727   : > { %v4837_v41 = vadd.f32 %v4836_v27, %v4747_v43 }
 0x728   : > { %v4994_v54 = vadd.f32 %v8297_v49, %v4958_v46 }
 0x72a   : > { %v5026_v17 = vadd.f32 %v6131_v59, %v4994_v54 }
 0x72b   : > { %v4922_v40 = vpop.f32.mrf.mxu2 }
 0x72c   : > { %v5058_v39 = vmax.f32 %v5026_v17, 0.0  ;;  %v4923_v26 = vadd.f32 %v4922_v40, %v4834_v52 }
 0x72e   : > { %5090 = vst [vmem:[%s8306_s15 + $0xe0] sm:$0xff] %v5058_v39  ;;  %v4959_v25 = vadd.f32 %v4923_v26, %v4444_v3  ;;  %v4838_v18 = vpop.f32.mrf.mxu1 }
 0x72f   : > { %v4839_v60 = vadd.f32 %v4838_v18, %v4749_v55 }
 0x730   : > { %v4995_v9 = vadd.f32 %v8297_v49, %v4959_v25 }
 0x732   : > { %v5027_v48 = vadd.f32 %v6132_v61, %v4995_v9 }
 0x733   : > { %v4925_v5 = vpop.f32.mrf.mxu2 }
 0x734   : > { %v5059_v32 = vmax.f32 %v5027_v48, 0.0  ;;  %v4926_v4 = vadd.f32 %v4925_v5, %v4837_v41 }
 0x736   : > { %5091 = vst [vmem:[%s8306_s15 + $0xe8] sm:$0xff] %v5059_v32  ;;  %v4960_v30 = vadd.f32 %v4926_v4, %v4447_v13 }
 0x738   : > { %v4996_v36 = vadd.f32 %v8297_v49, %v4960_v30 }
 0x73a   : > { %v5028_v56 = vadd.f32 %v6133_v47, %v4996_v36 }
 0x73b   : > { %v4927_v20 = vpop.f32.mrf.mxu2 }
 0x73c   : > { %v5060_v8 = vmax.f32 %v5028_v56, 0.0  ;;  %v4928_v42 = vadd.f32 %v4927_v20, %v4839_v60 }
 0x73e   : > { %5092 = vst [vmem:[%s8306_s15 + $0xf0] sm:$0xff] %v5060_v8  ;;  %v4961_v50 = vadd.f32 %v4928_v42, %v4449_v53 }
 0x740   : > { %v4997_v23 = vadd.f32 %v8297_v49, %v4961_v50 }
 0x742   : > { %v5029_v1 = vadd.f32 %v6134_v45, %v4997_v23 }
 0x744   : > { %v5061_v31 = vmax.f32 %v5029_v1, 0.0 }
 0x746   : > { %5093 = vst [vmem:[%s8306_s15 + $0xf8] sm:$0xff] %v5061_v31 }
 0x747   : > { %6282 = shalt.err (!%p6279_p0)
}
 0x748   : > { %s6358_s2 = smov 128   ;;  %s6359_s28 = smov 8  }
 0x749   : > { %6017 = dma.vmem_to_hbm [thread:$0]  (%p6474_p7), %s5111_s19, 4096, %s5113_s11, %s5095_s24, %s6358_s2, %s6358_s2, %s6359_s28  }
 0x74a PF: > { %s5127_s20 = sand.u32 1, %s6329_s21   ;;  %p6034_p3 = pnand %p5248_p11, %p6440_p6 }
 0x74b   : > { %s5128_s14 = scalar_lea.sflag [#allocation4], %s5127_s20 }
 0x74c   : > { %p6035_p5 = pneg %p6034_p3 }
 0x74e   : > { %6324 = dma.done.wait (%p6035_p5), %s5128_s14, 4096  }
 0x74f   : > { %6326 = vsyncadd (%p6035_p5), %s5128_s14, 4294963200  ;;  %s26_s26 = sadd.s32 1, %s6349_s26   ;;  %s8961_s9 = sld [smem:[#allocation16_spill]] }
 0x750   : > { %p23_p9 = scmp.ge.s32.totalorder %s26_s26, 4   ;;  %s8962_s23 = sld [smem:[#allocation18_spill]] }
 0x751   : > { %s8963_s8 = sld [smem:[#allocation17_spill]]  ;;  %s8964_s21 = smov %s6333_s22 }
 0x752   : > { %s8966_s24 = smov %s6345_s25 }
 0x753   :  { %25 = sbr.rel (!%p23_p9) target bundleno = 13 (0xd), region = 114 }
 0x755   : > { %s8965_s22 = smov %s8961_s9 }
 0x757   : > { %s8967_s25 = smov %s8963_s8 }
 0x758   :  { %5134 = vsyncpa [#allocation3], 1 }
 0x759   :  { %5136 = vsyncpa [#allocation3 + $0x1], 1 }
 0x75a   :  { %5137 = vsyncpa [#allocation6], 1 }
 0x75b   :  { %5139 = vsyncpa [#allocation6 + $0x1], 1 }
 0x75c   :  { %5140 = vsyncpa [#allocation9], 1 }
 0x75d   :  { %5141 = vsyncpa [#allocation4], 1 }
 0x75e   :  { %5143 = vsyncpa [#allocation4 + $0x1], 1 }

</bundles_post_ra>
